<compile_context>
chip_gen: v5e
topology: v5e:2x2
jax: 0.10.0
libtpu: 0.0.40
codegen_flags: <defaults>
</compile_context>

<pallas_src>
import functools

import jax
import jax.numpy as jnp
from jax import lax
from jax.experimental import pallas as pl
from jax.experimental.pallas import tpu as pltpu


# ---------------------------------------------------------------------------
# Kernel 1: lane-dense channel mean/max pooling over (N, C, H*W)
# ---------------------------------------------------------------------------
def _pool_kernel(x_ref, o_ref, sum_sc, max_sc, *, C, tc, mask_c):
    c_blk = pl.program_id(2)

    v = x_ref[0].astype(jnp.float32)                    # (tc, thw), lane-dense
    if mask_c:
        # Tail channel tile: mask out-of-range channels.
        ch = lax.broadcasted_iota(jnp.int32, v.shape, 0) + c_blk * tc
        valid = ch < C
        s = jnp.sum(jnp.where(valid, v, 0.0), axis=0, keepdims=True)
        m = jnp.max(jnp.where(valid, v, -jnp.inf), axis=0, keepdims=True)
    else:
        s = jnp.sum(v, axis=0, keepdims=True)
        m = jnp.max(v, axis=0, keepdims=True)

    @pl.when(c_blk == 0)
    def _init():
        sum_sc[...] = s
        max_sc[...] = m

    @pl.when(c_blk > 0)
    def _accum():
        sum_sc[...] = sum_sc[...] + s
        max_sc[...] = jnp.maximum(max_sc[...], m)

    @pl.when(c_blk == pl.num_programs(2) - 1)
    def _finalize():
        o_ref[0, 0] = sum_sc[0] * (1.0 / C)             # channel mean
        o_ref[0, 1] = max_sc[0]                         # channel max


# ---------------------------------------------------------------------------
# Kernel 2: reflect pad 3 + 7x7 conv (2 -> 1) + bias, per batch element
# ---------------------------------------------------------------------------
def _conv_kernel(p_ref, w_ref, b_ref, o_ref, pad_sc, col_sc, *, H, W, k=7, pad=3):
    # Build the reflect-padded pooled maps fully in VMEM scratch
    # (PyTorch 'reflect' mode: edge not repeated; columns reflected from the
    # row-padded scratch so corners come out right).
    for ch in range(2):
        a = p_ref[0, ch]                                # (H, W) f32
        pad_sc[ch, pad:pad + H, pad:pad + W] = a
        for r in range(pad):
            pad_sc[ch, r:r + 1, pad:pad + W] = a[pad - r:pad - r + 1, :]
            pad_sc[ch, pad + H + r:pad + H + r + 1, pad:pad + W] = \
                a[H - 2 - r:H - 1 - r, :]
        for r in range(pad):
            pad_sc[ch, :, r:r + 1] = \
                pad_sc[ch, :, 2 * pad - r:2 * pad - r + 1]
            pad_sc[ch, :, pad + W + r:pad + W + r + 1] = \
                pad_sc[ch, :, pad + W - 2 - r:pad + W - 1 - r]

    # 7x7 conv (2 -> 1) + bias.  Lane-shifted slab staged once per (ch, j)
    # into col_sc; the 7 sublane-offset windows per slab are then VMEM loads.
    acc = jnp.zeros((H, W), jnp.float32) + b_ref[0]
    for ch in range(2):
        for j in range(k):
            col_sc[...] = pad_sc[ch, :, j:j + W]        # (H + 2*pad, W)
            for i in range(k):
                acc = acc + col_sc[i:i + H, :] * w_ref[ch * k * k + i * k + j]
    o_ref[0, 0] = acc.astype(o_ref.dtype)


# ---------------------------------------------------------------------------
# Tiling / wrapper
# ---------------------------------------------------------------------------
def _choose_tiles(C, HW, itemsize, budget_bytes=8 << 20):
    """Pick (tc, thw): channel / flattened-spatial tile sizes for pooling."""
    if C * HW * itemsize <= budget_bytes:
        return C, HW                                    # whole (C, HW) slab
    if 8 * HW * itemsize <= budget_bytes:
        tc = int((budget_bytes // (HW * itemsize)) // 8 * 8)
        return tc, HW                                   # channel-tile, full HW
    # Very large H*W: tile the spatial (lane) axis in multiples of 128 too.
    tc = C if C < 8 else 8
    thw = int(max(128, (budget_bytes // (tc * itemsize)) // 128 * 128))
    thw = min(thw, ((HW + 127) // 128) * 128)
    return tc, thw


def spatial_attention(x, weight, bias):
    """x: (N, C, H, W); weight: (1, 2, 7, 7); bias: (1,) -> (N, 1, H, W)."""
    N, C, H, W = x.shape
    if H < 4 or W < 4:
        raise ValueError("reflect padding of 3 requires H >= 4 and W >= 4")
    HW = H * W
    itemsize = jnp.dtype(x.dtype).itemsize
    tc, thw = _choose_tiles(C, HW, itemsize)
    n_c = pl.cdiv(C, tc)
    n_hw = pl.cdiv(HW, thw)
    mask_c = (C % tc) != 0

    x_flat = x.reshape(N, C, HW)                        # lane-dense layout

    block_bytes = tc * thw * itemsize
    # Double-buffered input block + output/scratch headroom; capped for v7x.
    vmem_limit = int(min(48 << 20, 2 * block_bytes + (8 << 20)))

    x_spec = pl.BlockSpec((1, tc, thw), lambda n, s, c: (n, c, s))
    if block_bytes < (1 << 20) and N * n_hw * n_c >= 4:
        # Small blocks remain: deepen pipelining to hide per-step DMA latency.
        x_spec = pl.BlockSpec((1, tc, thw), lambda n, s, c: (n, c, s),
                              pipeline_mode=pl.Buffered(3))

    pool_kern = functools.partial(_pool_kernel, C=C, tc=tc, mask_c=mask_c)
    pooled = pl.pallas_call(
        pool_kern,
        out_shape=jax.ShapeDtypeStruct((N, 2, HW), jnp.float32),
        grid=(N, n_hw, n_c),
        in_specs=[x_spec],
        out_specs=pl.BlockSpec((1, 2, thw), lambda n, s, c: (n, 0, s)),
        scratch_shapes=[pltpu.VMEM((1, thw), jnp.float32),   # running sum
                        pltpu.VMEM((1, thw), jnp.float32)],  # running max
        compiler_params=pltpu.CompilerParams(
            dimension_semantics=("parallel", "parallel", "arbitrary"),
            vmem_limit_bytes=vmem_limit),
    )(x_flat)

    pooled_2d = pooled.reshape(N, 2, H, W)
    w_flat = weight.reshape(-1).astype(jnp.float32)     # (2*7*7,) [c, ki, kj]
    b_flat = bias.reshape(-1).astype(jnp.float32)       # (1,)

    conv_kern = functools.partial(_conv_kernel, H=H, W=W)
    out = pl.pallas_call(
        conv_kern,
        out_shape=jax.ShapeDtypeStruct((N, 1, H, W), x.dtype),
        grid=(N,),
        in_specs=[
            pl.BlockSpec((1, 2, H, W), lambda n: (n, 0, 0, 0)),
            pl.BlockSpec(memory_space=pltpu.MemorySpace.SMEM),  # conv weights
            pl.BlockSpec(memory_space=pltpu.MemorySpace.SMEM),  # conv bias
        ],
        out_specs=pl.BlockSpec((1, 1, H, W), lambda n: (n, 0, 0, 0)),
        scratch_shapes=[pltpu.VMEM((2, H + 6, W + 6), jnp.float32),  # padded pool
                        pltpu.VMEM((H + 6, W), jnp.float32)],        # column slab
        compiler_params=pltpu.CompilerParams(
            dimension_semantics=("parallel",)),
    )(pooled_2d, w_flat, b_flat)
    return out


# ---------------------------------------------------------------------------
# Pure-JAX reference (matches PyTorch SpatialAttention.forward).
# ---------------------------------------------------------------------------
def reference(x, weight, bias):
    avg = jnp.mean(x, axis=1, keepdims=True)
    mx = jnp.max(x, axis=1, keepdims=True)
    x2 = jnp.concatenate([avg, mx], axis=1)                       # (N, 2, H, W)
    x2p = jnp.pad(x2, ((0, 0), (0, 0), (3, 3), (3, 3)), mode="reflect")
    out = lax.conv_general_dilated(
        x2p, weight, window_strides=(1, 1), padding="VALID",
        dimension_numbers=("NCHW", "OIHW", "NCHW"))
    return out + bias[None, :, None, None]


if __name__ == "__main__":
    N, C, H, W = 2, 4, 16, 16
    key = jax.random.PRNGKey(0)
    kx, kw, kb = jax.random.split(key, 3)
    x = jax.random.normal(kx, (N, C, H, W), jnp.float32)
    weight = jax.random.uniform(kw, (1, 2, 7, 7), jnp.float32, -0.2, 0.2)
    bias = jax.random.uniform(kb, (1,), jnp.float32, -0.2, 0.2)

    out = jax.block_until_ready(jax.jit(spatial_attention)(x, weight, bias))
    ref = jax.block_until_ready(reference(x, weight, bias))

    assert out.shape == ref.shape == (N, 1, H, W)
    max_err = float(jnp.max(jnp.abs(out - ref)))
    if max_err > 1e-4:
        raise AssertionError(f"mismatch vs reference: max abs err {max_err}")
    print("KERNEL_OK")
</pallas_src>

<mosaic_0001>
module attributes {stable_mosaic.version = 11 : i64} {
  func.func @_pool_kernel(%arg0: i32, %arg1: i32, %arg2: i32, %arg3: memref<1x4x256xf32, #tpu.memory_space<vmem>>, %arg4: memref<1x2x256xf32, #tpu.memory_space<vmem>>, %arg5: memref<1x256xf32, #tpu.memory_space<vmem>>, %arg6: memref<1x256xf32, #tpu.memory_space<vmem>>) attributes {dimension_semantics = [#tpu.dimension_semantics<parallel>, #tpu.dimension_semantics<parallel>, #tpu.dimension_semantics<arbitrary>], iteration_bounds = array<i64: 2, 1, 1>, scalar_prefetch = 0 : i64, scratch_operands = 2 : i64, tpu.core_type = #tpu.core_type<tc>, window_params = [{transform_indices = @transform_0, window_bounds = array<i64: 1, 4, 256>}, {transform_indices = @transform_1, window_bounds = array<i64: 1, 2, 256>}]} {
    %c0 = arith.constant 0 : index
    %c0_0 = arith.constant 0 : index
    %c0_1 = arith.constant 0 : index
    %0 = vector.load %arg3[%c0, %c0_0, %c0_1] : memref<1x4x256xf32, #tpu.memory_space<vmem>>, vector<1x4x256xf32>
    %1 = vector.shape_cast %0 : vector<1x4x256xf32> to vector<4x256xf32>
    %cst = arith.constant dense<0.000000e+00> : vector<256xf32>
    %2 = vector.multi_reduction <add>, %1, %cst [0] : vector<4x256xf32> to vector<256xf32>
    %3 = vector.shape_cast %2 : vector<256xf32> to vector<1x256xf32>
    %cst_2 = arith.constant dense<0xFF800000> : vector<256xf32>
    %4 = vector.multi_reduction <maximumf>, %1, %cst_2 [0] : vector<4x256xf32> to vector<256xf32>
    %5 = vector.shape_cast %4 : vector<256xf32> to vector<1x256xf32>
    %c0_i32 = arith.constant 0 : i32
    %6 = arith.cmpi eq, %arg2, %c0_i32 : i32
    %7 = arith.extui %6 : i1 to i32
    %c0_i32_3 = arith.constant 0 : i32
    %8 = arith.cmpi ne, %7, %c0_i32_3 : i32
    scf.if %8 {
      %c0_8 = arith.constant 0 : index
      %c0_9 = arith.constant 0 : index
      %15 = vector.load %arg5[%c0_8, %c0_9] : memref<1x256xf32, #tpu.memory_space<vmem>>, vector<1x256xf32>
      tpu.vector_store %arg5[%c0_8, %c0_9], %3 {strides = array<i32>} : memref<1x256xf32, #tpu.memory_space<vmem>>, vector<1x256xf32>,
      %c0_10 = arith.constant 0 : index
      %c0_11 = arith.constant 0 : index
      %16 = vector.load %arg6[%c0_10, %c0_11] : memref<1x256xf32, #tpu.memory_space<vmem>>, vector<1x256xf32>
      tpu.vector_store %arg6[%c0_10, %c0_11], %5 {strides = array<i32>} : memref<1x256xf32, #tpu.memory_space<vmem>>, vector<1x256xf32>,
    } else {
    }
    %c0_i32_4 = arith.constant 0 : i32
    %9 = arith.cmpi sgt, %arg2, %c0_i32_4 : i32
    %10 = arith.extui %9 : i1 to i32
    %c0_i32_5 = arith.constant 0 : i32
    %11 = arith.cmpi ne, %10, %c0_i32_5 : i32
    scf.if %11 {
      %c0_8 = arith.constant 0 : index
      %c0_9 = arith.constant 0 : index
      %15 = vector.load %arg5[%c0_8, %c0_9] : memref<1x256xf32, #tpu.memory_space<vmem>>, vector<1x256xf32>
      %16 = arith.addf %15, %3 : vector<1x256xf32>
      %c0_10 = arith.constant 0 : index
      %c0_11 = arith.constant 0 : index
      %17 = vector.load %arg5[%c0_10, %c0_11] : memref<1x256xf32, #tpu.memory_space<vmem>>, vector<1x256xf32>
      tpu.vector_store %arg5[%c0_10, %c0_11], %16 {strides = array<i32>} : memref<1x256xf32, #tpu.memory_space<vmem>>, vector<1x256xf32>,
      %c0_12 = arith.constant 0 : index
      %c0_13 = arith.constant 0 : index
      %18 = vector.load %arg6[%c0_12, %c0_13] : memref<1x256xf32, #tpu.memory_space<vmem>>, vector<1x256xf32>
      %19 = arith.maximumf %18, %5 : vector<1x256xf32>
      %c0_14 = arith.constant 0 : index
      %c0_15 = arith.constant 0 : index
      %20 = vector.load %arg6[%c0_14, %c0_15] : memref<1x256xf32, #tpu.memory_space<vmem>>, vector<1x256xf32>
      tpu.vector_store %arg6[%c0_14, %c0_15], %19 {strides = array<i32>} : memref<1x256xf32, #tpu.memory_space<vmem>>, vector<1x256xf32>,
    } else {
    }
    %c0_i32_6 = arith.constant 0 : i32
    %12 = arith.cmpi eq, %arg2, %c0_i32_6 : i32
    %13 = arith.extui %12 : i1 to i32
    %c0_i32_7 = arith.constant 0 : i32
    %14 = arith.cmpi ne, %13, %c0_i32_7 : i32
    scf.if %14 {
      %c0_8 = arith.constant 0 : index
      %c0_9 = arith.constant 0 : index
      %15 = vector.load %arg5[%c0_8, %c0_9] : memref<1x256xf32, #tpu.memory_space<vmem>>, vector<1x256xf32>
      %16 = vector.shape_cast %15 : vector<1x256xf32> to vector<256xf32>
      %cst_10 = arith.constant 2.500000e-01 : f32
      %17 = vector.broadcast %cst_10 : f32 to vector<256xf32>
      %18 = arith.mulf %16, %17 : vector<256xf32>
      %c0_11 = arith.constant 0 : index
      %c0_12 = arith.constant 0 : index
      %c0_13 = arith.constant 0 : index
      %19 = vector.load %arg4[%c0_11, %c0_12, %c0_13] : memref<1x2x256xf32, #tpu.memory_space<vmem>>, vector<1x1x256xf32>
      %20 = vector.shape_cast %19 : vector<1x1x256xf32> to vector<256xf32>
      %21 = vector.shape_cast %18 : vector<256xf32> to vector<1x1x256xf32>
      tpu.vector_store %arg4[%c0_11, %c0_12, %c0_13], %21 {strides = array<i32>} : memref<1x2x256xf32, #tpu.memory_space<vmem>>, vector<1x1x256xf32>,
      %c0_14 = arith.constant 0 : index
      %c0_15 = arith.constant 0 : index
      %22 = vector.load %arg6[%c0_14, %c0_15] : memref<1x256xf32, #tpu.memory_space<vmem>>, vector<1x256xf32>
      %23 = vector.shape_cast %22 : vector<1x256xf32> to vector<256xf32>
      %c0_16 = arith.constant 0 : index
      %c1 = arith.constant 1 : index
      %c0_17 = arith.constant 0 : index
      %24 = vector.load %arg4[%c0_16, %c1, %c0_17] : memref<1x2x256xf32, #tpu.memory_space<vmem>>, vector<1x1x256xf32>
      %25 = vector.shape_cast %24 : vector<1x1x256xf32> to vector<256xf32>
      %26 = vector.shape_cast %23 : vector<256xf32> to vector<1x1x256xf32>
      tpu.vector_store %arg4[%c0_16, %c1, %c0_17], %26 {strides = array<i32>} : memref<1x2x256xf32, #tpu.memory_space<vmem>>, vector<1x1x256xf32>,
    } else {
    }
    return
  }
  func.func @transform_0(%arg0: i32, %arg1: i32, %arg2: i32) -> (i32, i32, i32) {
    %c0_i32 = arith.constant 0 : i32
    return %arg0, %arg2, %arg1 : i32, i32, i32
  }
  func.func @transform_1(%arg0: i32, %arg1: i32, %arg2: i32) -> (i32, i32, i32) {
    %c0_i32 = arith.constant 0 : i32
    %c0_i32_0 = arith.constant 0 : i32
    return %arg0, %c0_i32, %arg1 : i32, i32, i32
  }
}

module attributes {stable_mosaic.version = 11 : i64} {
  func.func @_conv_kernel(%arg0: i32, %arg1: memref<1x2x16x16xf32, #tpu.memory_space<vmem>>, %arg2: memref<98xf32, #tpu.memory_space<smem>>, %arg3: memref<1xf32, #tpu.memory_space<smem>>, %arg4: memref<1x1x16x16xf32, #tpu.memory_space<vmem>>, %arg5: memref<2x22x22xf32, #tpu.memory_space<vmem>>, %arg6: memref<22x16xf32, #tpu.memory_space<vmem>>) attributes {dimension_semantics = [#tpu.dimension_semantics<parallel>], iteration_bounds = array<i64: 2>, scalar_prefetch = 0 : i64, scratch_operands = 2 : i64, tpu.core_type = #tpu.core_type<tc>, window_params = [{transform_indices = @transform_0, window_bounds = array<i64: 1, 2, 16, 16>}, {transform_indices = @transform_1, window_bounds = array<i64: 98>}, {transform_indices = @transform_2, window_bounds = array<i64: 1>}, {transform_indices = @transform_3, window_bounds = array<i64: 1, 1, 16, 16>}]} {
    %c0 = arith.constant 0 : index
    %c0_0 = arith.constant 0 : index
    %c0_1 = arith.constant 0 : index
    %c0_2 = arith.constant 0 : index
    %0 = vector.load %arg1[%c0, %c0_0, %c0_1, %c0_2] : memref<1x2x16x16xf32, #tpu.memory_space<vmem>>, vector<1x1x16x16xf32>
    %1 = vector.shape_cast %0 : vector<1x1x16x16xf32> to vector<16x16xf32>
    %c0_3 = arith.constant 0 : index
    %c3 = arith.constant 3 : index
    %c3_4 = arith.constant 3 : index
    %2 = vector.load %arg5[%c0_3, %c3, %c3_4] : memref<2x22x22xf32, #tpu.memory_space<vmem>>, vector<1x16x16xf32>
    %3 = vector.shape_cast %2 : vector<1x16x16xf32> to vector<16x16xf32>
    %4 = vector.shape_cast %1 : vector<16x16xf32> to vector<1x16x16xf32>
    tpu.vector_store %arg5[%c0_3, %c3, %c3_4], %4 {strides = array<i32>} : memref<2x22x22xf32, #tpu.memory_space<vmem>>, vector<1x16x16xf32>,
    %5 = vector.extract_strided_slice %1 {offsets = [3, 0], sizes = [1, 16], strides = [1, 1]} : vector<16x16xf32> to vector<1x16xf32>
    %c0_5 = arith.constant 0 : index
    %c0_6 = arith.constant 0 : index
    %c3_7 = arith.constant 3 : index
    %6 = vector.load %arg5[%c0_5, %c0_6, %c3_7] : memref<2x22x22xf32, #tpu.memory_space<vmem>>, vector<1x1x16xf32>
    %7 = vector.shape_cast %6 : vector<1x1x16xf32> to vector<1x16xf32>
    %8 = vector.shape_cast %5 : vector<1x16xf32> to vector<1x1x16xf32>
    tpu.vector_store %arg5[%c0_5, %c0_6, %c3_7], %8 {strides = array<i32>} : memref<2x22x22xf32, #tpu.memory_space<vmem>>, vector<1x1x16xf32>,
    %9 = vector.extract_strided_slice %1 {offsets = [14, 0], sizes = [1, 16], strides = [1, 1]} : vector<16x16xf32> to vector<1x16xf32>
    %c0_8 = arith.constant 0 : index
    %c19 = arith.constant 19 : index
    %c3_9 = arith.constant 3 : index
    %10 = vector.load %arg5[%c0_8, %c19, %c3_9] : memref<2x22x22xf32, #tpu.memory_space<vmem>>, vector<1x1x16xf32>
    %11 = vector.shape_cast %10 : vector<1x1x16xf32> to vector<1x16xf32>
    %12 = vector.shape_cast %9 : vector<1x16xf32> to vector<1x1x16xf32>
    tpu.vector_store %arg5[%c0_8, %c19, %c3_9], %12 {strides = array<i32>} : memref<2x22x22xf32, #tpu.memory_space<vmem>>, vector<1x1x16xf32>,
    %13 = vector.extract_strided_slice %1 {offsets = [2, 0], sizes = [1, 16], strides = [1, 1]} : vector<16x16xf32> to vector<1x16xf32>
    %c0_10 = arith.constant 0 : index
    %c1 = arith.constant 1 : index
    %c3_11 = arith.constant 3 : index
    %14 = vector.load %arg5[%c0_10, %c1, %c3_11] : memref<2x22x22xf32, #tpu.memory_space<vmem>>, vector<1x1x16xf32>
    %15 = vector.shape_cast %14 : vector<1x1x16xf32> to vector<1x16xf32>
    %16 = vector.shape_cast %13 : vector<1x16xf32> to vector<1x1x16xf32>
    tpu.vector_store %arg5[%c0_10, %c1, %c3_11], %16 {strides = array<i32>} : memref<2x22x22xf32, #tpu.memory_space<vmem>>, vector<1x1x16xf32>,
    %17 = vector.extract_strided_slice %1 {offsets = [13, 0], sizes = [1, 16], strides = [1, 1]} : vector<16x16xf32> to vector<1x16xf32>
    %c0_12 = arith.constant 0 : index
    %c20 = arith.constant 20 : index
    %c3_13 = arith.constant 3 : index
    %18 = vector.load %arg5[%c0_12, %c20, %c3_13] : memref<2x22x22xf32, #tpu.memory_space<vmem>>, vector<1x1x16xf32>
    %19 = vector.shape_cast %18 : vector<1x1x16xf32> to vector<1x16xf32>
    %20 = vector.shape_cast %17 : vector<1x16xf32> to vector<1x1x16xf32>
    tpu.vector_store %arg5[%c0_12, %c20, %c3_13], %20 {strides = array<i32>} : memref<2x22x22xf32, #tpu.memory_space<vmem>>, vector<1x1x16xf32>,
    %21 = vector.extract_strided_slice %1 {offsets = [1, 0], sizes = [1, 16], strides = [1, 1]} : vector<16x16xf32> to vector<1x16xf32>
    %c0_14 = arith.constant 0 : index
    %c2 = arith.constant 2 : index
    %c3_15 = arith.constant 3 : index
    %22 = vector.load %arg5[%c0_14, %c2, %c3_15] : memref<2x22x22xf32, #tpu.memory_space<vmem>>, vector<1x1x16xf32>
    %23 = vector.shape_cast %22 : vector<1x1x16xf32> to vector<1x16xf32>
    %24 = vector.shape_cast %21 : vector<1x16xf32> to vector<1x1x16xf32>
    tpu.vector_store %arg5[%c0_14, %c2, %c3_15], %24 {strides = array<i32>} : memref<2x22x22xf32, #tpu.memory_space<vmem>>, vector<1x1x16xf32>,
    %25 = vector.extract_strided_slice %1 {offsets = [12, 0], sizes = [1, 16], strides = [1, 1]} : vector<16x16xf32> to vector<1x16xf32>
    %c0_16 = arith.constant 0 : index
    %c21 = arith.constant 21 : index
    %c3_17 = arith.constant 3 : index
    %26 = vector.load %arg5[%c0_16, %c21, %c3_17] : memref<2x22x22xf32, #tpu.memory_space<vmem>>, vector<1x1x16xf32>
    %27 = vector.shape_cast %26 : vector<1x1x16xf32> to vector<1x16xf32>
    %28 = vector.shape_cast %25 : vector<1x16xf32> to vector<1x1x16xf32>
    tpu.vector_store %arg5[%c0_16, %c21, %c3_17], %28 {strides = array<i32>} : memref<2x22x22xf32, #tpu.memory_space<vmem>>, vector<1x1x16xf32>,
    %c0_18 = arith.constant 0 : index
    %c0_19 = arith.constant 0 : index
    %c6 = arith.constant 6 : index
    %29 = vector.load %arg5[%c0_18, %c0_19, %c6] : memref<2x22x22xf32, #tpu.memory_space<vmem>>, vector<1x22x1xf32>
    %30 = vector.shape_cast %29 : vector<1x22x1xf32> to vector<22x1xf32>
    %c0_20 = arith.constant 0 : index
    %c0_21 = arith.constant 0 : index
    %c0_22 = arith.constant 0 : index
    %31 = vector.load %arg5[%c0_20, %c0_21, %c0_22] : memref<2x22x22xf32, #tpu.memory_space<vmem>>, vector<1x22x1xf32>
    %32 = vector.shape_cast %31 : vector<1x22x1xf32> to vector<22x1xf32>
    %33 = vector.shape_cast %30 : vector<22x1xf32> to vector<1x22x1xf32>
    tpu.vector_store %arg5[%c0_20, %c0_21, %c0_22], %33 {strides = array<i32>} : memref<2x22x22xf32, #tpu.memory_space<vmem>>, vector<1x22x1xf32>,
    %c0_23 = arith.constant 0 : index
    %c0_24 = arith.constant 0 : index
    %c17 = arith.constant 17 : index
    %34 = vector.load %arg5[%c0_23, %c0_24, %c17] : memref<2x22x22xf32, #tpu.memory_space<vmem>>, vector<1x22x1xf32>
    %35 = vector.shape_cast %34 : vector<1x22x1xf32> to vector<22x1xf32>
    %c0_25 = arith.constant 0 : index
    %c0_26 = arith.constant 0 : index
    %c19_27 = arith.constant 19 : index
    %36 = vector.load %arg5[%c0_25, %c0_26, %c19_27] : memref<2x22x22xf32, #tpu.memory_space<vmem>>, vector<1x22x1xf32>
    %37 = vector.shape_cast %36 : vector<1x22x1xf32> to vector<22x1xf32>
    %38 = vector.shape_cast %35 : vector<22x1xf32> to vector<1x22x1xf32>
    tpu.vector_store %arg5[%c0_25, %c0_26, %c19_27], %38 {strides = array<i32>} : memref<2x22x22xf32, #tpu.memory_space<vmem>>, vector<1x22x1xf32>,
    %c0_28 = arith.constant 0 : index
    %c0_29 = arith.constant 0 : index
    %c5 = arith.constant 5 : index
    %39 = vector.load %arg5[%c0_28, %c0_29, %c5] : memref<2x22x22xf32, #tpu.memory_space<vmem>>, vector<1x22x1xf32>
    %40 = vector.shape_cast %39 : vector<1x22x1xf32> to vector<22x1xf32>
    %c0_30 = arith.constant 0 : index
    %c0_31 = arith.constant 0 : index
    %c1_32 = arith.constant 1 : index
    %41 = vector.load %arg5[%c0_30, %c0_31, %c1_32] : memref<2x22x22xf32, #tpu.memory_space<vmem>>, vector<1x22x1xf32>
    %42 = vector.shape_cast %41 : vector<1x22x1xf32> to vector<22x1xf32>
    %43 = vector.shape_cast %40 : vector<22x1xf32> to vector<1x22x1xf32>
    tpu.vector_store %arg5[%c0_30, %c0_31, %c1_32], %43 {strides = array<i32>} : memref<2x22x22xf32, #tpu.memory_space<vmem>>, vector<1x22x1xf32>,
    %c0_33 = arith.constant 0 : index
    %c0_34 = arith.constant 0 : index
    %c16 = arith.constant 16 : index
    %44 = vector.load %arg5[%c0_33, %c0_34, %c16] : memref<2x22x22xf32, #tpu.memory_space<vmem>>, vector<1x22x1xf32>
    %45 = vector.shape_cast %44 : vector<1x22x1xf32> to vector<22x1xf32>
    %c0_35 = arith.constant 0 : index
    %c0_36 = arith.constant 0 : index
    %c20_37 = arith.constant 20 : index
    %46 = vector.load %arg5[%c0_35, %c0_36, %c20_37] : memref<2x22x22xf32, #tpu.memory_space<vmem>>, vector<1x22x1xf32>
    %47 = vector.shape_cast %46 : vector<1x22x1xf32> to vector<22x1xf32>
    %48 = vector.shape_cast %45 : vector<22x1xf32> to vector<1x22x1xf32>
    tpu.vector_store %arg5[%c0_35, %c0_36, %c20_37], %48 {strides = array<i32>} : memref<2x22x22xf32, #tpu.memory_space<vmem>>, vector<1x22x1xf32>,
    %c0_38 = arith.constant 0 : index
    %c0_39 = arith.constant 0 : index
    %c4 = arith.constant 4 : index
    %49 = vector.load %arg5[%c0_38, %c0_39, %c4] : memref<2x22x22xf32, #tpu.memory_space<vmem>>, vector<1x22x1xf32>
    %50 = vector.shape_cast %49 : vector<1x22x1xf32> to vector<22x1xf32>
    %c0_40 = arith.constant 0 : index
    %c0_41 = arith.constant 0 : index
    %c2_42 = arith.constant 2 : index
    %51 = vector.load %arg5[%c0_40, %c0_41, %c2_42] : memref<2x22x22xf32, #tpu.memory_space<vmem>>, vector<1x22x1xf32>
    %52 = vector.shape_cast %51 : vector<1x22x1xf32> to vector<22x1xf32>
    %53 = vector.shape_cast %50 : vector<22x1xf32> to vector<1x22x1xf32>
    tpu.vector_store %arg5[%c0_40, %c0_41, %c2_42], %53 {strides = array<i32>} : memref<2x22x22xf32, #tpu.memory_space<vmem>>, vector<1x22x1xf32>,
    %c0_43 = arith.constant 0 : index
    %c0_44 = arith.constant 0 : index
    %c15 = arith.constant 15 : index
    %54 = vector.load %arg5[%c0_43, %c0_44, %c15] : memref<2x22x22xf32, #tpu.memory_space<vmem>>, vector<1x22x1xf32>
    %55 = vector.shape_cast %54 : vector<1x22x1xf32> to vector<22x1xf32>
    %c0_45 = arith.constant 0 : index
    %c0_46 = arith.constant 0 : index
    %c21_47 = arith.constant 21 : index
    %56 = vector.load %arg5[%c0_45, %c0_46, %c21_47] : memref<2x22x22xf32, #tpu.memory_space<vmem>>, vector<1x22x1xf32>
    %57 = vector.shape_cast %56 : vector<1x22x1xf32> to vector<22x1xf32>
    %58 = vector.shape_cast %55 : vector<22x1xf32> to vector<1x22x1xf32>
    tpu.vector_store %arg5[%c0_45, %c0_46, %c21_47], %58 {strides = array<i32>} : memref<2x22x22xf32, #tpu.memory_space<vmem>>, vector<1x22x1xf32>,
    %c0_48 = arith.constant 0 : index
    %c1_49 = arith.constant 1 : index
    %c0_50 = arith.constant 0 : index
    %c0_51 = arith.constant 0 : index
    %59 = vector.load %arg1[%c0_48, %c1_49, %c0_50, %c0_51] : memref<1x2x16x16xf32, #tpu.memory_space<vmem>>, vector<1x1x16x16xf32>
    %60 = vector.shape_cast %59 : vector<1x1x16x16xf32> to vector<16x16xf32>
    %c1_52 = arith.constant 1 : index
    %c3_53 = arith.constant 3 : index
    %c3_54 = arith.constant 3 : index
    %61 = vector.load %arg5[%c1_52, %c3_53, %c3_54] : memref<2x22x22xf32, #tpu.memory_space<vmem>>, vector<1x16x16xf32>
    %62 = vector.shape_cast %61 : vector<1x16x16xf32> to vector<16x16xf32>
    %63 = vector.shape_cast %60 : vector<16x16xf32> to vector<1x16x16xf32>
    tpu.vector_store %arg5[%c1_52, %c3_53, %c3_54], %63 {strides = array<i32>} : memref<2x22x22xf32, #tpu.memory_space<vmem>>, vector<1x16x16xf32>,
    %64 = vector.extract_strided_slice %60 {offsets = [3, 0], sizes = [1, 16], strides = [1, 1]} : vector<16x16xf32> to vector<1x16xf32>
    %c1_55 = arith.constant 1 : index
    %c0_56 = arith.constant 0 : index
    %c3_57 = arith.constant 3 : index
    %65 = vector.load %arg5[%c1_55, %c0_56, %c3_57] : memref<2x22x22xf32, #tpu.memory_space<vmem>>, vector<1x1x16xf32>
    %66 = vector.shape_cast %65 : vector<1x1x16xf32> to vector<1x16xf32>
    %67 = vector.shape_cast %64 : vector<1x16xf32> to vector<1x1x16xf32>
    tpu.vector_store %arg5[%c1_55, %c0_56, %c3_57], %67 {strides = array<i32>} : memref<2x22x22xf32, #tpu.memory_space<vmem>>, vector<1x1x16xf32>,
    %68 = vector.extract_strided_slice %60 {offsets = [14, 0], sizes = [1, 16], strides = [1, 1]} : vector<16x16xf32> to vector<1x16xf32>
    %c1_58 = arith.constant 1 : index
    %c19_59 = arith.constant 19 : index
    %c3_60 = arith.constant 3 : index
    %69 = vector.load %arg5[%c1_58, %c19_59, %c3_60] : memref<2x22x22xf32, #tpu.memory_space<vmem>>, vector<1x1x16xf32>
    %70 = vector.shape_cast %69 : vector<1x1x16xf32> to vector<1x16xf32>
    %71 = vector.shape_cast %68 : vector<1x16xf32> to vector<1x1x16xf32>
    tpu.vector_store %arg5[%c1_58, %c19_59, %c3_60], %71 {strides = array<i32>} : memref<2x22x22xf32, #tpu.memory_space<vmem>>, vector<1x1x16xf32>,
    %72 = vector.extract_strided_slice %60 {offsets = [2, 0], sizes = [1, 16], strides = [1, 1]} : vector<16x16xf32> to vector<1x16xf32>
    %c1_61 = arith.constant 1 : index
    %c1_62 = arith.constant 1 : index
    %c3_63 = arith.constant 3 : index
    %73 = vector.load %arg5[%c1_61, %c1_62, %c3_63] : memref<2x22x22xf32, #tpu.memory_space<vmem>>, vector<1x1x16xf32>
    %74 = vector.shape_cast %73 : vector<1x1x16xf32> to vector<1x16xf32>
    %75 = vector.shape_cast %72 : vector<1x16xf32> to vector<1x1x16xf32>
    tpu.vector_store %arg5[%c1_61, %c1_62, %c3_63], %75 {strides = array<i32>} : memref<2x22x22xf32, #tpu.memory_space<vmem>>, vector<1x1x16xf32>,
    %76 = vector.extract_strided_slice %60 {offsets = [13, 0], sizes = [1, 16], strides = [1, 1]} : vector<16x16xf32> to vector<1x16xf32>
    %c1_64 = arith.constant 1 : index
    %c20_65 = arith.constant 20 : index
    %c3_66 = arith.constant 3 : index
    %77 = vector.load %arg5[%c1_64, %c20_65, %c3_66] : memref<2x22x22xf32, #tpu.memory_space<vmem>>, vector<1x1x16xf32>
    %78 = vector.shape_cast %77 : vector<1x1x16xf32> to vector<1x16xf32>
    %79 = vector.shape_cast %76 : vector<1x16xf32> to vector<1x1x16xf32>
    tpu.vector_store %arg5[%c1_64, %c20_65, %c3_66], %79 {strides = array<i32>} : memref<2x22x22xf32, #tpu.memory_space<vmem>>, vector<1x1x16xf32>,
    %80 = vector.extract_strided_slice %60 {offsets = [1, 0], sizes = [1, 16], strides = [1, 1]} : vector<16x16xf32> to vector<1x16xf32>
    %c1_67 = arith.constant 1 : index
    %c2_68 = arith.constant 2 : index
    %c3_69 = arith.constant 3 : index
    %81 = vector.load %arg5[%c1_67, %c2_68, %c3_69] : memref<2x22x22xf32, #tpu.memory_space<vmem>>, vector<1x1x16xf32>
    %82 = vector.shape_cast %81 : vector<1x1x16xf32> to vector<1x16xf32>
    %83 = vector.shape_cast %80 : vector<1x16xf32> to vector<1x1x16xf32>
    tpu.vector_store %arg5[%c1_67, %c2_68, %c3_69], %83 {strides = array<i32>} : memref<2x22x22xf32, #tpu.memory_space<vmem>>, vector<1x1x16xf32>,
    %84 = vector.extract_strided_slice %60 {offsets = [12, 0], sizes = [1, 16], strides = [1, 1]} : vector<16x16xf32> to vector<1x16xf32>
    %c1_70 = arith.constant 1 : index
    %c21_71 = arith.constant 21 : index
    %c3_72 = arith.constant 3 : index
    %85 = vector.load %arg5[%c1_70, %c21_71, %c3_72] : memref<2x22x22xf32, #tpu.memory_space<vmem>>, vector<1x1x16xf32>
    %86 = vector.shape_cast %85 : vector<1x1x16xf32> to vector<1x16xf32>
    %87 = vector.shape_cast %84 : vector<1x16xf32> to vector<1x1x16xf32>
    tpu.vector_store %arg5[%c1_70, %c21_71, %c3_72], %87 {strides = array<i32>} : memref<2x22x22xf32, #tpu.memory_space<vmem>>, vector<1x1x16xf32>,
    %c1_73 = arith.constant 1 : index
    %c0_74 = arith.constant 0 : index
    %c6_75 = arith.constant 6 : index
    %88 = vector.load %arg5[%c1_73, %c0_74, %c6_75] : memref<2x22x22xf32, #tpu.memory_space<vmem>>, vector<1x22x1xf32>
    %89 = vector.shape_cast %88 : vector<1x22x1xf32> to vector<22x1xf32>
    %c1_76 = arith.constant 1 : index
    %c0_77 = arith.constant 0 : index
    %c0_78 = arith.constant 0 : index
    %90 = vector.load %arg5[%c1_76, %c0_77, %c0_78] : memref<2x22x22xf32, #tpu.memory_space<vmem>>, vector<1x22x1xf32>
    %91 = vector.shape_cast %90 : vector<1x22x1xf32> to vector<22x1xf32>
    %92 = vector.shape_cast %89 : vector<22x1xf32> to vector<1x22x1xf32>
    tpu.vector_store %arg5[%c1_76, %c0_77, %c0_78], %92 {strides = array<i32>} : memref<2x22x22xf32, #tpu.memory_space<vmem>>, vector<1x22x1xf32>,
    %c1_79 = arith.constant 1 : index
    %c0_80 = arith.constant 0 : index
    %c17_81 = arith.constant 17 : index
    %93 = vector.load %arg5[%c1_79, %c0_80, %c17_81] : memref<2x22x22xf32, #tpu.memory_space<vmem>>, vector<1x22x1xf32>
    %94 = vector.shape_cast %93 : vector<1x22x1xf32> to vector<22x1xf32>
    %c1_82 = arith.constant 1 : index
    %c0_83 = arith.constant 0 : index
    %c19_84 = arith.constant 19 : index
    %95 = vector.load %arg5[%c1_82, %c0_83, %c19_84] : memref<2x22x22xf32, #tpu.memory_space<vmem>>, vector<1x22x1xf32>
    %96 = vector.shape_cast %95 : vector<1x22x1xf32> to vector<22x1xf32>
    %97 = vector.shape_cast %94 : vector<22x1xf32> to vector<1x22x1xf32>
    tpu.vector_store %arg5[%c1_82, %c0_83, %c19_84], %97 {strides = array<i32>} : memref<2x22x22xf32, #tpu.memory_space<vmem>>, vector<1x22x1xf32>,
    %c1_85 = arith.constant 1 : index
    %c0_86 = arith.constant 0 : index
    %c5_87 = arith.constant 5 : index
    %98 = vector.load %arg5[%c1_85, %c0_86, %c5_87] : memref<2x22x22xf32, #tpu.memory_space<vmem>>, vector<1x22x1xf32>
    %99 = vector.shape_cast %98 : vector<1x22x1xf32> to vector<22x1xf32>
    %c1_88 = arith.constant 1 : index
    %c0_89 = arith.constant 0 : index
    %c1_90 = arith.constant 1 : index
    %100 = vector.load %arg5[%c1_88, %c0_89, %c1_90] : memref<2x22x22xf32, #tpu.memory_space<vmem>>, vector<1x22x1xf32>
    %101 = vector.shape_cast %100 : vector<1x22x1xf32> to vector<22x1xf32>
    %102 = vector.shape_cast %99 : vector<22x1xf32> to vector<1x22x1xf32>
    tpu.vector_store %arg5[%c1_88, %c0_89, %c1_90], %102 {strides = array<i32>} : memref<2x22x22xf32, #tpu.memory_space<vmem>>, vector<1x22x1xf32>,
    %c1_91 = arith.constant 1 : index
    %c0_92 = arith.constant 0 : index
    %c16_93 = arith.constant 16 : index
    %103 = vector.load %arg5[%c1_91, %c0_92, %c16_93] : memref<2x22x22xf32, #tpu.memory_space<vmem>>, vector<1x22x1xf32>
    %104 = vector.shape_cast %103 : vector<1x22x1xf32> to vector<22x1xf32>
    %c1_94 = arith.constant 1 : index
    %c0_95 = arith.constant 0 : index
    %c20_96 = arith.constant 20 : index
    %105 = vector.load %arg5[%c1_94, %c0_95, %c20_96] : memref<2x22x22xf32, #tpu.memory_space<vmem>>, vector<1x22x1xf32>
    %106 = vector.shape_cast %105 : vector<1x22x1xf32> to vector<22x1xf32>
    %107 = vector.shape_cast %104 : vector<22x1xf32> to vector<1x22x1xf32>
    tpu.vector_store %arg5[%c1_94, %c0_95, %c20_96], %107 {strides = array<i32>} : memref<2x22x22xf32, #tpu.memory_space<vmem>>, vector<1x22x1xf32>,
    %c1_97 = arith.constant 1 : index
    %c0_98 = arith.constant 0 : index
    %c4_99 = arith.constant 4 : index
    %108 = vector.load %arg5[%c1_97, %c0_98, %c4_99] : memref<2x22x22xf32, #tpu.memory_space<vmem>>, vector<1x22x1xf32>
    %109 = vector.shape_cast %108 : vector<1x22x1xf32> to vector<22x1xf32>
    %c1_100 = arith.constant 1 : index
    %c0_101 = arith.constant 0 : index
    %c2_102 = arith.constant 2 : index
    %110 = vector.load %arg5[%c1_100, %c0_101, %c2_102] : memref<2x22x22xf32, #tpu.memory_space<vmem>>, vector<1x22x1xf32>
    %111 = vector.shape_cast %110 : vector<1x22x1xf32> to vector<22x1xf32>
    %112 = vector.shape_cast %109 : vector<22x1xf32> to vector<1x22x1xf32>
    tpu.vector_store %arg5[%c1_100, %c0_101, %c2_102], %112 {strides = array<i32>} : memref<2x22x22xf32, #tpu.memory_space<vmem>>, vector<1x22x1xf32>,
    %c1_103 = arith.constant 1 : index
    %c0_104 = arith.constant 0 : index
    %c15_105 = arith.constant 15 : index
    %113 = vector.load %arg5[%c1_103, %c0_104, %c15_105] : memref<2x22x22xf32, #tpu.memory_space<vmem>>, vector<1x22x1xf32>
    %114 = vector.shape_cast %113 : vector<1x22x1xf32> to vector<22x1xf32>
    %c1_106 = arith.constant 1 : index
    %c0_107 = arith.constant 0 : index
    %c21_108 = arith.constant 21 : index
    %115 = vector.load %arg5[%c1_106, %c0_107, %c21_108] : memref<2x22x22xf32, #tpu.memory_space<vmem>>, vector<1x22x1xf32>
    %116 = vector.shape_cast %115 : vector<1x22x1xf32> to vector<22x1xf32>
    %117 = vector.shape_cast %114 : vector<22x1xf32> to vector<1x22x1xf32>
    tpu.vector_store %arg5[%c1_106, %c0_107, %c21_108], %117 {strides = array<i32>} : memref<2x22x22xf32, #tpu.memory_space<vmem>>, vector<1x22x1xf32>,
    %cst = arith.constant 0.000000e+00 : f32
    %118 = vector.broadcast %cst : f32 to vector<16x16xf32>
    %c0_109 = arith.constant 0 : index
    %119 = memref.load %arg3[%c0_109] : memref<1xf32, #tpu.memory_space<smem>>
    %120 = vector.broadcast %119 : f32 to vector<16x16xf32>
    %121 = arith.addf %118, %120 : vector<16x16xf32>
    %c0_110 = arith.constant 0 : index
    %c0_111 = arith.constant 0 : index
    %c0_112 = arith.constant 0 : index
    %122 = vector.load %arg5[%c0_110, %c0_111, %c0_112] : memref<2x22x22xf32, #tpu.memory_space<vmem>>, vector<1x22x16xf32>
    %123 = vector.shape_cast %122 : vector<1x22x16xf32> to vector<22x16xf32>
    %c0_113 = arith.constant 0 : index
    %c0_114 = arith.constant 0 : index
    %124 = vector.load %arg6[%c0_113, %c0_114] : memref<22x16xf32, #tpu.memory_space<vmem>>, vector<22x16xf32>
    tpu.vector_store %arg6[%c0_113, %c0_114], %123 {strides = array<i32>} : memref<22x16xf32, #tpu.memory_space<vmem>>, vector<22x16xf32>,
    %c0_115 = arith.constant 0 : index
    %c0_116 = arith.constant 0 : index
    %125 = vector.load %arg6[%c0_115, %c0_116] : memref<22x16xf32, #tpu.memory_space<vmem>>, vector<16x16xf32>
    %c0_117 = arith.constant 0 : index
    %126 = memref.load %arg2[%c0_117] : memref<98xf32, #tpu.memory_space<smem>>
    %127 = vector.broadcast %126 : f32 to vector<16x16xf32>
    %128 = arith.mulf %125, %127 : vector<16x16xf32>
    %129 = arith.addf %121, %128 : vector<16x16xf32>
    %c1_118 = arith.constant 1 : index
    %c0_119 = arith.constant 0 : index
    %130 = vector.load %arg6[%c1_118, %c0_119] : memref<22x16xf32, #tpu.memory_space<vmem>>, vector<16x16xf32>
    %c7 = arith.constant 7 : index
    %131 = memref.load %arg2[%c7] : memref<98xf32, #tpu.memory_space<smem>>
    %132 = vector.broadcast %131 : f32 to vector<16x16xf32>
    %133 = arith.mulf %130, %132 : vector<16x16xf32>
    %134 = arith.addf %129, %133 : vector<16x16xf32>
    %c2_120 = arith.constant 2 : index
    %c0_121 = arith.constant 0 : index
    %135 = vector.load %arg6[%c2_120, %c0_121] : memref<22x16xf32, #tpu.memory_space<vmem>>, vector<16x16xf32>
    %c14 = arith.constant 14 : index
    %136 = memref.load %arg2[%c14] : memref<98xf32, #tpu.memory_space<smem>>
    %137 = vector.broadcast %136 : f32 to vector<16x16xf32>
    %138 = arith.mulf %135, %137 : vector<16x16xf32>
    %139 = arith.addf %134, %138 : vector<16x16xf32>
    %c3_122 = arith.constant 3 : index
    %c0_123 = arith.constant 0 : index
    %140 = vector.load %arg6[%c3_122, %c0_123] : memref<22x16xf32, #tpu.memory_space<vmem>>, vector<16x16xf32>
    %c21_124 = arith.constant 21 : index
    %141 = memref.load %arg2[%c21_124] : memref<98xf32, #tpu.memory_space<smem>>
    %142 = vector.broadcast %141 : f32 to vector<16x16xf32>
    %143 = arith.mulf %140, %142 : vector<16x16xf32>
    %144 = arith.addf %139, %143 : vector<16x16xf32>
    %c4_125 = arith.constant 4 : index
    %c0_126 = arith.constant 0 : index
    %145 = vector.load %arg6[%c4_125, %c0_126] : memref<22x16xf32, #tpu.memory_space<vmem>>, vector<16x16xf32>
    %c28 = arith.constant 28 : index
    %146 = memref.load %arg2[%c28] : memref<98xf32, #tpu.memory_space<smem>>
    %147 = vector.broadcast %146 : f32 to vector<16x16xf32>
    %148 = arith.mulf %145, %147 : vector<16x16xf32>
    %149 = arith.addf %144, %148 : vector<16x16xf32>
    %c5_127 = arith.constant 5 : index
    %c0_128 = arith.constant 0 : index
    %150 = vector.load %arg6[%c5_127, %c0_128] : memref<22x16xf32, #tpu.memory_space<vmem>>, vector<16x16xf32>
    %c35 = arith.constant 35 : index
    %151 = memref.load %arg2[%c35] : memref<98xf32, #tpu.memory_space<smem>>
    %152 = vector.broadcast %151 : f32 to vector<16x16xf32>
    %153 = arith.mulf %150, %152 : vector<16x16xf32>
    %154 = arith.addf %149, %153 : vector<16x16xf32>
    %c6_129 = arith.constant 6 : index
    %c0_130 = arith.constant 0 : index
    %155 = vector.load %arg6[%c6_129, %c0_130] : memref<22x16xf32, #tpu.memory_space<vmem>>, vector<16x16xf32>
    %c42 = arith.constant 42 : index
    %156 = memref.load %arg2[%c42] : memref<98xf32, #tpu.memory_space<smem>>
    %157 = vector.broadcast %156 : f32 to vector<16x16xf32>
    %158 = arith.mulf %155, %157 : vector<16x16xf32>
    %159 = arith.addf %154, %158 : vector<16x16xf32>
    %c0_131 = arith.constant 0 : index
    %c0_132 = arith.constant 0 : index
    %c1_133 = arith.constant 1 : index
    %160 = vector.load %arg5[%c0_131, %c0_132, %c1_133] : memref<2x22x22xf32, #tpu.memory_space<vmem>>, vector<1x22x16xf32>
    %161 = vector.shape_cast %160 : vector<1x22x16xf32> to vector<22x16xf32>
    %c0_134 = arith.constant 0 : index
    %c0_135 = arith.constant 0 : index
    %162 = vector.load %arg6[%c0_134, %c0_135] : memref<22x16xf32, #tpu.memory_space<vmem>>, vector<22x16xf32>
    tpu.vector_store %arg6[%c0_134, %c0_135], %161 {strides = array<i32>} : memref<22x16xf32, #tpu.memory_space<vmem>>, vector<22x16xf32>,
    %c0_136 = arith.constant 0 : index
    %c0_137 = arith.constant 0 : index
    %163 = vector.load %arg6[%c0_136, %c0_137] : memref<22x16xf32, #tpu.memory_space<vmem>>, vector<16x16xf32>
    %c1_138 = arith.constant 1 : index
    %164 = memref.load %arg2[%c1_138] : memref<98xf32, #tpu.memory_space<smem>>
    %165 = vector.broadcast %164 : f32 to vector<16x16xf32>
    %166 = arith.mulf %163, %165 : vector<16x16xf32>
    %167 = arith.addf %159, %166 : vector<16x16xf32>
    %c1_139 = arith.constant 1 : index
    %c0_140 = arith.constant 0 : index
    %168 = vector.load %arg6[%c1_139, %c0_140] : memref<22x16xf32, #tpu.memory_space<vmem>>, vector<16x16xf32>
    %c8 = arith.constant 8 : index
    %169 = memref.load %arg2[%c8] : memref<98xf32, #tpu.memory_space<smem>>
    %170 = vector.broadcast %169 : f32 to vector<16x16xf32>
    %171 = arith.mulf %168, %170 : vector<16x16xf32>
    %172 = arith.addf %167, %171 : vector<16x16xf32>
    %c2_141 = arith.constant 2 : index
    %c0_142 = arith.constant 0 : index
    %173 = vector.load %arg6[%c2_141, %c0_142] : memref<22x16xf32, #tpu.memory_space<vmem>>, vector<16x16xf32>
    %c15_143 = arith.constant 15 : index
    %174 = memref.load %arg2[%c15_143] : memref<98xf32, #tpu.memory_space<smem>>
    %175 = vector.broadcast %174 : f32 to vector<16x16xf32>
    %176 = arith.mulf %173, %175 : vector<16x16xf32>
    %177 = arith.addf %172, %176 : vector<16x16xf32>
    %c3_144 = arith.constant 3 : index
    %c0_145 = arith.constant 0 : index
    %178 = vector.load %arg6[%c3_144, %c0_145] : memref<22x16xf32, #tpu.memory_space<vmem>>, vector<16x16xf32>
    %c22 = arith.constant 22 : index
    %179 = memref.load %arg2[%c22] : memref<98xf32, #tpu.memory_space<smem>>
    %180 = vector.broadcast %179 : f32 to vector<16x16xf32>
    %181 = arith.mulf %178, %180 : vector<16x16xf32>
    %182 = arith.addf %177, %181 : vector<16x16xf32>
    %c4_146 = arith.constant 4 : index
    %c0_147 = arith.constant 0 : index
    %183 = vector.load %arg6[%c4_146, %c0_147] : memref<22x16xf32, #tpu.memory_space<vmem>>, vector<16x16xf32>
    %c29 = arith.constant 29 : index
    %184 = memref.load %arg2[%c29] : memref<98xf32, #tpu.memory_space<smem>>
    %185 = vector.broadcast %184 : f32 to vector<16x16xf32>
    %186 = arith.mulf %183, %185 : vector<16x16xf32>
    %187 = arith.addf %182, %186 : vector<16x16xf32>
    %c5_148 = arith.constant 5 : index
    %c0_149 = arith.constant 0 : index
    %188 = vector.load %arg6[%c5_148, %c0_149] : memref<22x16xf32, #tpu.memory_space<vmem>>, vector<16x16xf32>
    %c36 = arith.constant 36 : index
    %189 = memref.load %arg2[%c36] : memref<98xf32, #tpu.memory_space<smem>>
    %190 = vector.broadcast %189 : f32 to vector<16x16xf32>
    %191 = arith.mulf %188, %190 : vector<16x16xf32>
    %192 = arith.addf %187, %191 : vector<16x16xf32>
    %c6_150 = arith.constant 6 : index
    %c0_151 = arith.constant 0 : index
    %193 = vector.load %arg6[%c6_150, %c0_151] : memref<22x16xf32, #tpu.memory_space<vmem>>, vector<16x16xf32>
    %c43 = arith.constant 43 : index
    %194 = memref.load %arg2[%c43] : memref<98xf32, #tpu.memory_space<smem>>
    %195 = vector.broadcast %194 : f32 to vector<16x16xf32>
    %196 = arith.mulf %193, %195 : vector<16x16xf32>
    %197 = arith.addf %192, %196 : vector<16x16xf32>
    %c0_152 = arith.constant 0 : index
    %c0_153 = arith.constant 0 : index
    %c2_154 = arith.constant 2 : index
    %198 = vector.load %arg5[%c0_152, %c0_153, %c2_154] : memref<2x22x22xf32, #tpu.memory_space<vmem>>, vector<1x22x16xf32>
    %199 = vector.shape_cast %198 : vector<1x22x16xf32> to vector<22x16xf32>
    %c0_155 = arith.constant 0 : index
    %c0_156 = arith.constant 0 : index
    %200 = vector.load %arg6[%c0_155, %c0_156] : memref<22x16xf32, #tpu.memory_space<vmem>>, vector<22x16xf32>
    tpu.vector_store %arg6[%c0_155, %c0_156], %199 {strides = array<i32>} : memref<22x16xf32, #tpu.memory_space<vmem>>, vector<22x16xf32>,
    %c0_157 = arith.constant 0 : index
    %c0_158 = arith.constant 0 : index
    %201 = vector.load %arg6[%c0_157, %c0_158] : memref<22x16xf32, #tpu.memory_space<vmem>>, vector<16x16xf32>
    %c2_159 = arith.constant 2 : index
    %202 = memref.load %arg2[%c2_159] : memref<98xf32, #tpu.memory_space<smem>>
    %203 = vector.broadcast %202 : f32 to vector<16x16xf32>
    %204 = arith.mulf %201, %203 : vector<16x16xf32>
    %205 = arith.addf %197, %204 : vector<16x16xf32>
    %c1_160 = arith.constant 1 : index
    %c0_161 = arith.constant 0 : index
    %206 = vector.load %arg6[%c1_160, %c0_161] : memref<22x16xf32, #tpu.memory_space<vmem>>, vector<16x16xf32>
    %c9 = arith.constant 9 : index
    %207 = memref.load %arg2[%c9] : memref<98xf32, #tpu.memory_space<smem>>
    %208 = vector.broadcast %207 : f32 to vector<16x16xf32>
    %209 = arith.mulf %206, %208 : vector<16x16xf32>
    %210 = arith.addf %205, %209 : vector<16x16xf32>
    %c2_162 = arith.constant 2 : index
    %c0_163 = arith.constant 0 : index
    %211 = vector.load %arg6[%c2_162, %c0_163] : memref<22x16xf32, #tpu.memory_space<vmem>>, vector<16x16xf32>
    %c16_164 = arith.constant 16 : index
    %212 = memref.load %arg2[%c16_164] : memref<98xf32, #tpu.memory_space<smem>>
    %213 = vector.broadcast %212 : f32 to vector<16x16xf32>
    %214 = arith.mulf %211, %213 : vector<16x16xf32>
    %215 = arith.addf %210, %214 : vector<16x16xf32>
    %c3_165 = arith.constant 3 : index
    %c0_166 = arith.constant 0 : index
    %216 = vector.load %arg6[%c3_165, %c0_166] : memref<22x16xf32, #tpu.memory_space<vmem>>, vector<16x16xf32>
    %c23 = arith.constant 23 : index
    %217 = memref.load %arg2[%c23] : memref<98xf32, #tpu.memory_space<smem>>
    %218 = vector.broadcast %217 : f32 to vector<16x16xf32>
    %219 = arith.mulf %216, %218 : vector<16x16xf32>
    %220 = arith.addf %215, %219 : vector<16x16xf32>
    %c4_167 = arith.constant 4 : index
    %c0_168 = arith.constant 0 : index
    %221 = vector.load %arg6[%c4_167, %c0_168] : memref<22x16xf32, #tpu.memory_space<vmem>>, vector<16x16xf32>
    %c30 = arith.constant 30 : index
    %222 = memref.load %arg2[%c30] : memref<98xf32, #tpu.memory_space<smem>>
    %223 = vector.broadcast %222 : f32 to vector<16x16xf32>
    %224 = arith.mulf %221, %223 : vector<16x16xf32>
    %225 = arith.addf %220, %224 : vector<16x16xf32>
    %c5_169 = arith.constant 5 : index
    %c0_170 = arith.constant 0 : index
    %226 = vector.load %arg6[%c5_169, %c0_170] : memref<22x16xf32, #tpu.memory_space<vmem>>, vector<16x16xf32>
    %c37 = arith.constant 37 : index
    %227 = memref.load %arg2[%c37] : memref<98xf32, #tpu.memory_space<smem>>
    %228 = vector.broadcast %227 : f32 to vector<16x16xf32>
    %229 = arith.mulf %226, %228 : vector<16x16xf32>
    %230 = arith.addf %225, %229 : vector<16x16xf32>
    %c6_171 = arith.constant 6 : index
    %c0_172 = arith.constant 0 : index
    %231 = vector.load %arg6[%c6_171, %c0_172] : memref<22x16xf32, #tpu.memory_space<vmem>>, vector<16x16xf32>
    %c44 = arith.constant 44 : index
    %232 = memref.load %arg2[%c44] : memref<98xf32, #tpu.memory_space<smem>>
    %233 = vector.broadcast %232 : f32 to vector<16x16xf32>
    %234 = arith.mulf %231, %233 : vector<16x16xf32>
    %235 = arith.addf %230, %234 : vector<16x16xf32>
    %c0_173 = arith.constant 0 : index
    %c0_174 = arith.constant 0 : index
    %c3_175 = arith.constant 3 : index
    %236 = vector.load %arg5[%c0_173, %c0_174, %c3_175] : memref<2x22x22xf32, #tpu.memory_space<vmem>>, vector<1x22x16xf32>
    %237 = vector.shape_cast %236 : vector<1x22x16xf32> to vector<22x16xf32>
    %c0_176 = arith.constant 0 : index
    %c0_177 = arith.constant 0 : index
    %238 = vector.load %arg6[%c0_176, %c0_177] : memref<22x16xf32, #tpu.memory_space<vmem>>, vector<22x16xf32>
    tpu.vector_store %arg6[%c0_176, %c0_177], %237 {strides = array<i32>} : memref<22x16xf32, #tpu.memory_space<vmem>>, vector<22x16xf32>,
    %c0_178 = arith.constant 0 : index
    %c0_179 = arith.constant 0 : index
    %239 = vector.load %arg6[%c0_178, %c0_179] : memref<22x16xf32, #tpu.memory_space<vmem>>, vector<16x16xf32>
    %c3_180 = arith.constant 3 : index
    %240 = memref.load %arg2[%c3_180] : memref<98xf32, #tpu.memory_space<smem>>
    %241 = vector.broadcast %240 : f32 to vector<16x16xf32>
    %242 = arith.mulf %239, %241 : vector<16x16xf32>
    %243 = arith.addf %235, %242 : vector<16x16xf32>
    %c1_181 = arith.constant 1 : index
    %c0_182 = arith.constant 0 : index
    %244 = vector.load %arg6[%c1_181, %c0_182] : memref<22x16xf32, #tpu.memory_space<vmem>>, vector<16x16xf32>
    %c10 = arith.constant 10 : index
    %245 = memref.load %arg2[%c10] : memref<98xf32, #tpu.memory_space<smem>>
    %246 = vector.broadcast %245 : f32 to vector<16x16xf32>
    %247 = arith.mulf %244, %246 : vector<16x16xf32>
    %248 = arith.addf %243, %247 : vector<16x16xf32>
    %c2_183 = arith.constant 2 : index
    %c0_184 = arith.constant 0 : index
    %249 = vector.load %arg6[%c2_183, %c0_184] : memref<22x16xf32, #tpu.memory_space<vmem>>, vector<16x16xf32>
    %c17_185 = arith.constant 17 : index
    %250 = memref.load %arg2[%c17_185] : memref<98xf32, #tpu.memory_space<smem>>
    %251 = vector.broadcast %250 : f32 to vector<16x16xf32>
    %252 = arith.mulf %249, %251 : vector<16x16xf32>
    %253 = arith.addf %248, %252 : vector<16x16xf32>
    %c3_186 = arith.constant 3 : index
    %c0_187 = arith.constant 0 : index
    %254 = vector.load %arg6[%c3_186, %c0_187] : memref<22x16xf32, #tpu.memory_space<vmem>>, vector<16x16xf32>
    %c24 = arith.constant 24 : index
    %255 = memref.load %arg2[%c24] : memref<98xf32, #tpu.memory_space<smem>>
    %256 = vector.broadcast %255 : f32 to vector<16x16xf32>
    %257 = arith.mulf %254, %256 : vector<16x16xf32>
    %258 = arith.addf %253, %257 : vector<16x16xf32>
    %c4_188 = arith.constant 4 : index
    %c0_189 = arith.constant 0 : index
    %259 = vector.load %arg6[%c4_188, %c0_189] : memref<22x16xf32, #tpu.memory_space<vmem>>, vector<16x16xf32>
    %c31 = arith.constant 31 : index
    %260 = memref.load %arg2[%c31] : memref<98xf32, #tpu.memory_space<smem>>
    %261 = vector.broadcast %260 : f32 to vector<16x16xf32>
    %262 = arith.mulf %259, %261 : vector<16x16xf32>
    %263 = arith.addf %258, %262 : vector<16x16xf32>
    %c5_190 = arith.constant 5 : index
    %c0_191 = arith.constant 0 : index
    %264 = vector.load %arg6[%c5_190, %c0_191] : memref<22x16xf32, #tpu.memory_space<vmem>>, vector<16x16xf32>
    %c38 = arith.constant 38 : index
    %265 = memref.load %arg2[%c38] : memref<98xf32, #tpu.memory_space<smem>>
    %266 = vector.broadcast %265 : f32 to vector<16x16xf32>
    %267 = arith.mulf %264, %266 : vector<16x16xf32>
    %268 = arith.addf %263, %267 : vector<16x16xf32>
    %c6_192 = arith.constant 6 : index
    %c0_193 = arith.constant 0 : index
    %269 = vector.load %arg6[%c6_192, %c0_193] : memref<22x16xf32, #tpu.memory_space<vmem>>, vector<16x16xf32>
    %c45 = arith.constant 45 : index
    %270 = memref.load %arg2[%c45] : memref<98xf32, #tpu.memory_space<smem>>
    %271 = vector.broadcast %270 : f32 to vector<16x16xf32>
    %272 = arith.mulf %269, %271 : vector<16x16xf32>
    %273 = arith.addf %268, %272 : vector<16x16xf32>
    %c0_194 = arith.constant 0 : index
    %c0_195 = arith.constant 0 : index
    %c4_196 = arith.constant 4 : index
    %274 = vector.load %arg5[%c0_194, %c0_195, %c4_196] : memref<2x22x22xf32, #tpu.memory_space<vmem>>, vector<1x22x16xf32>
    %275 = vector.shape_cast %274 : vector<1x22x16xf32> to vector<22x16xf32>
    %c0_197 = arith.constant 0 : index
    %c0_198 = arith.constant 0 : index
    %276 = vector.load %arg6[%c0_197, %c0_198] : memref<22x16xf32, #tpu.memory_space<vmem>>, vector<22x16xf32>
    tpu.vector_store %arg6[%c0_197, %c0_198], %275 {strides = array<i32>} : memref<22x16xf32, #tpu.memory_space<vmem>>, vector<22x16xf32>,
    %c0_199 = arith.constant 0 : index
    %c0_200 = arith.constant 0 : index
    %277 = vector.load %arg6[%c0_199, %c0_200] : memref<22x16xf32, #tpu.memory_space<vmem>>, vector<16x16xf32>
    %c4_201 = arith.constant 4 : index
    %278 = memref.load %arg2[%c4_201] : memref<98xf32, #tpu.memory_space<smem>>
    %279 = vector.broadcast %278 : f32 to vector<16x16xf32>
    %280 = arith.mulf %277, %279 : vector<16x16xf32>
    %281 = arith.addf %273, %280 : vector<16x16xf32>
    %c1_202 = arith.constant 1 : index
    %c0_203 = arith.constant 0 : index
    %282 = vector.load %arg6[%c1_202, %c0_203] : memref<22x16xf32, #tpu.memory_space<vmem>>, vector<16x16xf32>
    %c11 = arith.constant 11 : index
    %283 = memref.load %arg2[%c11] : memref<98xf32, #tpu.memory_space<smem>>
    %284 = vector.broadcast %283 : f32 to vector<16x16xf32>
    %285 = arith.mulf %282, %284 : vector<16x16xf32>
    %286 = arith.addf %281, %285 : vector<16x16xf32>
    %c2_204 = arith.constant 2 : index
    %c0_205 = arith.constant 0 : index
    %287 = vector.load %arg6[%c2_204, %c0_205] : memref<22x16xf32, #tpu.memory_space<vmem>>, vector<16x16xf32>
    %c18 = arith.constant 18 : index
    %288 = memref.load %arg2[%c18] : memref<98xf32, #tpu.memory_space<smem>>
    %289 = vector.broadcast %288 : f32 to vector<16x16xf32>
    %290 = arith.mulf %287, %289 : vector<16x16xf32>
    %291 = arith.addf %286, %290 : vector<16x16xf32>
    %c3_206 = arith.constant 3 : index
    %c0_207 = arith.constant 0 : index
    %292 = vector.load %arg6[%c3_206, %c0_207] : memref<22x16xf32, #tpu.memory_space<vmem>>, vector<16x16xf32>
    %c25 = arith.constant 25 : index
    %293 = memref.load %arg2[%c25] : memref<98xf32, #tpu.memory_space<smem>>
    %294 = vector.broadcast %293 : f32 to vector<16x16xf32>
    %295 = arith.mulf %292, %294 : vector<16x16xf32>
    %296 = arith.addf %291, %295 : vector<16x16xf32>
    %c4_208 = arith.constant 4 : index
    %c0_209 = arith.constant 0 : index
    %297 = vector.load %arg6[%c4_208, %c0_209] : memref<22x16xf32, #tpu.memory_space<vmem>>, vector<16x16xf32>
    %c32 = arith.constant 32 : index
    %298 = memref.load %arg2[%c32] : memref<98xf32, #tpu.memory_space<smem>>
    %299 = vector.broadcast %298 : f32 to vector<16x16xf32>
    %300 = arith.mulf %297, %299 : vector<16x16xf32>
    %301 = arith.addf %296, %300 : vector<16x16xf32>
    %c5_210 = arith.constant 5 : index
    %c0_211 = arith.constant 0 : index
    %302 = vector.load %arg6[%c5_210, %c0_211] : memref<22x16xf32, #tpu.memory_space<vmem>>, vector<16x16xf32>
    %c39 = arith.constant 39 : index
    %303 = memref.load %arg2[%c39] : memref<98xf32, #tpu.memory_space<smem>>
    %304 = vector.broadcast %303 : f32 to vector<16x16xf32>
    %305 = arith.mulf %302, %304 : vector<16x16xf32>
    %306 = arith.addf %301, %305 : vector<16x16xf32>
    %c6_212 = arith.constant 6 : index
    %c0_213 = arith.constant 0 : index
    %307 = vector.load %arg6[%c6_212, %c0_213] : memref<22x16xf32, #tpu.memory_space<vmem>>, vector<16x16xf32>
    %c46 = arith.constant 46 : index
    %308 = memref.load %arg2[%c46] : memref<98xf32, #tpu.memory_space<smem>>
    %309 = vector.broadcast %308 : f32 to vector<16x16xf32>
    %310 = arith.mulf %307, %309 : vector<16x16xf32>
    %311 = arith.addf %306, %310 : vector<16x16xf32>
    %c0_214 = arith.constant 0 : index
    %c0_215 = arith.constant 0 : index
    %c5_216 = arith.constant 5 : index
    %312 = vector.load %arg5[%c0_214, %c0_215, %c5_216] : memref<2x22x22xf32, #tpu.memory_space<vmem>>, vector<1x22x16xf32>
    %313 = vector.shape_cast %312 : vector<1x22x16xf32> to vector<22x16xf32>
    %c0_217 = arith.constant 0 : index
    %c0_218 = arith.constant 0 : index
    %314 = vector.load %arg6[%c0_217, %c0_218] : memref<22x16xf32, #tpu.memory_space<vmem>>, vector<22x16xf32>
    tpu.vector_store %arg6[%c0_217, %c0_218], %313 {strides = array<i32>} : memref<22x16xf32, #tpu.memory_space<vmem>>, vector<22x16xf32>,
    %c0_219 = arith.constant 0 : index
    %c0_220 = arith.constant 0 : index
    %315 = vector.load %arg6[%c0_219, %c0_220] : memref<22x16xf32, #tpu.memory_space<vmem>>, vector<16x16xf32>
    %c5_221 = arith.constant 5 : index
    %316 = memref.load %arg2[%c5_221] : memref<98xf32, #tpu.memory_space<smem>>
    %317 = vector.broadcast %316 : f32 to vector<16x16xf32>
    %318 = arith.mulf %315, %317 : vector<16x16xf32>
    %319 = arith.addf %311, %318 : vector<16x16xf32>
    %c1_222 = arith.constant 1 : index
    %c0_223 = arith.constant 0 : index
    %320 = vector.load %arg6[%c1_222, %c0_223] : memref<22x16xf32, #tpu.memory_space<vmem>>, vector<16x16xf32>
    %c12 = arith.constant 12 : index
    %321 = memref.load %arg2[%c12] : memref<98xf32, #tpu.memory_space<smem>>
    %322 = vector.broadcast %321 : f32 to vector<16x16xf32>
    %323 = arith.mulf %320, %322 : vector<16x16xf32>
    %324 = arith.addf %319, %323 : vector<16x16xf32>
    %c2_224 = arith.constant 2 : index
    %c0_225 = arith.constant 0 : index
    %325 = vector.load %arg6[%c2_224, %c0_225] : memref<22x16xf32, #tpu.memory_space<vmem>>, vector<16x16xf32>
    %c19_226 = arith.constant 19 : index
    %326 = memref.load %arg2[%c19_226] : memref<98xf32, #tpu.memory_space<smem>>
    %327 = vector.broadcast %326 : f32 to vector<16x16xf32>
    %328 = arith.mulf %325, %327 : vector<16x16xf32>
    %329 = arith.addf %324, %328 : vector<16x16xf32>
    %c3_227 = arith.constant 3 : index
    %c0_228 = arith.constant 0 : index
    %330 = vector.load %arg6[%c3_227, %c0_228] : memref<22x16xf32, #tpu.memory_space<vmem>>, vector<16x16xf32>
    %c26 = arith.constant 26 : index
    %331 = memref.load %arg2[%c26] : memref<98xf32, #tpu.memory_space<smem>>
    %332 = vector.broadcast %331 : f32 to vector<16x16xf32>
    %333 = arith.mulf %330, %332 : vector<16x16xf32>
    %334 = arith.addf %329, %333 : vector<16x16xf32>
    %c4_229 = arith.constant 4 : index
    %c0_230 = arith.constant 0 : index
    %335 = vector.load %arg6[%c4_229, %c0_230] : memref<22x16xf32, #tpu.memory_space<vmem>>, vector<16x16xf32>
    %c33 = arith.constant 33 : index
    %336 = memref.load %arg2[%c33] : memref<98xf32, #tpu.memory_space<smem>>
    %337 = vector.broadcast %336 : f32 to vector<16x16xf32>
    %338 = arith.mulf %335, %337 : vector<16x16xf32>
    %339 = arith.addf %334, %338 : vector<16x16xf32>
    %c5_231 = arith.constant 5 : index
    %c0_232 = arith.constant 0 : index
    %340 = vector.load %arg6[%c5_231, %c0_232] : memref<22x16xf32, #tpu.memory_space<vmem>>, vector<16x16xf32>
    %c40 = arith.constant 40 : index
    %341 = memref.load %arg2[%c40] : memref<98xf32, #tpu.memory_space<smem>>
    %342 = vector.broadcast %341 : f32 to vector<16x16xf32>
    %343 = arith.mulf %340, %342 : vector<16x16xf32>
    %344 = arith.addf %339, %343 : vector<16x16xf32>
    %c6_233 = arith.constant 6 : index
    %c0_234 = arith.constant 0 : index
    %345 = vector.load %arg6[%c6_233, %c0_234] : memref<22x16xf32, #tpu.memory_space<vmem>>, vector<16x16xf32>
    %c47 = arith.constant 47 : index
    %346 = memref.load %arg2[%c47] : memref<98xf32, #tpu.memory_space<smem>>
    %347 = vector.broadcast %346 : f32 to vector<16x16xf32>
    %348 = arith.mulf %345, %347 : vector<16x16xf32>
    %349 = arith.addf %344, %348 : vector<16x16xf32>
    %c0_235 = arith.constant 0 : index
    %c0_236 = arith.constant 0 : index
    %c6_237 = arith.constant 6 : index
    %350 = vector.load %arg5[%c0_235, %c0_236, %c6_237] : memref<2x22x22xf32, #tpu.memory_space<vmem>>, vector<1x22x16xf32>
    %351 = vector.shape_cast %350 : vector<1x22x16xf32> to vector<22x16xf32>
    %c0_238 = arith.constant 0 : index
    %c0_239 = arith.constant 0 : index
    %352 = vector.load %arg6[%c0_238, %c0_239] : memref<22x16xf32, #tpu.memory_space<vmem>>, vector<22x16xf32>
    tpu.vector_store %arg6[%c0_238, %c0_239], %351 {strides = array<i32>} : memref<22x16xf32, #tpu.memory_space<vmem>>, vector<22x16xf32>,
    %c0_240 = arith.constant 0 : index
    %c0_241 = arith.constant 0 : index
    %353 = vector.load %arg6[%c0_240, %c0_241] : memref<22x16xf32, #tpu.memory_space<vmem>>, vector<16x16xf32>
    %c6_242 = arith.constant 6 : index
    %354 = memref.load %arg2[%c6_242] : memref<98xf32, #tpu.memory_space<smem>>
    %355 = vector.broadcast %354 : f32 to vector<16x16xf32>
    %356 = arith.mulf %353, %355 : vector<16x16xf32>
    %357 = arith.addf %349, %356 : vector<16x16xf32>
    %c1_243 = arith.constant 1 : index
    %c0_244 = arith.constant 0 : index
    %358 = vector.load %arg6[%c1_243, %c0_244] : memref<22x16xf32, #tpu.memory_space<vmem>>, vector<16x16xf32>
    %c13 = arith.constant 13 : index
    %359 = memref.load %arg2[%c13] : memref<98xf32, #tpu.memory_space<smem>>
    %360 = vector.broadcast %359 : f32 to vector<16x16xf32>
    %361 = arith.mulf %358, %360 : vector<16x16xf32>
    %362 = arith.addf %357, %361 : vector<16x16xf32>
    %c2_245 = arith.constant 2 : index
    %c0_246 = arith.constant 0 : index
    %363 = vector.load %arg6[%c2_245, %c0_246] : memref<22x16xf32, #tpu.memory_space<vmem>>, vector<16x16xf32>
    %c20_247 = arith.constant 20 : index
    %364 = memref.load %arg2[%c20_247] : memref<98xf32, #tpu.memory_space<smem>>
    %365 = vector.broadcast %364 : f32 to vector<16x16xf32>
    %366 = arith.mulf %363, %365 : vector<16x16xf32>
    %367 = arith.addf %362, %366 : vector<16x16xf32>
    %c3_248 = arith.constant 3 : index
    %c0_249 = arith.constant 0 : index
    %368 = vector.load %arg6[%c3_248, %c0_249] : memref<22x16xf32, #tpu.memory_space<vmem>>, vector<16x16xf32>
    %c27 = arith.constant 27 : index
    %369 = memref.load %arg2[%c27] : memref<98xf32, #tpu.memory_space<smem>>
    %370 = vector.broadcast %369 : f32 to vector<16x16xf32>
    %371 = arith.mulf %368, %370 : vector<16x16xf32>
    %372 = arith.addf %367, %371 : vector<16x16xf32>
    %c4_250 = arith.constant 4 : index
    %c0_251 = arith.constant 0 : index
    %373 = vector.load %arg6[%c4_250, %c0_251] : memref<22x16xf32, #tpu.memory_space<vmem>>, vector<16x16xf32>
    %c34 = arith.constant 34 : index
    %374 = memref.load %arg2[%c34] : memref<98xf32, #tpu.memory_space<smem>>
    %375 = vector.broadcast %374 : f32 to vector<16x16xf32>
    %376 = arith.mulf %373, %375 : vector<16x16xf32>
    %377 = arith.addf %372, %376 : vector<16x16xf32>
    %c5_252 = arith.constant 5 : index
    %c0_253 = arith.constant 0 : index
    %378 = vector.load %arg6[%c5_252, %c0_253] : memref<22x16xf32, #tpu.memory_space<vmem>>, vector<16x16xf32>
    %c41 = arith.constant 41 : index
    %379 = memref.load %arg2[%c41] : memref<98xf32, #tpu.memory_space<smem>>
    %380 = vector.broadcast %379 : f32 to vector<16x16xf32>
    %381 = arith.mulf %378, %380 : vector<16x16xf32>
    %382 = arith.addf %377, %381 : vector<16x16xf32>
    %c6_254 = arith.constant 6 : index
    %c0_255 = arith.constant 0 : index
    %383 = vector.load %arg6[%c6_254, %c0_255] : memref<22x16xf32, #tpu.memory_space<vmem>>, vector<16x16xf32>
    %c48 = arith.constant 48 : index
    %384 = memref.load %arg2[%c48] : memref<98xf32, #tpu.memory_space<smem>>
    %385 = vector.broadcast %384 : f32 to vector<16x16xf32>
    %386 = arith.mulf %383, %385 : vector<16x16xf32>
    %387 = arith.addf %382, %386 : vector<16x16xf32>
    %c1_256 = arith.constant 1 : index
    %c0_257 = arith.constant 0 : index
    %c0_258 = arith.constant 0 : index
    %388 = vector.load %arg5[%c1_256, %c0_257, %c0_258] : memref<2x22x22xf32, #tpu.memory_space<vmem>>, vector<1x22x16xf32>
    %389 = vector.shape_cast %388 : vector<1x22x16xf32> to vector<22x16xf32>
    %c0_259 = arith.constant 0 : index
    %c0_260 = arith.constant 0 : index
    %390 = vector.load %arg6[%c0_259, %c0_260] : memref<22x16xf32, #tpu.memory_space<vmem>>, vector<22x16xf32>
    tpu.vector_store %arg6[%c0_259, %c0_260], %389 {strides = array<i32>} : memref<22x16xf32, #tpu.memory_space<vmem>>, vector<22x16xf32>,
    %c0_261 = arith.constant 0 : index
    %c0_262 = arith.constant 0 : index
    %391 = vector.load %arg6[%c0_261, %c0_262] : memref<22x16xf32, #tpu.memory_space<vmem>>, vector<16x16xf32>
    %c49 = arith.constant 49 : index
    %392 = memref.load %arg2[%c49] : memref<98xf32, #tpu.memory_space<smem>>
    %393 = vector.broadcast %392 : f32 to vector<16x16xf32>
    %394 = arith.mulf %391, %393 : vector<16x16xf32>
    %395 = arith.addf %387, %394 : vector<16x16xf32>
    %c1_263 = arith.constant 1 : index
    %c0_264 = arith.constant 0 : index
    %396 = vector.load %arg6[%c1_263, %c0_264] : memref<22x16xf32, #tpu.memory_space<vmem>>, vector<16x16xf32>
    %c56 = arith.constant 56 : index
    %397 = memref.load %arg2[%c56] : memref<98xf32, #tpu.memory_space<smem>>
    %398 = vector.broadcast %397 : f32 to vector<16x16xf32>
    %399 = arith.mulf %396, %398 : vector<16x16xf32>
    %400 = arith.addf %395, %399 : vector<16x16xf32>
    %c2_265 = arith.constant 2 : index
    %c0_266 = arith.constant 0 : index
    %401 = vector.load %arg6[%c2_265, %c0_266] : memref<22x16xf32, #tpu.memory_space<vmem>>, vector<16x16xf32>
    %c63 = arith.constant 63 : index
    %402 = memref.load %arg2[%c63] : memref<98xf32, #tpu.memory_space<smem>>
    %403 = vector.broadcast %402 : f32 to vector<16x16xf32>
    %404 = arith.mulf %401, %403 : vector<16x16xf32>
    %405 = arith.addf %400, %404 : vector<16x16xf32>
    %c3_267 = arith.constant 3 : index
    %c0_268 = arith.constant 0 : index
    %406 = vector.load %arg6[%c3_267, %c0_268] : memref<22x16xf32, #tpu.memory_space<vmem>>, vector<16x16xf32>
    %c70 = arith.constant 70 : index
    %407 = memref.load %arg2[%c70] : memref<98xf32, #tpu.memory_space<smem>>
    %408 = vector.broadcast %407 : f32 to vector<16x16xf32>
    %409 = arith.mulf %406, %408 : vector<16x16xf32>
    %410 = arith.addf %405, %409 : vector<16x16xf32>
    %c4_269 = arith.constant 4 : index
    %c0_270 = arith.constant 0 : index
    %411 = vector.load %arg6[%c4_269, %c0_270] : memref<22x16xf32, #tpu.memory_space<vmem>>, vector<16x16xf32>
    %c77 = arith.constant 77 : index
    %412 = memref.load %arg2[%c77] : memref<98xf32, #tpu.memory_space<smem>>
    %413 = vector.broadcast %412 : f32 to vector<16x16xf32>
    %414 = arith.mulf %411, %413 : vector<16x16xf32>
    %415 = arith.addf %410, %414 : vector<16x16xf32>
    %c5_271 = arith.constant 5 : index
    %c0_272 = arith.constant 0 : index
    %416 = vector.load %arg6[%c5_271, %c0_272] : memref<22x16xf32, #tpu.memory_space<vmem>>, vector<16x16xf32>
    %c84 = arith.constant 84 : index
    %417 = memref.load %arg2[%c84] : memref<98xf32, #tpu.memory_space<smem>>
    %418 = vector.broadcast %417 : f32 to vector<16x16xf32>
    %419 = arith.mulf %416, %418 : vector<16x16xf32>
    %420 = arith.addf %415, %419 : vector<16x16xf32>
    %c6_273 = arith.constant 6 : index
    %c0_274 = arith.constant 0 : index
    %421 = vector.load %arg6[%c6_273, %c0_274] : memref<22x16xf32, #tpu.memory_space<vmem>>, vector<16x16xf32>
    %c91 = arith.constant 91 : index
    %422 = memref.load %arg2[%c91] : memref<98xf32, #tpu.memory_space<smem>>
    %423 = vector.broadcast %422 : f32 to vector<16x16xf32>
    %424 = arith.mulf %421, %423 : vector<16x16xf32>
    %425 = arith.addf %420, %424 : vector<16x16xf32>
    %c1_275 = arith.constant 1 : index
    %c0_276 = arith.constant 0 : index
    %c1_277 = arith.constant 1 : index
    %426 = vector.load %arg5[%c1_275, %c0_276, %c1_277] : memref<2x22x22xf32, #tpu.memory_space<vmem>>, vector<1x22x16xf32>
    %427 = vector.shape_cast %426 : vector<1x22x16xf32> to vector<22x16xf32>
    %c0_278 = arith.constant 0 : index
    %c0_279 = arith.constant 0 : index
    %428 = vector.load %arg6[%c0_278, %c0_279] : memref<22x16xf32, #tpu.memory_space<vmem>>, vector<22x16xf32>
    tpu.vector_store %arg6[%c0_278, %c0_279], %427 {strides = array<i32>} : memref<22x16xf32, #tpu.memory_space<vmem>>, vector<22x16xf32>,
    %c0_280 = arith.constant 0 : index
    %c0_281 = arith.constant 0 : index
    %429 = vector.load %arg6[%c0_280, %c0_281] : memref<22x16xf32, #tpu.memory_space<vmem>>, vector<16x16xf32>
    %c50 = arith.constant 50 : index
    %430 = memref.load %arg2[%c50] : memref<98xf32, #tpu.memory_space<smem>>
    %431 = vector.broadcast %430 : f32 to vector<16x16xf32>
    %432 = arith.mulf %429, %431 : vector<16x16xf32>
    %433 = arith.addf %425, %432 : vector<16x16xf32>
    %c1_282 = arith.constant 1 : index
    %c0_283 = arith.constant 0 : index
    %434 = vector.load %arg6[%c1_282, %c0_283] : memref<22x16xf32, #tpu.memory_space<vmem>>, vector<16x16xf32>
    %c57 = arith.constant 57 : index
    %435 = memref.load %arg2[%c57] : memref<98xf32, #tpu.memory_space<smem>>
    %436 = vector.broadcast %435 : f32 to vector<16x16xf32>
    %437 = arith.mulf %434, %436 : vector<16x16xf32>
    %438 = arith.addf %433, %437 : vector<16x16xf32>
    %c2_284 = arith.constant 2 : index
    %c0_285 = arith.constant 0 : index
    %439 = vector.load %arg6[%c2_284, %c0_285] : memref<22x16xf32, #tpu.memory_space<vmem>>, vector<16x16xf32>
    %c64 = arith.constant 64 : index
    %440 = memref.load %arg2[%c64] : memref<98xf32, #tpu.memory_space<smem>>
    %441 = vector.broadcast %440 : f32 to vector<16x16xf32>
    %442 = arith.mulf %439, %441 : vector<16x16xf32>
    %443 = arith.addf %438, %442 : vector<16x16xf32>
    %c3_286 = arith.constant 3 : index
    %c0_287 = arith.constant 0 : index
    %444 = vector.load %arg6[%c3_286, %c0_287] : memref<22x16xf32, #tpu.memory_space<vmem>>, vector<16x16xf32>
    %c71 = arith.constant 71 : index
    %445 = memref.load %arg2[%c71] : memref<98xf32, #tpu.memory_space<smem>>
    %446 = vector.broadcast %445 : f32 to vector<16x16xf32>
    %447 = arith.mulf %444, %446 : vector<16x16xf32>
    %448 = arith.addf %443, %447 : vector<16x16xf32>
    %c4_288 = arith.constant 4 : index
    %c0_289 = arith.constant 0 : index
    %449 = vector.load %arg6[%c4_288, %c0_289] : memref<22x16xf32, #tpu.memory_space<vmem>>, vector<16x16xf32>
    %c78 = arith.constant 78 : index
    %450 = memref.load %arg2[%c78] : memref<98xf32, #tpu.memory_space<smem>>
    %451 = vector.broadcast %450 : f32 to vector<16x16xf32>
    %452 = arith.mulf %449, %451 : vector<16x16xf32>
    %453 = arith.addf %448, %452 : vector<16x16xf32>
    %c5_290 = arith.constant 5 : index
    %c0_291 = arith.constant 0 : index
    %454 = vector.load %arg6[%c5_290, %c0_291] : memref<22x16xf32, #tpu.memory_space<vmem>>, vector<16x16xf32>
    %c85 = arith.constant 85 : index
    %455 = memref.load %arg2[%c85] : memref<98xf32, #tpu.memory_space<smem>>
    %456 = vector.broadcast %455 : f32 to vector<16x16xf32>
    %457 = arith.mulf %454, %456 : vector<16x16xf32>
    %458 = arith.addf %453, %457 : vector<16x16xf32>
    %c6_292 = arith.constant 6 : index
    %c0_293 = arith.constant 0 : index
    %459 = vector.load %arg6[%c6_292, %c0_293] : memref<22x16xf32, #tpu.memory_space<vmem>>, vector<16x16xf32>
    %c92 = arith.constant 92 : index
    %460 = memref.load %arg2[%c92] : memref<98xf32, #tpu.memory_space<smem>>
    %461 = vector.broadcast %460 : f32 to vector<16x16xf32>
    %462 = arith.mulf %459, %461 : vector<16x16xf32>
    %463 = arith.addf %458, %462 : vector<16x16xf32>
    %c1_294 = arith.constant 1 : index
    %c0_295 = arith.constant 0 : index
    %c2_296 = arith.constant 2 : index
    %464 = vector.load %arg5[%c1_294, %c0_295, %c2_296] : memref<2x22x22xf32, #tpu.memory_space<vmem>>, vector<1x22x16xf32>
    %465 = vector.shape_cast %464 : vector<1x22x16xf32> to vector<22x16xf32>
    %c0_297 = arith.constant 0 : index
    %c0_298 = arith.constant 0 : index
    %466 = vector.load %arg6[%c0_297, %c0_298] : memref<22x16xf32, #tpu.memory_space<vmem>>, vector<22x16xf32>
    tpu.vector_store %arg6[%c0_297, %c0_298], %465 {strides = array<i32>} : memref<22x16xf32, #tpu.memory_space<vmem>>, vector<22x16xf32>,
    %c0_299 = arith.constant 0 : index
    %c0_300 = arith.constant 0 : index
    %467 = vector.load %arg6[%c0_299, %c0_300] : memref<22x16xf32, #tpu.memory_space<vmem>>, vector<16x16xf32>
    %c51 = arith.constant 51 : index
    %468 = memref.load %arg2[%c51] : memref<98xf32, #tpu.memory_space<smem>>
    %469 = vector.broadcast %468 : f32 to vector<16x16xf32>
    %470 = arith.mulf %467, %469 : vector<16x16xf32>
    %471 = arith.addf %463, %470 : vector<16x16xf32>
    %c1_301 = arith.constant 1 : index
    %c0_302 = arith.constant 0 : index
    %472 = vector.load %arg6[%c1_301, %c0_302] : memref<22x16xf32, #tpu.memory_space<vmem>>, vector<16x16xf32>
    %c58 = arith.constant 58 : index
    %473 = memref.load %arg2[%c58] : memref<98xf32, #tpu.memory_space<smem>>
    %474 = vector.broadcast %473 : f32 to vector<16x16xf32>
    %475 = arith.mulf %472, %474 : vector<16x16xf32>
    %476 = arith.addf %471, %475 : vector<16x16xf32>
    %c2_303 = arith.constant 2 : index
    %c0_304 = arith.constant 0 : index
    %477 = vector.load %arg6[%c2_303, %c0_304] : memref<22x16xf32, #tpu.memory_space<vmem>>, vector<16x16xf32>
    %c65 = arith.constant 65 : index
    %478 = memref.load %arg2[%c65] : memref<98xf32, #tpu.memory_space<smem>>
    %479 = vector.broadcast %478 : f32 to vector<16x16xf32>
    %480 = arith.mulf %477, %479 : vector<16x16xf32>
    %481 = arith.addf %476, %480 : vector<16x16xf32>
    %c3_305 = arith.constant 3 : index
    %c0_306 = arith.constant 0 : index
    %482 = vector.load %arg6[%c3_305, %c0_306] : memref<22x16xf32, #tpu.memory_space<vmem>>, vector<16x16xf32>
    %c72 = arith.constant 72 : index
    %483 = memref.load %arg2[%c72] : memref<98xf32, #tpu.memory_space<smem>>
    %484 = vector.broadcast %483 : f32 to vector<16x16xf32>
    %485 = arith.mulf %482, %484 : vector<16x16xf32>
    %486 = arith.addf %481, %485 : vector<16x16xf32>
    %c4_307 = arith.constant 4 : index
    %c0_308 = arith.constant 0 : index
    %487 = vector.load %arg6[%c4_307, %c0_308] : memref<22x16xf32, #tpu.memory_space<vmem>>, vector<16x16xf32>
    %c79 = arith.constant 79 : index
    %488 = memref.load %arg2[%c79] : memref<98xf32, #tpu.memory_space<smem>>
    %489 = vector.broadcast %488 : f32 to vector<16x16xf32>
    %490 = arith.mulf %487, %489 : vector<16x16xf32>
    %491 = arith.addf %486, %490 : vector<16x16xf32>
    %c5_309 = arith.constant 5 : index
    %c0_310 = arith.constant 0 : index
    %492 = vector.load %arg6[%c5_309, %c0_310] : memref<22x16xf32, #tpu.memory_space<vmem>>, vector<16x16xf32>
    %c86 = arith.constant 86 : index
    %493 = memref.load %arg2[%c86] : memref<98xf32, #tpu.memory_space<smem>>
    %494 = vector.broadcast %493 : f32 to vector<16x16xf32>
    %495 = arith.mulf %492, %494 : vector<16x16xf32>
    %496 = arith.addf %491, %495 : vector<16x16xf32>
    %c6_311 = arith.constant 6 : index
    %c0_312 = arith.constant 0 : index
    %497 = vector.load %arg6[%c6_311, %c0_312] : memref<22x16xf32, #tpu.memory_space<vmem>>, vector<16x16xf32>
    %c93 = arith.constant 93 : index
    %498 = memref.load %arg2[%c93] : memref<98xf32, #tpu.memory_space<smem>>
    %499 = vector.broadcast %498 : f32 to vector<16x16xf32>
    %500 = arith.mulf %497, %499 : vector<16x16xf32>
    %501 = arith.addf %496, %500 : vector<16x16xf32>
    %c1_313 = arith.constant 1 : index
    %c0_314 = arith.constant 0 : index
    %c3_315 = arith.constant 3 : index
    %502 = vector.load %arg5[%c1_313, %c0_314, %c3_315] : memref<2x22x22xf32, #tpu.memory_space<vmem>>, vector<1x22x16xf32>
    %503 = vector.shape_cast %502 : vector<1x22x16xf32> to vector<22x16xf32>
    %c0_316 = arith.constant 0 : index
    %c0_317 = arith.constant 0 : index
    %504 = vector.load %arg6[%c0_316, %c0_317] : memref<22x16xf32, #tpu.memory_space<vmem>>, vector<22x16xf32>
    tpu.vector_store %arg6[%c0_316, %c0_317], %503 {strides = array<i32>} : memref<22x16xf32, #tpu.memory_space<vmem>>, vector<22x16xf32>,
    %c0_318 = arith.constant 0 : index
    %c0_319 = arith.constant 0 : index
    %505 = vector.load %arg6[%c0_318, %c0_319] : memref<22x16xf32, #tpu.memory_space<vmem>>, vector<16x16xf32>
    %c52 = arith.constant 52 : index
    %506 = memref.load %arg2[%c52] : memref<98xf32, #tpu.memory_space<smem>>
    %507 = vector.broadcast %506 : f32 to vector<16x16xf32>
    %508 = arith.mulf %505, %507 : vector<16x16xf32>
    %509 = arith.addf %501, %508 : vector<16x16xf32>
    %c1_320 = arith.constant 1 : index
    %c0_321 = arith.constant 0 : index
    %510 = vector.load %arg6[%c1_320, %c0_321] : memref<22x16xf32, #tpu.memory_space<vmem>>, vector<16x16xf32>
    %c59 = arith.constant 59 : index
    %511 = memref.load %arg2[%c59] : memref<98xf32, #tpu.memory_space<smem>>
    %512 = vector.broadcast %511 : f32 to vector<16x16xf32>
    %513 = arith.mulf %510, %512 : vector<16x16xf32>
    %514 = arith.addf %509, %513 : vector<16x16xf32>
    %c2_322 = arith.constant 2 : index
    %c0_323 = arith.constant 0 : index
    %515 = vector.load %arg6[%c2_322, %c0_323] : memref<22x16xf32, #tpu.memory_space<vmem>>, vector<16x16xf32>
    %c66 = arith.constant 66 : index
    %516 = memref.load %arg2[%c66] : memref<98xf32, #tpu.memory_space<smem>>
    %517 = vector.broadcast %516 : f32 to vector<16x16xf32>
    %518 = arith.mulf %515, %517 : vector<16x16xf32>
    %519 = arith.addf %514, %518 : vector<16x16xf32>
    %c3_324 = arith.constant 3 : index
    %c0_325 = arith.constant 0 : index
    %520 = vector.load %arg6[%c3_324, %c0_325] : memref<22x16xf32, #tpu.memory_space<vmem>>, vector<16x16xf32>
    %c73 = arith.constant 73 : index
    %521 = memref.load %arg2[%c73] : memref<98xf32, #tpu.memory_space<smem>>
    %522 = vector.broadcast %521 : f32 to vector<16x16xf32>
    %523 = arith.mulf %520, %522 : vector<16x16xf32>
    %524 = arith.addf %519, %523 : vector<16x16xf32>
    %c4_326 = arith.constant 4 : index
    %c0_327 = arith.constant 0 : index
    %525 = vector.load %arg6[%c4_326, %c0_327] : memref<22x16xf32, #tpu.memory_space<vmem>>, vector<16x16xf32>
    %c80 = arith.constant 80 : index
    %526 = memref.load %arg2[%c80] : memref<98xf32, #tpu.memory_space<smem>>
    %527 = vector.broadcast %526 : f32 to vector<16x16xf32>
    %528 = arith.mulf %525, %527 : vector<16x16xf32>
    %529 = arith.addf %524, %528 : vector<16x16xf32>
    %c5_328 = arith.constant 5 : index
    %c0_329 = arith.constant 0 : index
    %530 = vector.load %arg6[%c5_328, %c0_329] : memref<22x16xf32, #tpu.memory_space<vmem>>, vector<16x16xf32>
    %c87 = arith.constant 87 : index
    %531 = memref.load %arg2[%c87] : memref<98xf32, #tpu.memory_space<smem>>
    %532 = vector.broadcast %531 : f32 to vector<16x16xf32>
    %533 = arith.mulf %530, %532 : vector<16x16xf32>
    %534 = arith.addf %529, %533 : vector<16x16xf32>
    %c6_330 = arith.constant 6 : index
    %c0_331 = arith.constant 0 : index
    %535 = vector.load %arg6[%c6_330, %c0_331] : memref<22x16xf32, #tpu.memory_space<vmem>>, vector<16x16xf32>
    %c94 = arith.constant 94 : index
    %536 = memref.load %arg2[%c94] : memref<98xf32, #tpu.memory_space<smem>>
    %537 = vector.broadcast %536 : f32 to vector<16x16xf32>
    %538 = arith.mulf %535, %537 : vector<16x16xf32>
    %539 = arith.addf %534, %538 : vector<16x16xf32>
    %c1_332 = arith.constant 1 : index
    %c0_333 = arith.constant 0 : index
    %c4_334 = arith.constant 4 : index
    %540 = vector.load %arg5[%c1_332, %c0_333, %c4_334] : memref<2x22x22xf32, #tpu.memory_space<vmem>>, vector<1x22x16xf32>
    %541 = vector.shape_cast %540 : vector<1x22x16xf32> to vector<22x16xf32>
    %c0_335 = arith.constant 0 : index
    %c0_336 = arith.constant 0 : index
    %542 = vector.load %arg6[%c0_335, %c0_336] : memref<22x16xf32, #tpu.memory_space<vmem>>, vector<22x16xf32>
    tpu.vector_store %arg6[%c0_335, %c0_336], %541 {strides = array<i32>} : memref<22x16xf32, #tpu.memory_space<vmem>>, vector<22x16xf32>,
    %c0_337 = arith.constant 0 : index
    %c0_338 = arith.constant 0 : index
    %543 = vector.load %arg6[%c0_337, %c0_338] : memref<22x16xf32, #tpu.memory_space<vmem>>, vector<16x16xf32>
    %c53 = arith.constant 53 : index
    %544 = memref.load %arg2[%c53] : memref<98xf32, #tpu.memory_space<smem>>
    %545 = vector.broadcast %544 : f32 to vector<16x16xf32>
    %546 = arith.mulf %543, %545 : vector<16x16xf32>
    %547 = arith.addf %539, %546 : vector<16x16xf32>
    %c1_339 = arith.constant 1 : index
    %c0_340 = arith.constant 0 : index
    %548 = vector.load %arg6[%c1_339, %c0_340] : memref<22x16xf32, #tpu.memory_space<vmem>>, vector<16x16xf32>
    %c60 = arith.constant 60 : index
    %549 = memref.load %arg2[%c60] : memref<98xf32, #tpu.memory_space<smem>>
    %550 = vector.broadcast %549 : f32 to vector<16x16xf32>
    %551 = arith.mulf %548, %550 : vector<16x16xf32>
    %552 = arith.addf %547, %551 : vector<16x16xf32>
    %c2_341 = arith.constant 2 : index
    %c0_342 = arith.constant 0 : index
    %553 = vector.load %arg6[%c2_341, %c0_342] : memref<22x16xf32, #tpu.memory_space<vmem>>, vector<16x16xf32>
    %c67 = arith.constant 67 : index
    %554 = memref.load %arg2[%c67] : memref<98xf32, #tpu.memory_space<smem>>
    %555 = vector.broadcast %554 : f32 to vector<16x16xf32>
    %556 = arith.mulf %553, %555 : vector<16x16xf32>
    %557 = arith.addf %552, %556 : vector<16x16xf32>
    %c3_343 = arith.constant 3 : index
    %c0_344 = arith.constant 0 : index
    %558 = vector.load %arg6[%c3_343, %c0_344] : memref<22x16xf32, #tpu.memory_space<vmem>>, vector<16x16xf32>
    %c74 = arith.constant 74 : index
    %559 = memref.load %arg2[%c74] : memref<98xf32, #tpu.memory_space<smem>>
    %560 = vector.broadcast %559 : f32 to vector<16x16xf32>
    %561 = arith.mulf %558, %560 : vector<16x16xf32>
    %562 = arith.addf %557, %561 : vector<16x16xf32>
    %c4_345 = arith.constant 4 : index
    %c0_346 = arith.constant 0 : index
    %563 = vector.load %arg6[%c4_345, %c0_346] : memref<22x16xf32, #tpu.memory_space<vmem>>, vector<16x16xf32>
    %c81 = arith.constant 81 : index
    %564 = memref.load %arg2[%c81] : memref<98xf32, #tpu.memory_space<smem>>
    %565 = vector.broadcast %564 : f32 to vector<16x16xf32>
    %566 = arith.mulf %563, %565 : vector<16x16xf32>
    %567 = arith.addf %562, %566 : vector<16x16xf32>
    %c5_347 = arith.constant 5 : index
    %c0_348 = arith.constant 0 : index
    %568 = vector.load %arg6[%c5_347, %c0_348] : memref<22x16xf32, #tpu.memory_space<vmem>>, vector<16x16xf32>
    %c88 = arith.constant 88 : index
    %569 = memref.load %arg2[%c88] : memref<98xf32, #tpu.memory_space<smem>>
    %570 = vector.broadcast %569 : f32 to vector<16x16xf32>
    %571 = arith.mulf %568, %570 : vector<16x16xf32>
    %572 = arith.addf %567, %571 : vector<16x16xf32>
    %c6_349 = arith.constant 6 : index
    %c0_350 = arith.constant 0 : index
    %573 = vector.load %arg6[%c6_349, %c0_350] : memref<22x16xf32, #tpu.memory_space<vmem>>, vector<16x16xf32>
    %c95 = arith.constant 95 : index
    %574 = memref.load %arg2[%c95] : memref<98xf32, #tpu.memory_space<smem>>
    %575 = vector.broadcast %574 : f32 to vector<16x16xf32>
    %576 = arith.mulf %573, %575 : vector<16x16xf32>
    %577 = arith.addf %572, %576 : vector<16x16xf32>
    %c1_351 = arith.constant 1 : index
    %c0_352 = arith.constant 0 : index
    %c5_353 = arith.constant 5 : index
    %578 = vector.load %arg5[%c1_351, %c0_352, %c5_353] : memref<2x22x22xf32, #tpu.memory_space<vmem>>, vector<1x22x16xf32>
    %579 = vector.shape_cast %578 : vector<1x22x16xf32> to vector<22x16xf32>
    %c0_354 = arith.constant 0 : index
    %c0_355 = arith.constant 0 : index
    %580 = vector.load %arg6[%c0_354, %c0_355] : memref<22x16xf32, #tpu.memory_space<vmem>>, vector<22x16xf32>
    tpu.vector_store %arg6[%c0_354, %c0_355], %579 {strides = array<i32>} : memref<22x16xf32, #tpu.memory_space<vmem>>, vector<22x16xf32>,
    %c0_356 = arith.constant 0 : index
    %c0_357 = arith.constant 0 : index
    %581 = vector.load %arg6[%c0_356, %c0_357] : memref<22x16xf32, #tpu.memory_space<vmem>>, vector<16x16xf32>
    %c54 = arith.constant 54 : index
    %582 = memref.load %arg2[%c54] : memref<98xf32, #tpu.memory_space<smem>>
    %583 = vector.broadcast %582 : f32 to vector<16x16xf32>
    %584 = arith.mulf %581, %583 : vector<16x16xf32>
    %585 = arith.addf %577, %584 : vector<16x16xf32>
    %c1_358 = arith.constant 1 : index
    %c0_359 = arith.constant 0 : index
    %586 = vector.load %arg6[%c1_358, %c0_359] : memref<22x16xf32, #tpu.memory_space<vmem>>, vector<16x16xf32>
    %c61 = arith.constant 61 : index
    %587 = memref.load %arg2[%c61] : memref<98xf32, #tpu.memory_space<smem>>
    %588 = vector.broadcast %587 : f32 to vector<16x16xf32>
    %589 = arith.mulf %586, %588 : vector<16x16xf32>
    %590 = arith.addf %585, %589 : vector<16x16xf32>
    %c2_360 = arith.constant 2 : index
    %c0_361 = arith.constant 0 : index
    %591 = vector.load %arg6[%c2_360, %c0_361] : memref<22x16xf32, #tpu.memory_space<vmem>>, vector<16x16xf32>
    %c68 = arith.constant 68 : index
    %592 = memref.load %arg2[%c68] : memref<98xf32, #tpu.memory_space<smem>>
    %593 = vector.broadcast %592 : f32 to vector<16x16xf32>
    %594 = arith.mulf %591, %593 : vector<16x16xf32>
    %595 = arith.addf %590, %594 : vector<16x16xf32>
    %c3_362 = arith.constant 3 : index
    %c0_363 = arith.constant 0 : index
    %596 = vector.load %arg6[%c3_362, %c0_363] : memref<22x16xf32, #tpu.memory_space<vmem>>, vector<16x16xf32>
    %c75 = arith.constant 75 : index
    %597 = memref.load %arg2[%c75] : memref<98xf32, #tpu.memory_space<smem>>
    %598 = vector.broadcast %597 : f32 to vector<16x16xf32>
    %599 = arith.mulf %596, %598 : vector<16x16xf32>
    %600 = arith.addf %595, %599 : vector<16x16xf32>
    %c4_364 = arith.constant 4 : index
    %c0_365 = arith.constant 0 : index
    %601 = vector.load %arg6[%c4_364, %c0_365] : memref<22x16xf32, #tpu.memory_space<vmem>>, vector<16x16xf32>
    %c82 = arith.constant 82 : index
    %602 = memref.load %arg2[%c82] : memref<98xf32, #tpu.memory_space<smem>>
    %603 = vector.broadcast %602 : f32 to vector<16x16xf32>
    %604 = arith.mulf %601, %603 : vector<16x16xf32>
    %605 = arith.addf %600, %604 : vector<16x16xf32>
    %c5_366 = arith.constant 5 : index
    %c0_367 = arith.constant 0 : index
    %606 = vector.load %arg6[%c5_366, %c0_367] : memref<22x16xf32, #tpu.memory_space<vmem>>, vector<16x16xf32>
    %c89 = arith.constant 89 : index
    %607 = memref.load %arg2[%c89] : memref<98xf32, #tpu.memory_space<smem>>
    %608 = vector.broadcast %607 : f32 to vector<16x16xf32>
    %609 = arith.mulf %606, %608 : vector<16x16xf32>
    %610 = arith.addf %605, %609 : vector<16x16xf32>
    %c6_368 = arith.constant 6 : index
    %c0_369 = arith.constant 0 : index
    %611 = vector.load %arg6[%c6_368, %c0_369] : memref<22x16xf32, #tpu.memory_space<vmem>>, vector<16x16xf32>
    %c96 = arith.constant 96 : index
    %612 = memref.load %arg2[%c96] : memref<98xf32, #tpu.memory_space<smem>>
    %613 = vector.broadcast %612 : f32 to vector<16x16xf32>
    %614 = arith.mulf %611, %613 : vector<16x16xf32>
    %615 = arith.addf %610, %614 : vector<16x16xf32>
    %c1_370 = arith.constant 1 : index
    %c0_371 = arith.constant 0 : index
    %c6_372 = arith.constant 6 : index
    %616 = vector.load %arg5[%c1_370, %c0_371, %c6_372] : memref<2x22x22xf32, #tpu.memory_space<vmem>>, vector<1x22x16xf32>
    %617 = vector.shape_cast %616 : vector<1x22x16xf32> to vector<22x16xf32>
    %c0_373 = arith.constant 0 : index
    %c0_374 = arith.constant 0 : index
    %618 = vector.load %arg6[%c0_373, %c0_374] : memref<22x16xf32, #tpu.memory_space<vmem>>, vector<22x16xf32>
    tpu.vector_store %arg6[%c0_373, %c0_374], %617 {strides = array<i32>} : memref<22x16xf32, #tpu.memory_space<vmem>>, vector<22x16xf32>,
    %c0_375 = arith.constant 0 : index
    %c0_376 = arith.constant 0 : index
    %619 = vector.load %arg6[%c0_375, %c0_376] : memref<22x16xf32, #tpu.memory_space<vmem>>, vector<16x16xf32>
    %c55 = arith.constant 55 : index
    %620 = memref.load %arg2[%c55] : memref<98xf32, #tpu.memory_space<smem>>
    %621 = vector.broadcast %620 : f32 to vector<16x16xf32>
    %622 = arith.mulf %619, %621 : vector<16x16xf32>
    %623 = arith.addf %615, %622 : vector<16x16xf32>
    %c1_377 = arith.constant 1 : index
    %c0_378 = arith.constant 0 : index
    %624 = vector.load %arg6[%c1_377, %c0_378] : memref<22x16xf32, #tpu.memory_space<vmem>>, vector<16x16xf32>
    %c62 = arith.constant 62 : index
    %625 = memref.load %arg2[%c62] : memref<98xf32, #tpu.memory_space<smem>>
    %626 = vector.broadcast %625 : f32 to vector<16x16xf32>
    %627 = arith.mulf %624, %626 : vector<16x16xf32>
    %628 = arith.addf %623, %627 : vector<16x16xf32>
    %c2_379 = arith.constant 2 : index
    %c0_380 = arith.constant 0 : index
    %629 = vector.load %arg6[%c2_379, %c0_380] : memref<22x16xf32, #tpu.memory_space<vmem>>, vector<16x16xf32>
    %c69 = arith.constant 69 : index
    %630 = memref.load %arg2[%c69] : memref<98xf32, #tpu.memory_space<smem>>
    %631 = vector.broadcast %630 : f32 to vector<16x16xf32>
    %632 = arith.mulf %629, %631 : vector<16x16xf32>
    %633 = arith.addf %628, %632 : vector<16x16xf32>
    %c3_381 = arith.constant 3 : index
    %c0_382 = arith.constant 0 : index
    %634 = vector.load %arg6[%c3_381, %c0_382] : memref<22x16xf32, #tpu.memory_space<vmem>>, vector<16x16xf32>
    %c76 = arith.constant 76 : index
    %635 = memref.load %arg2[%c76] : memref<98xf32, #tpu.memory_space<smem>>
    %636 = vector.broadcast %635 : f32 to vector<16x16xf32>
    %637 = arith.mulf %634, %636 : vector<16x16xf32>
    %638 = arith.addf %633, %637 : vector<16x16xf32>
    %c4_383 = arith.constant 4 : index
    %c0_384 = arith.constant 0 : index
    %639 = vector.load %arg6[%c4_383, %c0_384] : memref<22x16xf32, #tpu.memory_space<vmem>>, vector<16x16xf32>
    %c83 = arith.constant 83 : index
    %640 = memref.load %arg2[%c83] : memref<98xf32, #tpu.memory_space<smem>>
    %641 = vector.broadcast %640 : f32 to vector<16x16xf32>
    %642 = arith.mulf %639, %641 : vector<16x16xf32>
    %643 = arith.addf %638, %642 : vector<16x16xf32>
    %c5_385 = arith.constant 5 : index
    %c0_386 = arith.constant 0 : index
    %644 = vector.load %arg6[%c5_385, %c0_386] : memref<22x16xf32, #tpu.memory_space<vmem>>, vector<16x16xf32>
    %c90 = arith.constant 90 : index
    %645 = memref.load %arg2[%c90] : memref<98xf32, #tpu.memory_space<smem>>
    %646 = vector.broadcast %645 : f32 to vector<16x16xf32>
    %647 = arith.mulf %644, %646 : vector<16x16xf32>
    %648 = arith.addf %643, %647 : vector<16x16xf32>
    %c6_387 = arith.constant 6 : index
    %c0_388 = arith.constant 0 : index
    %649 = vector.load %arg6[%c6_387, %c0_388] : memref<22x16xf32, #tpu.memory_space<vmem>>, vector<16x16xf32>
    %c97 = arith.constant 97 : index
    %650 = memref.load %arg2[%c97] : memref<98xf32, #tpu.memory_space<smem>>
    %651 = vector.broadcast %650 : f32 to vector<16x16xf32>
    %652 = arith.mulf %649, %651 : vector<16x16xf32>
    %653 = arith.addf %648, %652 : vector<16x16xf32>
    %c0_389 = arith.constant 0 : index
    %c0_390 = arith.constant 0 : index
    %c0_391 = arith.constant 0 : index
    %c0_392 = arith.constant 0 : index
    %654 = vector.load %arg4[%c0_389, %c0_390, %c0_391, %c0_392] : memref<1x1x16x16xf32, #tpu.memory_space<vmem>>, vector<1x1x16x16xf32>
    %655 = vector.shape_cast %654 : vector<1x1x16x16xf32> to vector<16x16xf32>
    %656 = vector.shape_cast %653 : vector<16x16xf32> to vector<1x1x16x16xf32>
    tpu.vector_store %arg4[%c0_389, %c0_390, %c0_391, %c0_392], %656 {strides = array<i32>} : memref<1x1x16x16xf32, #tpu.memory_space<vmem>>, vector<1x1x16x16xf32>,
    return
  }
  func.func @transform_0(%arg0: i32) -> (i32, i32, i32, i32) {
    %c0_i32 = arith.constant 0 : i32
    %c0_i32_0 = arith.constant 0 : i32
    %c0_i32_1 = arith.constant 0 : i32
    %c0_i32_2 = arith.constant 0 : i32
    return %arg0, %c0_i32, %c0_i32_0, %c0_i32_1 : i32, i32, i32, i32
  }
  func.func @transform_1(%arg0: i32) -> i32 {
    %c0_i32 = arith.constant 0 : i32
    %c0_i32_0 = arith.constant 0 : i32
    return %c0_i32 : i32
  }
  func.func @transform_2(%arg0: i32) -> i32 {
    %c0_i32 = arith.constant 0 : i32
    %c0_i32_0 = arith.constant 0 : i32
    return %c0_i32 : i32
  }
  func.func @transform_3(%arg0: i32) -> (i32, i32, i32, i32) {
    %c0_i32 = arith.constant 0 : i32
    %c0_i32_0 = arith.constant 0 : i32
    %c0_i32_1 = arith.constant 0 : i32
    %c0_i32_2 = arith.constant 0 : i32
    return %arg0, %c0_i32, %c0_i32_0, %c0_i32_1 : i32, i32, i32, i32
  }
}

</mosaic_0001>

<bundles_post_ra>
// kernel: spatial_attention.2
= control target key start
LH: loop header
LB: loop body
LE: loop exit
PB: predicated region body
PF: predicated region fallthrough
CT: control target
= control target key end

     0   :  { %s445_s6 = smov 0   ;;  %s447_s7 = smov 0   ;;  %s500_s0 = inlined_call_operand.vmem [shape: f32[2,4,256], index: 0, kind: input, shape index: {}]   ;;  %s501_s1 = inlined_call_operand.vmem [shape: f32[2,2,256], index: 1, kind: output, shape index: {}]  }
   0x1   :  { %s449_s8 = smov 0  }
   0x2 LB: > { %s30_s9 = sadd.s32 1, %s429_s7  ;;  %p377_p0 = scmp.ge.s32.totalorder %s433_s8, 1  ;;  %s433_s8 = sphi %s449_s8, %s11_s8   ;;  %s429_s7 = sphi %s447_s7, %s505_s7   ;;  %s425_s6 = sphi %s445_s6, %s504_s6  }
   0x3   : > { %p32_p1 = scmp.ge.s32.totalorder %s30_s9, 2  ;;  %p121_p2 = scmp.lt.s32.totalorder %s433_s8, 3 }
   0x5   : > { %s507_s9 = smov (%p32_p1, %s30_s9), 0  ;;  %p122_p3 = pnand %p377_p0, %p121_p2 }
   0x6   : > { %p154_p4 = scmp.lt.s32.totalorder (!%p122_p3), %s425_s6, 1 }
   0x7   : > { %125 = sbr.rel (%p122_p3) target bundleno = 57 (0x39), region = 24 }
   0xc   : > { %s509_s6 = smov (!%p154_p4, %s425_s6), 1  ;;  %vm184_vm0 = vcmask 1043456   ;;  %v228_v15 = vlaneseq  ;;  %vm225_vm1 = vcmask 1040384  }
   0xd   : > { %s385_s10 = sshll.u32 %s509_s6, 3  ;;  %s386_s14 = sshll.u32 %s509_s6, 2 }
   0xe   : > { %s165_s13 = scalar_lea.vmem %s500_s0, %s385_s10  ;;  %vm473_vm2 = vcmp.lt.s32.totalorder %v228_v15, 256  ;;  %s175_s17 = scalar_lea.vmem %s501_s1, %s386_s14 }
   0xf   : > { %v177_v0 = vld [vmem:[%s165_s13] sm:$0xff] }
  0x10   : > { %179 = vst [vmem:[#allocation1] ss:$2 sm:$0xff] %v177_v0 }
  0x17   : > { %v180_v1 = vld.sshfl [vmem:[#allocation1] sm:$0xff pattern:$0x75316420]  ;;  %v181_v2 = vld.sshfl [vmem:[#allocation1 + $0x8] sm:$0xff pattern:$0x75316420] }
  0x18   : > { %v185_v3 = vsel %vm184_vm0, %v180_v1, 0.0  ;;  %v192_v4 = vsel %vm184_vm0, %v181_v2, 0.0  ;;  %199 = vst [vmem:[#allocation1] ss:$2 sm:$0xff] %v177_v0 }
  0x19   : > { %v186_v5 = vrot.slane %v185_v3, 4  ;;  %v193_v6 = vrot.slane %v192_v4, 4 }
  0x1b   : > { %v187_v7 = vadd.f32 %v186_v5, %v185_v3  ;;  %v194_v8 = vadd.f32 %v193_v6, %v192_v4 }
  0x1d   : > { %v188_v9 = vrot.slane %v187_v7, 2  ;;  %v195_v10 = vrot.slane %v194_v8, 2 }
  0x1f   : > { %v189_v11 = vadd.f32 %v188_v9, %v187_v7  ;;  %v196_v12 = vadd.f32 %v195_v10, %v194_v8  ;;  %v200_v13 = vld.sshfl [vmem:[#allocation1] sm:$0xff pattern:$0x75316420]  ;;  %v201_v14 = vld.sshfl [vmem:[#allocation1 + $0x8] sm:$0xff pattern:$0x75316420] }
  0x20   : > { %v204_v16 = vsel %vm184_vm0, %v200_v13, -inf  ;;  %v211_v17 = vsel %vm184_vm0, %v201_v14, -inf }
  0x21   : > { %v190_v18 = vrot.slane %v189_v11, 1  ;;  %v197_v19 = vrot.slane %v196_v12, 1  ;;  %v205_v20 = vrot.slane %v204_v16, 4  ;;  %v212_v21 = vrot.slane %v211_v17, 4 }
  0x23   : > { %v198_v22 = vadd.f32 %v197_v19, %v196_v12  ;;  %v206_v23 = vmax.f32 %v204_v16, %v205_v20  ;;  %v213_v24 = vmax.f32 %v211_v17, %v212_v21  ;;  %v191_v26 = vadd.f32 %v190_v18, %v189_v11 }
  0x25   : > { %v224_v27 = vrot.slane %v198_v22, 7  ;;  %v207_v28 = vrot.slane %v206_v23, 2  ;;  %v214_v29 = vrot.slane %v213_v24, 2 }
  0x27   : > { %v226_v30 = vsel %vm225_vm1, %v191_v26, %v224_v27  ;;  %v208_v31 = vmax.f32 %v206_v23, %v207_v28  ;;  %v215_v32 = vmax.f32 %v213_v24, %v214_v29 }
  0x28   : > { %232 = vst.msk [vmem:[#allocation2] sm:$0x3] %vm473_vm2, %v226_v30 }
  0x29   : > { %v209_v33 = vrot.slane %v208_v31, 1  ;;  %v216_v34 = vrot.slane %v215_v32, 1 }
  0x2b   : > { %v217_v35 = vmax.f32 %v215_v32, %v216_v34  ;;  %v210_v36 = vmax.f32 %v208_v31, %v209_v33 }
  0x2d   : > { %v235_v37 = vrot.slane %v217_v35, 7 }
  0x2f   : > { %v236_v38 = vsel %vm225_vm1, %v210_v36, %v235_v37  ;;  %v267_v39 = vld [vmem:[#allocation2] sm:$0x3] }
  0x30   : > { %238 = vst.msk [vmem:[#allocation3] sm:$0x3] %vm473_vm2, %v236_v38  ;;  %v268_v40 = vmul.f32 0.25, %v267_v39 }
  0x32   : > { %273 = vst.msk [vmem:[%s175_s17] ss:$2 sm:$0x3] %vm473_vm2, %v268_v40 }
  0x37   : > { %v274_v41 = vld [vmem:[#allocation3] sm:$0x3] }
  0x38   : > { %382 = vst.msk [vmem:[%s175_s17 + $0x1] ss:$2 sm:$0x3] %vm473_vm2, %v274_v41 }
  0x39 PF: > { %s11_s8 = sadd.s32 1, %s433_s8   ;;  %s504_s6 = smov %s429_s7 }
  0x3a   : > { %p8_p5 = scmp.ge.s32.totalorder %s11_s8, 4   ;;  %s505_s7 = smov %s507_s9 }
  0x3c   :  { %10 = sbr.rel (!%p8_p5) target bundleno = 2 (0x2), region = 67 }

// kernel: spatial_attention.3
= control target key start
LH: loop header
LB: loop body
LE: loop exit
PB: predicated region body
PF: predicated region fallthrough
CT: control target
= control target key end

     0   :  { %s2693_s0 = inlined_call_operand.vmem [shape: f32[2,2,16,16], index: 0, kind: input, shape index: {}]   ;;  %s2694_s1 = inlined_call_operand.vmem [shape: f32[98], index: 1, kind: input, shape index: {}]   ;;  %s2695_s2 = inlined_call_operand.<no memory space> [shape: f32[1], index: 2, kind: input, shape index: {}]   ;;  %s2696_s3 = inlined_call_operand.hbm [shape: f32[2,1,16,16], index: 3, kind: output, shape index: {}]  }
   0x1   :  { %8 = sst [smem:[#allocation4]] %s2695_s2 }
   0x2   :  { %9 = vsyncpa [#allocation7], 0 }
   0x3   :  { %10 = vsyncpa [#allocation6], 0 }
   0x4   :  { %12 = vsyncpa [#allocation6 + $0x1], 0  ;;  %s1862_s14 = smov 0   ;;  %s1864_s15 = smov 0  }
   0x5   :  { %s1866_s16 = smov 0   ;;  %s1868_s17 = smov 0  }
   0x6 LB: > { %s1883_s2 = sadd.s32 4294967295, %s1824_s17   ;;  %s1566_s18 = sadd.s32 4294967294, %s1824_s17   ;;  %s1824_s17 = sphi %s1868_s17, %s2713_s17   ;;  %s1820_s16 = sphi %s1866_s16, %s2712_s16   ;;  %s1816_s15 = sphi %s1864_s15, %s2711_s15   ;;  %s1812_s14 = sphi %s1862_s14, %s2710_s14  }
   0x7   : > { %s1887_s19 = sadd.s32 1, %s1824_s17   ;;  %s93_s20 = sadd.s32 1, %s1820_s16 }
   0x8   : > { %s90_s21 = ssub.s32 %s1824_s17, %s1887_s19  ;;  %p103_p0 = scmp.ne.s32.totalorder %s1820_s16, %s1816_s15 }
   0x9   : > { %p91_p1 = scmp.eq.s32.totalorder %s90_s21, 0  ;;  %p104_p2 = scmp.eq.s32.totalorder %s1883_s2, 1 }
   0xa   : > { %p109_p3 = scmp.ne.s32.totalorder %s1816_s15, %s1812_s14  ;;  %p110_p4 = scmp.eq.s32.totalorder %s1566_s18, 1 }
   0xb   : > { %s1898_s22 = scalar_select %p91_p1, %s1820_s16, %s93_s20  }
   0xc   : > { %p1900_p5 = por %p104_p2, %p103_p0  ;;  %p1904_p6 = por %p110_p4, %p109_p3 }
   0xd   : > { %p1567_p7 = scmp.ge.s32.totalorder %s1824_s17, 1  ;;  %p117_p8 = scmp.lt.s32.totalorder %s1824_s17, 3 }
   0xe   : > { %p1695_p9 = scmp.eq.s32.totalorder %s1883_s2, 0  ;;  %s129_s27 = sshll.u32 %s2694_s1, 4  ;;  %s130_s27 = int_to_ptr.vmem [resolvable:$true] %s129_s27 }
   0xf   : > { %p118_p10 = pnand %p1567_p7, %p117_p8  ;;  %s1826_s28 = smov [#allocation5]  }
  0x11   : > { %p1687_p11 = pneg %p118_p10  ;;  %153 = sbr.rel (%p118_p10) target bundleno = 1379 (0x563), region = 32 }
  0x13   : > { %p1688_p12 = pnand %p1695_p9, %p1687_p11 }
  0x15   : > { %1690 = dma.vmem_to_smem (!%p1688_p12), %s130_s27, 16, %s1826_s28, [#allocation7]  }
  0x16   : > { %1803 = dma.done.wait (%p1695_p9), [#allocation7], 16  }
  0x17   : > { %1805 = vsyncadd (%p1695_p9), [#allocation7], 4294967280 }
  0x18   : > { %160 = sfence }
  0x19   : > { %p179_p13 = scmp.lt.s32.totalorder %s1883_s2, 1  ;;  %s1827_s7 = smov 3   ;;  %vm194_vm0 = vcmask 154648   ;;  %vm197_vm1 = vcmask 150555   ;;  %vm201_vm2 = vcmask 149530   ;;  %vm205_vm3 = vcmask 148505  }
  0x1a   : > { %vm199_vm4 = vcmask 153630   ;;  %vm203_vm5 = vcmask 152605   ;;  %vm207_vm6 = vcmask 151580   ;;  %s1828_s8 = smov 122   ;;  %vm227_vm7 = vcmask 5120   ;;  %s1829_s9 = smov 2  }
  0x1b   : > { %s180_s29 = scalar_select %p179_p13, %s1883_s2, 1  ;;  %vm224_vm8 = vcmask 7168   ;;  %vm244_vm9 = vcmask 162968   ;;  %vm247_vm10 = vcmask 160920   ;;  %vm264_vm11 = vcmask 15368  }
  0x1c   : > { %s2697_s10 = smov 124   ;;  %s1831_s11 = smov 4   ;;  %vm267_vm12 = vcmask 13320   ;;  %vm284_vm13 = vcmask 171168   ;;  %vm287_vm14 = vcmask 169120   ;;  %vm304_vm15 = vcmask 23568  }
  0x1d   : > { %s1679_s30 = sshll.u32 %s180_s29, 5  ;;  %s1832_s12 = smov 126  }
  0x1e   : > { %s1919_s6 = scalar_lea.vmem %s2693_s0, %s1679_s30  ;;  %s2699_s13 = smov 6  }
  0x1f   : > { %v184_v0 = vld [vmem:[%s1919_s6] sm:$0xff]  ;;  %v185_v1 = vld [vmem:[%s1919_s6 + $0x8] sm:$0xff]  ;;  %v1575_v12 = vld [vmem:[%s1919_s6 + $0x10] sm:$0xff]  ;;  %s2702_s18 = smov 127   ;;  %s2700_s20 = smov 125  }
  0x20   : > { %188 = vrot.lane.b32.xlu0 %v184_v0, %s1827_s7  ;;  %v1576_v14 = vld [vmem:[%s1919_s6 + $0x18] sm:$0xff]  ;;  %s1836_s21 = smov 123   ;;  %s2053_s25 = sld [smem:[#allocation5]] }
  0x21   : > { %s2055_s26 = sld [smem:[#allocation4]] }
  0x22   : > { %s2057_s27 = sld [smem:[#allocation5 + $0x7]] }
  0x23   : > { %s2060_s28 = sld [smem:[#allocation5 + $0xe]] }
  0x24   : > { %s2064_s29 = sld [smem:[#allocation5 + $0x15]] }
  0x25   : > { %s2067_s30 = sld [smem:[#allocation5 + $0x1c]] }
  0x26   : > { %s2072_s4 = sld [smem:[#allocation5 + $0x23]] }
  0x27   : > { %s2075_s5 = sld [smem:[#allocation5 + $0x2a]] }
  0x28   : > { %190 = vrot.lane.b32.xlu0 %v185_v1, %s1827_s7  ;;  %s2079_s6 = sld [smem:[#allocation5 + $0x1]] }
  0x92   : > { %v189_v2 = vpop.permute.xlu0 %188 }
  0x93   : > { %195 = vst.msk [vmem:[#allocation2 + $0x3] sm:$0xff] %vm194_vm0, %v189_v2 }
  0x94   : > { %198 = vst.msk [vmem:[#allocation2 - $0x3] sm:$0x8] %vm197_vm1, %v189_v2 }
  0x95   : > { %202 = vst.msk [vmem:[#allocation2 - $0x1] sm:$0x4] %vm201_vm2, %v189_v2 }
  0x96   : > { %206 = vst.msk [vmem:[#allocation2 + $0x1] sm:$0x2] %vm205_vm3, %v189_v2 }
  0x9a   : > { %v191_v3 = vpop.permute.xlu0 %190 }
  0x9b   : > { %196 = vst.msk [vmem:[#allocation2 + $0xb] sm:$0xff] %vm194_vm0, %v191_v3 }
  0x9c   : > { %200 = vst.msk [vmem:[#allocation2 + $0xd] sm:$0x40] %vm199_vm4, %v191_v3 }
  0x9d   : > { %204 = vst.msk [vmem:[#allocation2 + $0xf] sm:$0x20] %vm203_vm5, %v191_v3  ;;  %v209_v4 = vld [vmem:[#allocation2] sm:$0xff] }
  0x9e   : > { %208 = vst.msk [vmem:[#allocation2 + $0x11] sm:$0x10] %vm207_vm6, %v191_v3  ;;  %215 = vrot.lane.b32.xlu1 %v209_v4, %s1828_s8 }
  0xa2   : > { %v210_v5 = vld [vmem:[#allocation2 + $0x8] sm:$0xff] }
  0xa5   : > { %v211_v6 = vld [vmem:[#allocation2 + $0x10] sm:$0x3f] }
  0xa6   : > { %219 = vrot.lane.b32.xlu2 %v211_v6, %s1828_s8  ;;  %217 = vrot.lane.b32.xlu1 %v210_v5, %s1828_s8 }
 0x100   : > { %v220_v7 = vpop.permute.xlu2 %219 }
 0x101   : > { %228 = vst.msk [vmem:[#allocation2 + $0x10] sm:$0x3f] %vm227_vm7, %v220_v7 }
 0x108   : > { %v231_v8 = vld [vmem:[#allocation2 + $0x10] sm:$0x3f] }
 0x109   : > { %239 = vrot.lane.b32.xlu1 %v231_v8, %s1829_s9 }
 0x110   : > { %v216_v9 = vpop.permute.xlu1 %215 }
 0x111   : > { %225 = vst.msk [vmem:[#allocation2] sm:$0xff] %vm224_vm8, %v216_v9 }
 0x118   : > { %v218_v10 = vpop.permute.xlu1 %217  ;;  %v229_v11 = vld [vmem:[#allocation2] sm:$0xff] }
 0x119   : > { %226 = vst.msk [vmem:[#allocation2 + $0x8] sm:$0xff] %vm224_vm8, %v218_v10  ;;  %235 = vrot.lane.b32.xlu2 %v229_v11, %s1829_s9 }
 0x120   : > { %v230_v13 = vld [vmem:[#allocation2 + $0x8] sm:$0xff] }
 0x121   : > { %334 = vrot.lane.b32.xlu2 %v1575_v12, %s1827_s7  ;;  %237 = vrot.lane.b32.xlu0 %v230_v13, %s1829_s9 }
 0x129   : > { %336 = vrot.lane.b32.xlu0 %v1576_v14, %s1827_s7  ;;  %s2082_s7 = sld [smem:[#allocation5 + $0x8]] }
 0x173   : > { %v236_v15 = vpop.permute.xlu2 %235 }
 0x174   : > { %245 = vst.msk [vmem:[#allocation2] sm:$0xff] %vm244_vm9, %v236_v15 }
 0x17b   : > { %v335_v16 = vpop.permute.xlu2 %334  ;;  %v249_v17 = vld [vmem:[#allocation2] sm:$0xff]  ;;  %v240_v18 = vpop.permute.xlu1 %239 }
 0x17c   : > { %341 = vst.msk [vmem:[#allocation2 + $0x1b] sm:$0xff] %vm194_vm0, %v335_v16  ;;  %255 = vrot.lane.b32.xlu1 %v249_v17, %s2697_s10 }
 0x17d   : > { %343 = vst.msk [vmem:[#allocation2 + $0x15] sm:$0x8] %vm197_vm1, %v335_v16  ;;  %vm324_vm1 = vcmask 179368  }
 0x17e   : > { %345 = vst.msk [vmem:[#allocation2 + $0x17] sm:$0x4] %vm201_vm2, %v335_v16  ;;  %vm463_vm2 = vcmask 130048  }
 0x17f   : > { %347 = vst.msk [vmem:[#allocation2 + $0x19] sm:$0x2] %vm205_vm3, %v335_v16  ;;  %vm327_vm3 = vcmask 177320  }
 0x180   : > { %248 = vst.msk [vmem:[#allocation2 + $0x10] sm:$0x3f] %vm247_vm10, %v240_v18 }
 0x186   : > { %v349_v19 = vld [vmem:[#allocation2 + $0x18] sm:$0xff] }
 0x187   : > { %355 = vrot.lane.b32.xlu1 %v349_v19, %s1828_s8  ;;  %v251_v20 = vld [vmem:[#allocation2 + $0x10] sm:$0x3f] }
 0x188   : > { %259 = vrot.lane.b32.xlu0 %v251_v20, %s2697_s10 }
 0x193   : > { %v238_v21 = vpop.permute.xlu0 %237 }
 0x194   : > { %246 = vst.msk [vmem:[#allocation2 + $0x8] sm:$0xff] %vm244_vm9, %v238_v21 }
 0x19b   : > { %v337_v22 = vpop.permute.xlu0 %336  ;;  %v250_v23 = vld [vmem:[#allocation2 + $0x8] sm:$0xff] }
 0x19c   : > { %342 = vst.msk [vmem:[#allocation2 + $0x23] sm:$0xff] %vm194_vm0, %v337_v22  ;;  %257 = vrot.lane.b32.xlu2 %v250_v23, %s2697_s10  ;;  %vm307_vm0 = vcmask 21520  }
 0x19d   : > { %344 = vst.msk [vmem:[#allocation2 + $0x25] sm:$0x40] %vm199_vm4, %v337_v22  ;;  %vm466_vm4 = vcmask 128000  }
 0x19e   : > { %346 = vst.msk [vmem:[#allocation2 + $0x27] sm:$0x20] %vm203_vm5, %v337_v22 }
 0x19f   : > { %348 = vst.msk [vmem:[#allocation2 + $0x29] sm:$0x10] %vm207_vm6, %v337_v22 }
 0x1a3   : > { %v350_v24 = vld [vmem:[#allocation2 + $0x20] sm:$0xff] }
 0x1a4   : > { %357 = vrot.lane.b32.xlu2 %v350_v24, %s1828_s8 }
 0x1a6   : > { %v351_v25 = vld [vmem:[#allocation2 + $0x28] sm:$0x3f] }
 0x1a7   : > { %359 = vrot.lane.b32.xlu0 %v351_v25, %s1828_s8 }
 0x1ee   : > { %v256_v26 = vpop.permute.xlu1 %255 }
 0x1ef   : > { %265 = vst.msk [vmem:[#allocation2] sm:$0xff] %vm264_vm11, %v256_v26 }
 0x1f6   : > { %v258_v27 = vpop.permute.xlu2 %257  ;;  %v269_v28 = vld [vmem:[#allocation2] sm:$0xff] }
 0x1f7   : > { %266 = vst.msk [vmem:[#allocation2 + $0x8] sm:$0xff] %vm264_vm11, %v258_v27  ;;  %275 = vrot.lane.b32.xlu1 %v269_v28, %s1831_s11 }
 0x1f9   : > { %v356_v29 = vpop.permute.xlu1 %355 }
 0x1fa   : > { %v260_v30 = vpop.permute.xlu0 %259  ;;  %364 = vst.msk [vmem:[#allocation2 + $0x18] sm:$0xff] %vm224_vm8, %v356_v29 }
 0x1fb   : > { %268 = vst.msk [vmem:[#allocation2 + $0x10] sm:$0x3f] %vm267_vm12, %v260_v30 }
 0x1fe   : > { %v358_v31 = vpop.permute.xlu2 %357  ;;  %v270_v32 = vld [vmem:[#allocation2 + $0x8] sm:$0xff] }
 0x1ff   : > { %365 = vst.msk [vmem:[#allocation2 + $0x20] sm:$0xff] %vm224_vm8, %v358_v31  ;;  %277 = vrot.lane.b32.xlu2 %v270_v32, %s1831_s11  ;;  %v471_v31 = vstv %s2053_s25  ;;  %s2099_s25 = sld [smem:[#allocation5 + $0x1d]] }
 0x201   : > { %v367_v33 = vld [vmem:[#allocation2 + $0x18] sm:$0xff] }
 0x202   : > { %v271_v34 = vld [vmem:[#allocation2 + $0x10] sm:$0x3f]  ;;  %373 = vrot.lane.b32.xlu1 %v367_v33, %s1829_s9  ;;  %v458_v33 = vstv %s2055_s26  ;;  %s2109_s26 = sld [smem:[#allocation5 + $0x24]] }
 0x203   : > { %279 = vrot.lane.b32.xlu0 %v271_v34, %s1831_s11  ;;  %v479_v34 = vstv %s2057_s27  ;;  %s2122_s27 = sld [smem:[#allocation5 + $0x2b]] }
 0x206   : > { %v368_v35 = vld [vmem:[#allocation2 + $0x20] sm:$0xff] }
 0x207   : > { %375 = vrot.lane.b32.xlu2 %v368_v35, %s1829_s9 }
 0x219   : > { %v360_v36 = vpop.permute.xlu0 %359 }
 0x21a   : > { %366 = vst.msk [vmem:[#allocation2 + $0x28] sm:$0x3f] %vm227_vm7, %v360_v36 }
 0x221   : > { %v369_v37 = vld [vmem:[#allocation2 + $0x28] sm:$0x3f] }
 0x222   : > { %377 = vrot.lane.b32.xlu0 %v369_v37, %s1829_s9  ;;  %v487_v37 = vstv %s2060_s28  ;;  %s2087_s9 = sld [smem:[#allocation5 + $0xf]] }
 0x223   : > { %s2124_s28 = sld [smem:[#allocation5 + $0x2]] }
 0x259   : > { %v278_v38 = vpop.permute.xlu2 %277 }
 0x25a   : > { %286 = vst.msk [vmem:[#allocation2 + $0x8] sm:$0xff] %vm284_vm13, %v278_v38 }
 0x261   : > { %v376_v39 = vpop.permute.xlu2 %375  ;;  %v290_v40 = vld [vmem:[#allocation2 + $0x8] sm:$0xff] }
 0x262   : > { %383 = vst.msk [vmem:[#allocation2 + $0x20] sm:$0xff] %vm244_vm9, %v376_v39  ;;  %297 = vrot.lane.b32.xlu2 %v290_v40, %s1832_s12 }
 0x269   : > { %v276_v41 = vpop.permute.xlu1 %275  ;;  %v386_v42 = vld [vmem:[#allocation2 + $0x20] sm:$0xff] }
 0x26a   : > { %285 = vst.msk [vmem:[#allocation2] sm:$0xff] %vm284_vm13, %v276_v41  ;;  %393 = vrot.lane.b32.xlu2 %v386_v42, %s2697_s10  ;;  %v495_v41 = vstv %s2064_s29  ;;  %s2130_s29 = sld [smem:[#allocation5 + $0x9]] }
 0x271   : > { %v289_v43 = vld [vmem:[#allocation2] sm:$0xff] }
 0x272   : > { %295 = vrot.lane.b32.xlu1 %v289_v43, %s1832_s12 }
 0x274   : > { %v374_v44 = vpop.permute.xlu1 %373 }
 0x275   : > { %v280_v45 = vpop.permute.xlu0 %279  ;;  %382 = vst.msk [vmem:[#allocation2 + $0x18] sm:$0xff] %vm244_vm9, %v374_v44  ;;  %v503_v44 = vstv %s2067_s30  ;;  %s2166_s30 = sld [smem:[#allocation5 + $0x25]] }
 0x276   : > { %288 = vst.msk [vmem:[#allocation2 + $0x10] sm:$0x3f] %vm287_vm14, %v280_v45 }
 0x27c   : > { %v385_v46 = vld [vmem:[#allocation2 + $0x18] sm:$0xff] }
 0x27d   : > { %v291_v47 = vld [vmem:[#allocation2 + $0x10] sm:$0x3f]  ;;  %391 = vrot.lane.b32.xlu1 %v385_v46, %s2697_s10 }
 0x27e   : > { %299 = vrot.lane.b32.xlu0 %v291_v47, %s1832_s12  ;;  %v511_v47 = vstv %s2072_s4  ;;  %s2177_s4 = sld [smem:[#allocation5 + $0x2c]] }
 0x294   : > { %v378_v48 = vpop.permute.xlu0 %377 }
 0x295   : > { %384 = vst.msk [vmem:[#allocation2 + $0x28] sm:$0x3f] %vm247_vm10, %v378_v48 }
 0x29c   : > { %v387_v49 = vld [vmem:[#allocation2 + $0x28] sm:$0x3f] }
 0x29d   : > { %395 = vrot.lane.b32.xlu0 %v387_v49, %s2697_s10 }
 0x2bc   : > { %v298_v50 = vpop.permute.xlu2 %297 }
 0x2bd   : > { %306 = vst.msk [vmem:[#allocation2 + $0x8] sm:$0xff] %vm304_vm15, %v298_v50 }
 0x2c4   : > { %v394_v51 = vpop.permute.xlu2 %393  ;;  %v310_v52 = vld [vmem:[#allocation2 + $0x8] sm:$0xff] }
 0x2c5   : > { %401 = vst.msk [vmem:[#allocation2 + $0x20] sm:$0xff] %vm264_vm11, %v394_v51  ;;  %317 = vrot.lane.b32.xlu2 %v310_v52, %s2699_s13  ;;  %v519_v52 = vstv %s2075_s5  ;;  %s2706_s5 = smov 125  }
 0x2cc   : > { %v404_v53 = vld [vmem:[#allocation2 + $0x20] sm:$0xff] }
 0x2cd   : > { %411 = vrot.lane.b32.xlu2 %v404_v53, %s1831_s11 }
 0x2e4   : > { %v296_v54 = vpop.permute.xlu1 %295 }
 0x2e5   : > { %305 = vst.msk [vmem:[#allocation2] sm:$0xff] %vm304_vm15, %v296_v54 }
 0x2ec   : > { %v309_v55 = vld [vmem:[#allocation2] sm:$0xff] }
 0x2ed   : > { %315 = vrot.lane.b32.xlu1 %v309_v55, %s2699_s13 }
 0x2ef   : > { %v392_v56 = vpop.permute.xlu1 %391 }
 0x2f0   : > { %v300_v57 = vpop.permute.xlu0 %299  ;;  %400 = vst.msk [vmem:[#allocation2 + $0x18] sm:$0xff] %vm264_vm11, %v392_v56  ;;  %v545_v56 = vstv %s2079_s6  ;;  %s2707_s6 = smov 6  }
 0x2f1   : > { %308 = vst.msk [vmem:[#allocation2 + $0x10] sm:$0x3f] %vm307_vm0, %v300_v57 }
 0x2f7   : > { %v403_v58 = vld [vmem:[#allocation2 + $0x18] sm:$0xff] }
 0x2f8   : > { %v311_v59 = vld [vmem:[#allocation2 + $0x10] sm:$0x3f]  ;;  %409 = vrot.lane.b32.xlu1 %v403_v58, %s1831_s11 }
 0x2f9   : > { %319 = vrot.lane.b32.xlu0 %v311_v59, %s2699_s13 }
 0x30f   : > { %v396_v60 = vpop.permute.xlu0 %395 }
 0x310   : > { %402 = vst.msk [vmem:[#allocation2 + $0x28] sm:$0x3f] %vm267_vm12, %v396_v60  ;;  %v553_v60 = vstv %s2082_s7  ;;  %s2708_s7 = smov 124  }
 0x317   : > { %v405_v61 = vld [vmem:[#allocation2 + $0x28] sm:$0x3f] }
 0x318   : > { %413 = vrot.lane.b32.xlu0 %v405_v61, %s1831_s11  ;;  %s2093_s11 = sld [smem:[#allocation5 + $0x16]] }
 0x31f   : > { %v318_v62 = vpop.permute.xlu2 %317 }
 0x320   : > { %326 = vst.msk [vmem:[#allocation2 + $0x8] sm:$0xff] %vm324_vm1, %v318_v62 }
 0x327   : > { %v461_v63 = vld [vmem:[#allocation2 + $0x8] sm:$0xff]  ;;  %v412_v0 = vpop.permute.xlu2 %411 }
 0x328   : > { %465 = vst.msk [vmem:[#allocation3 + $0x8] sm:$0xff] %vm463_vm2, %v461_v63  ;;  %532 = vrot.lane.b32.xlu2 %v461_v63, %s2702_s18 }
 0x329   : > { %419 = vst.msk [vmem:[#allocation2 + $0x20] sm:$0xff] %vm284_vm13, %v412_v0 }
 0x32f   : > { %v2025_v15 = vld [vmem:[#allocation3 + $0x8] sm:$0xff] }
 0x330   : > { %v422_v1 = vld [vmem:[#allocation2 + $0x20] sm:$0xff]  ;;  %v473_v54 = vmul.f32 %v471_v31, %v2025_v15 }
 0x331   : > { %429 = vrot.lane.b32.xlu2 %v422_v1, %s1832_s12  ;;  %v561_v1 = vstv %s2087_s9  ;;  %s2238_s9 = sld [smem:[#allocation5 + $0xa]] }
 0x339   : > { %606 = vrot.lane.b32.xlu2 %v461_v63, %s1832_s12 }
 0x341   : > { %680 = vrot.lane.b32.xlu2 %v461_v63, %s2700_s20 }
 0x349   : > { %754 = vrot.lane.b32.xlu2 %v461_v63, %s2697_s10 }
 0x35f   : > { %v316_v2 = vpop.permute.xlu1 %315 }
 0x360   : > { %325 = vst.msk [vmem:[#allocation2] sm:$0xff] %vm324_vm1, %v316_v2 }
 0x367   : > { %v2008_v3 = vld [vmem:[#allocation2] sm:$0xff] }
 0x368   : > { %464 = vst.msk [vmem:[#allocation3] sm:$0xff] %vm463_vm2, %v2008_v3  ;;  %530 = vrot.lane.b32.xlu1 %v2008_v3, %s2702_s18 }
 0x36a   : > { %v410_v4 = vpop.permute.xlu1 %409 }
 0x36b   : > { %v320_v5 = vpop.permute.xlu0 %319  ;;  %418 = vst.msk [vmem:[#allocation2 + $0x18] sm:$0xff] %vm284_vm13, %v410_v4 }
 0x36c   : > { %328 = vst.msk [vmem:[#allocation2 + $0x10] sm:$0x3f] %vm327_vm3, %v320_v5 }
 0x36f   : > { %v476_v9 = vld [vmem:[#allocation3 + $0x1] sm:$0xff] }
 0x370   : > { %v484_v10 = vld [vmem:[#allocation3 + $0x2] sm:$0xff]  ;;  %v480_v36 = vmul.f32 %v479_v34, %v476_v9 }
 0x371   : > { %v492_v11 = vld [vmem:[#allocation3 + $0x3] sm:$0xff]  ;;  %v488_v39 = vmul.f32 %v487_v37, %v484_v10  ;;  %v569_v10 = vstv %s2093_s11  ;;  %s2243_s11 = sld [smem:[#allocation5 + $0x11]] }
 0x372   : > { %v421_v6 = vld [vmem:[#allocation2 + $0x18] sm:$0xff]  ;;  %v468_v30 = vld [vmem:[#allocation3] sm:$0xff]  ;;  %v496_v43 = vmul.f32 %v495_v41, %v492_v11 }
 0x373   : > { %v526_v7 = vld [vmem:[#allocation2 + $0x10] sm:$0x3f]  ;;  %427 = vrot.lane.b32.xlu1 %v421_v6, %s1832_s12  ;;  %v2023_v14 = vld [vmem:[#allocation3 + $0x6] sm:$0xff]  ;;  %v472_v32 = vmul.f32 %v471_v31, %v468_v30  ;;  %v585_v31 = vstv %s2109_s26  ;;  %s2256_s26 = sld [smem:[#allocation5 + $0x1f]] }
 0x374   : > { %534 = vrot.lane.b32.xlu0 %v526_v7, %s2702_s18  ;;  %v462_v8 = vld [vmem:[#allocation2 + $0x10] sm:$0x3f]  ;;  %v520_v55 = vmul.f32 %v519_v52, %v2023_v14 }
 0x375   : > { %467 = vst.msk [vmem:[#allocation3 + $0x10] sm:$0x3f] %vm466_vm4, %v462_v8  ;;  %v500_v12 = vld [vmem:[#allocation3 + $0x4] sm:$0xff]  ;;  %v474_v35 = vadd.f32 %v472_v32, %v458_v33 }
 0x376   : > { %v2021_v13 = vld [vmem:[#allocation3 + $0x5] sm:$0xff]  ;;  %v504_v46 = vmul.f32 %v503_v44, %v500_v12 }
 0x377   : > { %v600_v27 = vld [vmem:[#allocation2 + $0x10] sm:$0x3f]  ;;  %v482_v38 = vadd.f32 %v480_v36, %v474_v35  ;;  %v512_v51 = vmul.f32 %v511_v47, %v2021_v13 }
 0x378   : > { %v674_v28 = vld [vmem:[#allocation2 + $0x10] sm:$0x3f] }
 0x379   : > { %v748_v29 = vld [vmem:[#allocation2 + $0x10] sm:$0x3f]  ;;  %v490_v42 = vadd.f32 %v488_v39, %v482_v38 }
 0x37b   : > { %604 = vrot.lane.b32.xlu1 %v2008_v3, %s1832_s12  ;;  %v498_v45 = vadd.f32 %v496_v43, %v490_v42  ;;  %v593_v43 = vstv %s2122_s27  ;;  %s2261_s27 = sld [smem:[#allocation5 + $0x26]] }
 0x37c   : > { %v2027_v16 = vld [vmem:[#allocation3 + $0x9] sm:$0xff] }
 0x37d   : > { %v2029_v17 = vld [vmem:[#allocation3 + $0xa] sm:$0xff]  ;;  %v506_v49 = vadd.f32 %v504_v46, %v498_v45  ;;  %v481_v59 = vmul.f32 %v479_v34, %v2027_v16 }
 0x37e   : > { %v2031_v18 = vld [vmem:[#allocation3 + $0xb] sm:$0xff]  ;;  %v489_v13 = vmul.f32 %v487_v37, %v2029_v17 }
 0x37f   : > { %v2033_v20 = vld [vmem:[#allocation3 + $0xc] sm:$0xff]  ;;  %v514_v53 = vadd.f32 %v512_v51, %v506_v49 }
 0x380   : > { %v2035_v21 = vld [vmem:[#allocation3 + $0xd] sm:$0xff] }
 0x381   : > { %v2037_v22 = vld [vmem:[#allocation3 + $0xe] sm:$0xff]  ;;  %v522_v61 = vadd.f32 %v520_v55, %v514_v53  ;;  %v513_v49 = vmul.f32 %v511_v47, %v2035_v21  ;;  %v627_v53 = vstv %s2130_s29  ;;  %s2310_s29 = sld [smem:[#allocation5 + $0x20]] }
 0x382   : > { %v533_v19 = vpop.permute.xlu2 %532 }
 0x383   : > { %678 = vrot.lane.b32.xlu1 %v2008_v3, %s2700_s20  ;;  %540 = vst.msk [vmem:[#allocation3 + $0x8] sm:$0xff] %vm463_vm2, %v533_v19  ;;  %v577_v19 = vstv %s2099_s25  ;;  %s2252_s25 = sld [smem:[#allocation5 + $0x18]] }
 0x38a   : > { %v414_v23 = vpop.permute.xlu0 %413 }
 0x38b   : > { %420 = vst.msk [vmem:[#allocation2 + $0x28] sm:$0x3f] %vm287_vm14, %v414_v23  ;;  %752 = vrot.lane.b32.xlu1 %v2008_v3, %s2697_s10  ;;  %v430_v24 = vpop.permute.xlu2 %429 }
 0x38c   : > { %437 = vst.msk [vmem:[#allocation2 + $0x20] sm:$0xff] %vm304_vm15, %v430_v24 }
 0x392   : > { %v423_v25 = vld [vmem:[#allocation2 + $0x28] sm:$0x3f] }
 0x393   : > { %431 = vrot.lane.b32.xlu0 %v423_v25, %s1832_s12  ;;  %v440_v26 = vld [vmem:[#allocation2 + $0x20] sm:$0xff]  ;;  %v2069_v40 = vpop.permute.xlu2 %606  ;;  %v497_v25 = vmul.f32 %v495_v41, %v2031_v18  ;;  %v505_v41 = vmul.f32 %v503_v44, %v2033_v20 }
 0x394   : > { %447 = vrot.lane.b32.xlu2 %v440_v26, %s2699_s13 }
 0x39b   : > { %608 = vrot.lane.b32.xlu0 %v600_v27, %s1832_s12  ;;  %v2085_v50 = vpop.permute.xlu2 %680 }
 0x39c   : > { %828 = vrot.lane.b32.xlu2 %v461_v63, %s1836_s21 }
 0x3a3   : > { %682 = vrot.lane.b32.xlu0 %v674_v28, %s2700_s20  ;;  %v2111_v6 = vpop.permute.xlu2 %754  ;;  %s2158_s20 = sld [smem:[#allocation5 + $0x1e]] }
 0x3a4   : > { %902 = vrot.lane.b32.xlu2 %v461_v63, %s1828_s8  ;;  %v475_v63 = vadd.f32 %v473_v54, %v458_v33 }
 0x3a6   : > { %v483_v9 = vadd.f32 %v481_v59, %v475_v63  ;;  %v521_v63 = vmul.f32 %v519_v52, %v2037_v22 }
 0x3a8   : > { %v491_v23 = vadd.f32 %v489_v13, %v483_v9 }
 0x3aa   : > { %v499_v35 = vadd.f32 %v497_v25, %v491_v23  ;;  %v667_v23 = vstv %s2177_s4  ;;  %s2319_s4 = sld [smem:[#allocation5 + $0x2e]] }
 0x3ab   : > { %756 = vrot.lane.b32.xlu0 %v748_v29, %s2697_s10  ;;  %v543_v29 = vld [vmem:[#allocation3 + $0x8] sm:$0xff]  ;;  %s2145_s10 = sld [smem:[#allocation5 + $0x10]] }
 0x3ac   : > { %v507_v45 = vadd.f32 %v505_v41, %v499_v35 }
 0x3ae   : > { %v515_v54 = vadd.f32 %v513_v49, %v507_v45 }
 0x3da   : > { %v531_v48 = vpop.permute.xlu1 %530 }
 0x3db   : > { %539 = vst.msk [vmem:[#allocation3] sm:$0xff] %vm463_vm2, %v531_v48  ;;  %v619_v48 = vstv %s2124_s28  ;;  %s2307_s28 = sld [smem:[#allocation5 + $0x19]] }
 0x3e2   : > { %v542_v57 = vld [vmem:[#allocation3] sm:$0xff] }
 0x3e3   : > { %v550_v58 = vld [vmem:[#allocation3 + $0x1] sm:$0xff]  ;;  %v546_v62 = vmul.f32 %v545_v56, %v542_v57 }
 0x3e4   : > { %v558_v0 = vld [vmem:[#allocation3 + $0x2] sm:$0xff]  ;;  %v554_v5 = vmul.f32 %v553_v60, %v550_v58  ;;  %v635_v58 = vstv %s2145_s10  ;;  %s2267_s10 = sld [smem:[#allocation5 + $0x2d]] }
 0x3e5   : > { %v548_v2 = vadd.f32 %v546_v62, %v522_v61  ;;  %v428_v4 = vpop.permute.xlu1 %427  ;;  %v566_v8 = vld [vmem:[#allocation3 + $0x3] sm:$0xff]  ;;  %v562_v12 = vmul.f32 %v561_v1, %v558_v0  ;;  %v547_v0 = vmul.f32 %v545_v56, %v543_v29  ;;  %v651_v56 = vstv %s2158_s20  ;;  %s2304_s20 = sld [smem:[#allocation5 + $0x12]] }
 0x3e6   : > { %v535_v7 = vpop.permute.xlu0 %534  ;;  %436 = vst.msk [vmem:[#allocation2 + $0x18] sm:$0xff] %vm304_vm15, %v428_v4  ;;  %v574_v14 = vld [vmem:[#allocation3 + $0x4] sm:$0xff]  ;;  %v570_v16 = vmul.f32 %v569_v10, %v566_v8  ;;  %v523_v8 = vadd.f32 %v521_v63, %v515_v54 }
 0x3e7   : > { %541 = vst.msk [vmem:[#allocation3 + $0x10] sm:$0x3f] %vm466_vm4, %v535_v7  ;;  %v556_v11 = vadd.f32 %v554_v5, %v548_v2  ;;  %v578_v26 = vmul.f32 %v577_v19, %v574_v14  ;;  %v582_v27 = vld [vmem:[#allocation3 + $0x5] sm:$0xff]  ;;  %v659_v14 = vstv %s2166_s30  ;;  %s2313_s30 = sld [smem:[#allocation5 + $0x27]] }
 0x3e8   : > { %v590_v28 = vld [vmem:[#allocation3 + $0x6] sm:$0xff]  ;;  %v586_v42 = vmul.f32 %v585_v31, %v582_v27 }
 0x3e9   : > { %v564_v15 = vadd.f32 %v562_v12, %v556_v11  ;;  %v594_v51 = vmul.f32 %v593_v43, %v590_v28  ;;  %v549_v11 = vadd.f32 %v547_v0, %v523_v8 }
 0x3eb   : > { %v572_v24 = vadd.f32 %v570_v16, %v564_v15 }
 0x3ed   : > { %v605_v17 = vpop.permute.xlu1 %604  ;;  %v439_v30 = vld [vmem:[#allocation2 + $0x18] sm:$0xff]  ;;  %v580_v36 = vadd.f32 %v578_v26, %v572_v24 }
 0x3ee   : > { %v551_v32 = vld [vmem:[#allocation3 + $0x9] sm:$0xff]  ;;  %613 = vst.msk [vmem:[#allocation3] sm:$0xff] %vm463_vm2, %v605_v17  ;;  %445 = vrot.lane.b32.xlu1 %v439_v30, %s2699_s13  ;;  %v448_v18 = vpop.permute.xlu2 %447  ;;  %s2155_s13 = sld [smem:[#allocation5 + $0x17]] }
 0x3ef   : > { %v2132_v33 = vld [vmem:[#allocation3 + $0xa] sm:$0xff]  ;;  %455 = vst.msk [vmem:[#allocation2 + $0x20] sm:$0xff] %vm324_vm1, %v448_v18  ;;  %v588_v46 = vadd.f32 %v586_v42, %v580_v36  ;;  %v555_v9 = vmul.f32 %v553_v60, %v551_v32 }
 0x3f0   : > { %v2134_v34 = vld [vmem:[#allocation3 + $0xb] sm:$0xff]  ;;  %v563_v24 = vmul.f32 %v561_v1, %v2132_v33 }
 0x3f1   : > { %v2138_v37 = vld [vmem:[#allocation3 + $0xc] sm:$0xff]  ;;  %v596_v55 = vadd.f32 %v594_v51, %v588_v46  ;;  %v557_v15 = vadd.f32 %v555_v9, %v549_v11  ;;  %v571_v32 = vmul.f32 %v569_v10, %v2134_v34  ;;  %v822_v51 = vld [vmem:[#allocation2 + $0x10] sm:$0x3f] }
 0x3f2   : > { %v2140_v38 = vld [vmem:[#allocation3 + $0xd] sm:$0xff]  ;;  %v579_v36 = vmul.f32 %v577_v19, %v2138_v37 }
 0x3f3   : > { %v2142_v39 = vld [vmem:[#allocation3 + $0xe] sm:$0xff]  ;;  %v565_v29 = vadd.f32 %v563_v24, %v557_v15  ;;  %v587_v42 = vmul.f32 %v585_v31, %v2140_v38 }
 0x3f4   : > { %614 = vst.msk [vmem:[#allocation3 + $0x8] sm:$0xff] %vm463_vm2, %v2069_v40  ;;  %v643_v7 = vstv %s2155_s13  ;;  %v595_v46 = vmul.f32 %v593_v43, %v2142_v39  ;;  %s2279_s13 = sld [smem:[#allocation5 + $0x4]] }
 0x3f5   : > { %v616_v40 = vld [vmem:[#allocation3] sm:$0xff]  ;;  %v679_v57 = vpop.permute.xlu1 %678  ;;  %v573_v1 = vadd.f32 %v571_v32, %v565_v29 }
 0x3f6   : > { %v620_v20 = vmul.f32 %v619_v48, %v616_v40  ;;  %v2170_v44 = vld [vmem:[#allocation2 + $0x20] sm:$0xff]  ;;  %826 = vrot.lane.b32.xlu1 %v2008_v3, %s1836_s21 }
 0x3f7   : > { %1038 = vrot.lane.b32.xlu2 %v2170_v44, %s2702_s18  ;;  %s2186_s18 = sld [smem:[#allocation5 + $0x3]]  ;;  %v581_v41 = vadd.f32 %v579_v36, %v573_v1  ;;  %v733_v1 = vstv %s2261_s27 }
 0x3f8   : > { %v622_v2 = vadd.f32 %v620_v20, %v596_v55  ;;  %s2340_s27 = sld [smem:[#allocation5 + $0x21]] }
 0x3f9   : > { %v589_v45 = vadd.f32 %v587_v42, %v581_v41 }
 0x3fb   : > { %v624_v21 = vld [vmem:[#allocation3 + $0x1] sm:$0xff]  ;;  %v597_v19 = vadd.f32 %v595_v46, %v589_v45 }
 0x3fc   : > { %v632_v47 = vld [vmem:[#allocation3 + $0x2] sm:$0xff]  ;;  %v628_v4 = vmul.f32 %v627_v53, %v624_v21 }
 0x3fd   : > { %v640_v59 = vld [vmem:[#allocation3 + $0x3] sm:$0xff]  ;;  %v636_v52 = vmul.f32 %v635_v58, %v632_v47  ;;  %v693_v27 = vstv %s2186_s18  ;;  %s2302_s18 = sld [smem:[#allocation5 + $0xb]] }
 0x3fe   : > { %v648_v61 = vld [vmem:[#allocation3 + $0x4] sm:$0xff]  ;;  %v630_v22 = vadd.f32 %v628_v4, %v622_v2  ;;  %v644_v13 = vmul.f32 %v643_v7, %v640_v59  ;;  %900 = vrot.lane.b32.xlu1 %v2008_v3, %s1828_s8 }
 0x3ff   : > { %v656_v62 = vld [vmem:[#allocation3 + $0x5] sm:$0xff]  ;;  %v652_v60 = vmul.f32 %v651_v56, %v648_v61  ;;  %1112 = vrot.lane.b32.xlu2 %v2170_v44, %s1832_s12  ;;  %v701_v61 = vstv %s2238_s9  ;;  %s2328_s9 = sld [smem:[#allocation5 + $0xc]] }
 0x400   : > { %v664_v5 = vld [vmem:[#allocation3 + $0x6] sm:$0xff]  ;;  %v638_v12 = vadd.f32 %v636_v52, %v630_v22  ;;  %v660_v26 = vmul.f32 %v659_v14, %v656_v62  ;;  %v896_v62 = vld [vmem:[#allocation2 + $0x10] sm:$0x3f] }
 0x401   : > { %687 = vst.msk [vmem:[#allocation3] sm:$0xff] %vm463_vm2, %v679_v57  ;;  %v668_v17 = vmul.f32 %v667_v23, %v664_v5  ;;  %v617_v49 = vld [vmem:[#allocation3 + $0x8] sm:$0xff] }
 0x402   : > { %v646_v16 = vadd.f32 %v644_v13, %v638_v12  ;;  %v621_v37 = vmul.f32 %v619_v48, %v617_v49 }
 0x404   : > { %v654_v25 = vadd.f32 %v652_v60, %v646_v16  ;;  %v623_v39 = vadd.f32 %v621_v37, %v597_v19  ;;  %v717_v16 = vstv %s2252_s25  ;;  %s2333_s25 = sld [smem:[#allocation5 + $0x13]] }
 0x405   : > { %v432_v35 = vpop.permute.xlu0 %431 }
 0x406   : > { %v662_v3 = vadd.f32 %v660_v26, %v654_v25  ;;  %438 = vst.msk [vmem:[#allocation2 + $0x28] sm:$0x3f] %vm307_vm0, %v432_v35 }
 0x407   : > { %1186 = vrot.lane.b32.xlu2 %v2170_v44, %s2706_s5 }
 0x408   : > { %v690_v28 = vld [vmem:[#allocation3] sm:$0xff]  ;;  %v670_v18 = vadd.f32 %v668_v17, %v662_v3  ;;  %v725_v17 = vstv %s2256_s26  ;;  %s2338_s26 = sld [smem:[#allocation5 + $0x1a]] }
 0x409   : > { %v694_v30 = vmul.f32 %v693_v27, %v690_v28 }
 0x40b   : > { %v2219_v33 = vadd.f32 %v694_v30, %v670_v18  ;;  %v753_v30 = vpop.permute.xlu1 %752 }
 0x40d   : > { %v609_v10 = vpop.permute.xlu0 %608  ;;  %v441_v34 = vld [vmem:[#allocation2 + $0x28] sm:$0x3f] }
 0x40e   : > { %615 = vst.msk [vmem:[#allocation3 + $0x10] sm:$0x3f] %vm466_vm4, %v609_v10  ;;  %449 = vrot.lane.b32.xlu0 %v441_v34, %s2707_s6  ;;  %s2323_s6 = sld [smem:[#allocation5 + $0x5]] }
 0x40f   : > { %1260 = vrot.lane.b32.xlu2 %v2170_v44, %s2708_s7 }
 0x415   : > { %v625_v31 = vld [vmem:[#allocation3 + $0x9] sm:$0xff]  ;;  %v683_v20 = vpop.permute.xlu0 %682 }
 0x416   : > { %v633_v38 = vld [vmem:[#allocation3 + $0xa] sm:$0xff]  ;;  %830 = vrot.lane.b32.xlu0 %v822_v51, %s1836_s21  ;;  %v629_v43 = vmul.f32 %v627_v53, %v625_v31 }
 0x417   : > { %v641_v40 = vld [vmem:[#allocation3 + $0xb] sm:$0xff]  ;;  %1334 = vrot.lane.b32.xlu2 %v2170_v44, %s1836_s21  ;;  %v637_v47 = vmul.f32 %v635_v58, %v633_v38 }
 0x418   : > { %v649_v54 = vld [vmem:[#allocation3 + $0xc] sm:$0xff]  ;;  %v631_v48 = vadd.f32 %v629_v43, %v623_v39  ;;  %v645_v53 = vmul.f32 %v643_v7, %v641_v40  ;;  %v709_v7 = vstv %s2243_s11  ;;  %v767_v40 = vstv %s2279_s13  ;;  %s2709_s11 = smov 127   ;;  %s2351_s13 = sld [smem:[#allocation5 + $0x2f]] }
 0x419   : > { %v657_v55 = vld [vmem:[#allocation3 + $0xd] sm:$0xff] }
 0x41a   : > { %v665_v21 = vld [vmem:[#allocation3 + $0xe] sm:$0xff]  ;;  %v639_v57 = vadd.f32 %v637_v47, %v631_v48  ;;  %v661_v5 = vmul.f32 %v659_v14, %v657_v55 }
 0x41b   : > { %688 = vst.msk [vmem:[#allocation3 + $0x8] sm:$0xff] %vm463_vm2, %v2085_v50  ;;  %v653_v50 = vmul.f32 %v651_v56, %v649_v54  ;;  %v669_v15 = vmul.f32 %v667_v23, %v665_v21 }
 0x41c   : > { %689 = vst.msk [vmem:[#allocation3 + $0x10] sm:$0x3f] %vm466_vm4, %v683_v20  ;;  %v647_v59 = vadd.f32 %v645_v53, %v639_v57 }
 0x41d   : > { %v757_v63 = vpop.permute.xlu0 %756 }
 0x41e   : > { %904 = vrot.lane.b32.xlu0 %v896_v62, %s1828_s8  ;;  %v655_v4 = vadd.f32 %v653_v50, %v647_v59  ;;  %v829_v62 = vpop.permute.xlu2 %828 }
 0x41f   : > { %1408 = vrot.lane.b32.xlu2 %v2170_v44, %s1828_s8 }
 0x420   : > { %v663_v13 = vadd.f32 %v661_v5, %v655_v4 }
 0x422   : > { %v691_v0 = vld [vmem:[#allocation3 + $0x8] sm:$0xff]  ;;  %v671_v29 = vadd.f32 %v669_v15, %v663_v13  ;;  %v791_v13 = vstv %s2307_s28  ;;  %s2408_s28 = sld [smem:[#allocation5 + $0x1b]] }
 0x423   : > { %v698_v2 = vld [vmem:[#allocation3 + $0x1] sm:$0xff]  ;;  %v699_v8 = vld [vmem:[#allocation3 + $0x9] sm:$0xff]  ;;  %v695_v3 = vmul.f32 %v693_v27, %v691_v0  ;;  %v741_v27 = vstv %s2267_s10  ;;  %s2346_s10 = sld [smem:[#allocation5 + $0x28]] }
 0x424   : > { %v706_v58 = vld [vmem:[#allocation3 + $0x2] sm:$0xff]  ;;  %v707_v9 = vld [vmem:[#allocation3 + $0xa] sm:$0xff]  ;;  %v702_v52 = vmul.f32 %v701_v61, %v698_v2  ;;  %v703_v35 = vmul.f32 %v701_v61, %v699_v8 }
 0x425   : > { %v715_v22 = vld [vmem:[#allocation3 + $0xb] sm:$0xff]  ;;  %v714_v14 = vld [vmem:[#allocation3 + $0x3] sm:$0xff]  ;;  %v710_v26 = vmul.f32 %v709_v7, %v706_v58  ;;  %v697_v18 = vadd.f32 %v695_v3, %v671_v29  ;;  %v711_v42 = vmul.f32 %v709_v7, %v707_v9  ;;  %v775_v9 = vstv %s2302_s18  ;;  %s2357_s18 = sld [smem:[#allocation5 + $0x6]] }
 0x426   : > { %v723_v56 = vld [vmem:[#allocation3 + $0xc] sm:$0xff]  ;;  %v722_v60 = vld [vmem:[#allocation3 + $0x4] sm:$0xff]  ;;  %v704_v25 = vadd.f32 %v702_v52, %v2219_v33  ;;  %v718_v32 = vmul.f32 %v717_v16, %v714_v14  ;;  %v719_v46 = vmul.f32 %v717_v16, %v715_v22  ;;  %v783_v52 = vstv %s2304_s20  ;;  %s2404_s20 = sld [smem:[#allocation5 + $0xd]] }
 0x427   : > { %v731_v11 = vld [vmem:[#allocation3 + $0xd] sm:$0xff]  ;;  %v730_v24 = vld [vmem:[#allocation3 + $0x5] sm:$0xff]  ;;  %v726_v36 = vmul.f32 %v725_v17, %v722_v60  ;;  %v705_v41 = vadd.f32 %v703_v35, %v697_v18  ;;  %v727_v38 = vmul.f32 %v725_v17, %v723_v56  ;;  %v799_v14 = vstv %s2310_s29  ;;  %s2417_s29 = sld [smem:[#allocation5 + $0x22]] }
 0x428   : > { %v739_v12 = vld [vmem:[#allocation3 + $0xe] sm:$0xff]  ;;  %v738_v28 = vld [vmem:[#allocation3 + $0x6] sm:$0xff]  ;;  %v712_v23 = vadd.f32 %v710_v26, %v704_v25  ;;  %v734_v34 = vmul.f32 %v733_v1, %v730_v24  ;;  %v735_v43 = vmul.f32 %v733_v1, %v731_v11  ;;  %v815_v17 = vstv %s2319_s4  ;;  %s2441_s4 = sld [smem:[#allocation5 + $0x31]] }
 0x429   : > { %763 = vst.msk [vmem:[#allocation3 + $0x10] sm:$0x3f] %vm466_vm4, %v757_v63  ;;  %v713_v45 = vadd.f32 %v711_v42, %v705_v41  ;;  %v742_v19 = vmul.f32 %v741_v27, %v738_v28  ;;  %v743_v0 = vmul.f32 %v741_v27, %v739_v12  ;;  %v807_v28 = vstv %s2313_s30  ;;  %s2435_s30 = sld [smem:[#allocation5 + $0x30]] }
 0x42a   : > { %762 = vst.msk [vmem:[#allocation3 + $0x8] sm:$0xff] %vm463_vm2, %v2111_v6  ;;  %v720_v33 = vadd.f32 %v718_v32, %v712_v23  ;;  %v841_v35 = vstv %s2323_s6  ;;  %s2480_s6 = sld [smem:[#allocation5 + $0x4d]] }
 0x42b   : > { %761 = vst.msk [vmem:[#allocation3] sm:$0xff] %vm463_vm2, %v753_v30  ;;  %v721_v31 = vadd.f32 %v719_v46, %v713_v45  ;;  %v857_v45 = vstv %s2333_s25  ;;  %s2489_s25 = sld [smem:[#allocation5 + $0x32]] }
 0x42c   : > { %v728_v10 = vadd.f32 %v726_v36, %v720_v33  ;;  %v849_v33 = vstv %s2328_s9  ;;  %s2484_s9 = sld [smem:[#allocation5 + $0x54]] }
 0x42d   : > { %v729_v39 = vadd.f32 %v727_v38, %v721_v31  ;;  %v865_v31 = vstv %s2338_s26  ;;  %s2495_s26 = sld [smem:[#allocation5 + $0x39]] }
 0x42e   : > { %v736_v49 = vadd.f32 %v734_v34, %v728_v10 }
 0x42f   : > { %v737_v63 = vadd.f32 %v735_v43, %v729_v39 }
 0x430   : > { %v744_v21 = vadd.f32 %v742_v19, %v736_v49 }
 0x431   : > { %v2286_v6 = vld [vmem:[#allocation3 + $0x9] sm:$0xff]  ;;  %v745_v5 = vadd.f32 %v743_v0, %v737_v63  ;;  %v915_v0 = vstv %s2357_s18  ;;  %s2513_s18 = sld [smem:[#allocation5 + $0x55]] }
 0x432   : > { %v2288_v37 = vld [vmem:[#allocation3 + $0xa] sm:$0xff]  ;;  %v764_v48 = vld [vmem:[#allocation3] sm:$0xff]  ;;  %v777_v39 = vmul.f32 %v775_v9, %v2286_v6 }
 0x433   : > { %v2290_v51 = vld [vmem:[#allocation3 + $0xb] sm:$0xff]  ;;  %v772_v57 = vld [vmem:[#allocation3 + $0x1] sm:$0xff]  ;;  %v768_v53 = vmul.f32 %v767_v40, %v764_v48 }
 0x434   : > { %v2293_v20 = vld [vmem:[#allocation3 + $0xc] sm:$0xff]  ;;  %v780_v59 = vld [vmem:[#allocation3 + $0x2] sm:$0xff]  ;;  %v776_v22 = vmul.f32 %v775_v9, %v772_v57 }
 0x435   : > { %v2295_v54 = vld [vmem:[#allocation3 + $0xd] sm:$0xff]  ;;  %v788_v50 = vld [vmem:[#allocation3 + $0x3] sm:$0xff]  ;;  %v770_v4 = vadd.f32 %v768_v53, %v744_v21  ;;  %v784_v11 = vmul.f32 %v783_v52, %v780_v59  ;;  %v873_v21 = vstv %s2340_s27  ;;  %s2500_s27 = sld [smem:[#allocation5 + $0x40]] }
 0x436   : > { %v2297_v55 = vld [vmem:[#allocation3 + $0xe] sm:$0xff]  ;;  %v796_v61 = vld [vmem:[#allocation3 + $0x4] sm:$0xff]  ;;  %v792_v16 = vmul.f32 %v791_v13, %v788_v50  ;;  %v889_v50 = vstv %s2351_s13  ;;  %s2509_s13 = sld [smem:[#allocation5 + $0x4e]] }
 0x437   : > { %v765_v47 = vld [vmem:[#allocation3 + $0x8] sm:$0xff]  ;;  %v778_v56 = vadd.f32 %v776_v22, %v770_v4  ;;  %v800_v24 = vmul.f32 %v799_v14, %v796_v61  ;;  %v785_v61 = vmul.f32 %v783_v52, %v2288_v37  ;;  %v801_v52 = vmul.f32 %v799_v14, %v2293_v20 }
 0x438   : > { %v804_v2 = vld [vmem:[#allocation3 + $0x5] sm:$0xff]  ;;  %v769_v7 = vmul.f32 %v767_v40, %v765_v47  ;;  %v881_v47 = vstv %s2346_s10  ;;  %s2505_s10 = sld [smem:[#allocation5 + $0x47]] }
 0x439   : > { %v812_v58 = vld [vmem:[#allocation3 + $0x6] sm:$0xff]  ;;  %v786_v15 = vadd.f32 %v784_v11, %v778_v56  ;;  %v808_v3 = vmul.f32 %v807_v28, %v804_v2 }
 0x43a   : > { %836 = vst.msk [vmem:[#allocation3 + $0x8] sm:$0xff] %vm463_vm2, %v829_v62  ;;  %v2300_v8 = vadd.f32 %v769_v7, %v745_v5  ;;  %v816_v23 = vmul.f32 %v815_v17, %v812_v58  ;;  %v793_v5 = vmul.f32 %v791_v13, %v2290_v51  ;;  %v809_v51 = vmul.f32 %v807_v28, %v2295_v54 }
 0x43b   : > { %v794_v60 = vadd.f32 %v792_v16, %v786_v15  ;;  %v817_v15 = vmul.f32 %v815_v17, %v2297_v55 }
 0x43c   : > { %v779_v57 = vadd.f32 %v777_v39, %v2300_v8 }
 0x43d   : > { %v802_v29 = vadd.f32 %v800_v24, %v794_v60 }
 0x43e   : > { %v787_v2 = vadd.f32 %v785_v61, %v779_v57 }
 0x43f   : > { %v810_v30 = vadd.f32 %v808_v3, %v802_v29  ;;  %v903_v29 = vpop.permute.xlu2 %902 }
 0x440   : > { %v795_v37 = vadd.f32 %v793_v5, %v787_v2 }
 0x441   : > { %v818_v41 = vadd.f32 %v816_v23, %v810_v30  ;;  %v839_v16 = vld [vmem:[#allocation3 + $0x8] sm:$0xff] }
 0x442   : > { %v803_v56 = vadd.f32 %v801_v52, %v795_v37  ;;  %v843_v60 = vmul.f32 %v841_v35, %v839_v16 }
 0x444   : > { %v811_v13 = vadd.f32 %v809_v51, %v803_v56 }
 0x446   : > { %v819_v20 = vadd.f32 %v817_v15, %v811_v13 }
 0x448   : > { %v845_v3 = vadd.f32 %v843_v60, %v819_v20 }
 0x460   : > { %v446_v12 = vpop.permute.xlu1 %445 }
 0x461   : > { %454 = vst.msk [vmem:[#allocation2 + $0x18] sm:$0xff] %vm324_vm1, %v446_v12 }
 0x468   : > { %v2325_v25 = vld [vmem:[#allocation2 + $0x18] sm:$0xff]  ;;  %v827_v26 = vpop.permute.xlu1 %826 }
 0x469   : > { %1036 = vrot.lane.b32.xlu1 %v2325_v25, %s2709_s11  ;;  %835 = vst.msk [vmem:[#allocation3] sm:$0xff] %vm463_vm2, %v827_v26 }
 0x470   : > { %v901_v32 = vpop.permute.xlu1 %900  ;;  %v838_v18 = vld [vmem:[#allocation3] sm:$0xff] }
 0x471   : > { %v846_v1 = vld [vmem:[#allocation3 + $0x1] sm:$0xff]  ;;  %1110 = vrot.lane.b32.xlu1 %v2325_v25, %s1832_s12  ;;  %v842_v42 = vmul.f32 %v841_v35, %v838_v18 }
 0x472   : > { %v854_v36 = vld [vmem:[#allocation3 + $0x2] sm:$0xff]  ;;  %v850_v19 = vmul.f32 %v849_v33, %v846_v1 }
 0x473   : > { %v862_v27 = vld [vmem:[#allocation3 + $0x3] sm:$0xff]  ;;  %v844_v49 = vadd.f32 %v842_v42, %v818_v41  ;;  %v858_v40 = vmul.f32 %v857_v45, %v854_v36 }
 0x474   : > { %v870_v10 = vld [vmem:[#allocation3 + $0x4] sm:$0xff]  ;;  %v866_v48 = vmul.f32 %v865_v31, %v862_v27 }
 0x475   : > { %v878_v34 = vld [vmem:[#allocation3 + $0x5] sm:$0xff]  ;;  %v852_v38 = vadd.f32 %v850_v19, %v844_v49  ;;  %v874_v59 = vmul.f32 %v873_v21, %v870_v10 }
 0x476   : > { %v886_v46 = vld [vmem:[#allocation3 + $0x6] sm:$0xff]  ;;  %v882_v63 = vmul.f32 %v881_v47, %v878_v34 }
 0x477   : > { %909 = vst.msk [vmem:[#allocation3] sm:$0xff] %vm463_vm2, %v901_v32  ;;  %v860_v43 = vadd.f32 %v858_v40, %v852_v38  ;;  %v890_v4 = vmul.f32 %v889_v50, %v886_v46 }
 0x479   : > { %1184 = vrot.lane.b32.xlu1 %v2325_v25, %s2706_s5  ;;  %v868_v53 = vadd.f32 %v866_v48, %v860_v43  ;;  %v923_v43 = vstv %s2404_s20  ;;  %s2518_s20 = sld [smem:[#allocation5 + $0x5c]] }
 0x47b   : > { %v876_v62 = vadd.f32 %v874_v59, %v868_v53 }
 0x47d   : > { %v884_v58 = vadd.f32 %v882_v63, %v876_v62 }
 0x47e   : > { %v912_v6 = vld [vmem:[#allocation3] sm:$0xff] }
 0x47f   : > { %v892_v7 = vadd.f32 %v890_v4, %v884_v58  ;;  %v916_v8 = vmul.f32 %v915_v0, %v912_v6  ;;  %v947_v4 = vstv %s2417_s29  ;;  %s2527_s29 = sld [smem:[#allocation5 + $0x41]] }
 0x480   : > { %v450_v9 = vpop.permute.xlu0 %449 }
 0x481   : > { %456 = vst.msk [vmem:[#allocation2 + $0x28] sm:$0x3f] %vm327_vm3, %v450_v9  ;;  %1258 = vrot.lane.b32.xlu1 %v2325_v25, %s2708_s7  ;;  %v2380_v22 = vadd.f32 %v916_v8, %v892_v7 }
 0x488   : > { %v831_v11 = vpop.permute.xlu0 %830  ;;  %v1032_v12 = vld [vmem:[#allocation2 + $0x28] sm:$0x3f] }
 0x489   : > { %837 = vst.msk [vmem:[#allocation3 + $0x10] sm:$0x3f] %vm466_vm4, %v831_v11  ;;  %1040 = vrot.lane.b32.xlu0 %v1032_v12, %s2709_s11  ;;  %1332 = vrot.lane.b32.xlu1 %v2325_v25, %s1836_s21  ;;  %v1106_v14 = vld [vmem:[#allocation2 + $0x28] sm:$0x3f]  ;;  %v963_v11 = vstv %s2435_s30  ;;  %s2487_s11 = sld [smem:[#allocation5 + $0x5b]] }
 0x48a   : > { %v1254_v2 = vld [vmem:[#allocation2 + $0x28] sm:$0x3f]  ;;  %s2535_s30 = sld [smem:[#allocation5 + $0x4f]] }
 0x48b   : > { %v1328_v51 = vld [vmem:[#allocation2 + $0x28] sm:$0x3f] }
 0x490   : > { %v905_v54 = vpop.permute.xlu0 %904  ;;  %v847_v24 = vld [vmem:[#allocation3 + $0x9] sm:$0xff] }
 0x491   : > { %v855_v26 = vld [vmem:[#allocation3 + $0xa] sm:$0xff]  ;;  %1114 = vrot.lane.b32.xlu0 %v1106_v14, %s1832_s12  ;;  %1406 = vrot.lane.b32.xlu1 %v2325_v25, %s1828_s8  ;;  %v851_v30 = vmul.f32 %v849_v33, %v847_v24  ;;  %s2406_s12 = sld [smem:[#allocation5 + $0x14]]  ;;  %v1180_v33 = vld [vmem:[#allocation2 + $0x28] sm:$0x3f]  ;;  %v977_v24 = vstv %s2441_s4 }
 0x492   : > { %v863_v28 = vld [vmem:[#allocation3 + $0xb] sm:$0xff]  ;;  %v859_v18 = vmul.f32 %v857_v45, %v855_v26  ;;  %s2538_s4 = sld [smem:[#allocation5 + $0x56]] }
 0x493   : > { %v871_v23 = vld [vmem:[#allocation3 + $0xc] sm:$0xff]  ;;  %v853_v32 = vadd.f32 %v851_v30, %v845_v3  ;;  %v867_v1 = vmul.f32 %v865_v31, %v863_v28  ;;  %v1039_v3 = vpop.permute.xlu2 %1038 }
 0x494   : > { %v879_v55 = vld [vmem:[#allocation3 + $0xd] sm:$0xff]  ;;  %v875_v41 = vmul.f32 %v873_v21, %v871_v23 }
 0x495   : > { %v887_v17 = vld [vmem:[#allocation3 + $0xe] sm:$0xff]  ;;  %v861_v35 = vadd.f32 %v859_v18, %v853_v32  ;;  %v883_v27 = vmul.f32 %v881_v47, %v879_v55 }
 0x496   : > { %910 = vst.msk [vmem:[#allocation3 + $0x8] sm:$0xff] %vm463_vm2, %v903_v29  ;;  %v891_v38 = vmul.f32 %v889_v50, %v887_v17  ;;  %v970_v50 = vld [vmem:[#allocation2 + $0x28] sm:$0x3f] }
 0x497   : > { %911 = vst.msk [vmem:[#allocation3 + $0x10] sm:$0x3f] %vm466_vm4, %v905_v54  ;;  %v869_v36 = vadd.f32 %v867_v1, %v861_v35  ;;  %v931_v62 = vstv %s2406_s12  ;;  %v1402_v35 = vld [vmem:[#allocation2 + $0x28] sm:$0x3f]  ;;  %s2521_s12 = sld [smem:[#allocation5 + $0x33]] }
 0x499   : > { %1188 = vrot.lane.b32.xlu0 %v1180_v33, %s2706_s5  ;;  %v877_v42 = vadd.f32 %v875_v41, %v869_v36  ;;  %s2426_s5 = sld [smem:[#allocation5 + $0x29]] }
 0x49b   : > { %v885_v31 = vadd.f32 %v883_v27, %v877_v42 }
 0x49d   : > { %v913_v10 = vld [vmem:[#allocation3 + $0x8] sm:$0xff]  ;;  %v893_v53 = vadd.f32 %v891_v38, %v885_v31 }
 0x49e   : > { %v2411_v34 = vld [vmem:[#allocation3 + $0x1] sm:$0xff]  ;;  %v921_v46 = vld [vmem:[#allocation3 + $0x9] sm:$0xff]  ;;  %v917_v59 = vmul.f32 %v915_v0, %v913_v10  ;;  %v939_v0 = vstv %s2408_s28  ;;  %s2524_s28 = sld [smem:[#allocation5 + $0x3a]] }
 0x49f   : > { %v2413_v45 = vld [vmem:[#allocation3 + $0x2] sm:$0xff]  ;;  %v929_v49 = vld [vmem:[#allocation3 + $0xa] sm:$0xff]  ;;  %v925_v6 = vmul.f32 %v923_v43, %v921_v46  ;;  %v955_v8 = vstv %s2426_s5  ;;  %v924_v1 = vmul.f32 %v923_v43, %v2411_v34  ;;  %s2532_s5 = sld [smem:[#allocation5 + $0x48]] }
 0x4a0   : > { %v2415_v19 = vld [vmem:[#allocation3 + $0x3] sm:$0xff]  ;;  %v937_v40 = vld [vmem:[#allocation3 + $0xb] sm:$0xff]  ;;  %v919_v63 = vadd.f32 %v917_v59, %v893_v53  ;;  %v933_v58 = vmul.f32 %v931_v62, %v929_v49  ;;  %v932_v41 = vmul.f32 %v931_v62, %v2413_v45 }
 0x4a1   : > { %v2421_v21 = vld [vmem:[#allocation3 + $0x4] sm:$0xff]  ;;  %v945_v39 = vld [vmem:[#allocation3 + $0xc] sm:$0xff]  ;;  %1262 = vrot.lane.b32.xlu0 %v1254_v2, %s2708_s7  ;;  %v941_v7 = vmul.f32 %v939_v0, %v937_v40  ;;  %v926_v36 = vadd.f32 %v924_v1, %v2380_v22  ;;  %v940_v42 = vmul.f32 %v939_v0, %v2415_v19  ;;  %s2477_s7 = sld [smem:[#allocation5 + $0x46]] }
 0x4a2   : > { %v2424_v48 = vld [vmem:[#allocation3 + $0x5] sm:$0xff]  ;;  %v953_v47 = vld [vmem:[#allocation3 + $0xd] sm:$0xff]  ;;  %v948_v10 = vmul.f32 %v947_v4, %v2421_v21 }
 0x4a3   : > { %v2428_v57 = vld [vmem:[#allocation3 + $0x6] sm:$0xff]  ;;  %v961_v61 = vld [vmem:[#allocation3 + $0xe] sm:$0xff]  ;;  %v957_v20 = vmul.f32 %v955_v8, %v953_v47  ;;  %v934_v33 = vadd.f32 %v932_v41, %v926_v36  ;;  %v956_v49 = vmul.f32 %v955_v8, %v2424_v48 }
 0x4a4   : > { %971 = vst.msk [vmem:[#allocation3] sm:$0xff] %vm463_vm2, %v2325_v25  ;;  %v927_v25 = vadd.f32 %v925_v6, %v919_v63  ;;  %v965_v23 = vmul.f32 %v963_v11, %v961_v61  ;;  %v964_v38 = vmul.f32 %v963_v11, %v2428_v57  ;;  %v1009_v61 = vstv %s2480_s6  ;;  %s2553_s6 = sld [smem:[#allocation5 + $0x42]] }
 0x4a5   : > { %972 = vst.msk [vmem:[#allocation3 + $0x8] sm:$0xff] %vm463_vm2, %v2170_v44  ;;  %v949_v44 = vmul.f32 %v947_v4, %v945_v39  ;;  %v942_v27 = vadd.f32 %v940_v42, %v934_v33  ;;  %v1083_v33 = vstv %s2509_s13  ;;  %s2579_s13 = sld [smem:[#allocation5 + $0x43]] }
 0x4a6   : > { %973 = vst.msk [vmem:[#allocation3 + $0x10] sm:$0x3f] %vm466_vm4, %v970_v50  ;;  %v935_v5 = vadd.f32 %v933_v58, %v927_v25 }
 0x4a7   : > { %v950_v46 = vadd.f32 %v948_v10, %v942_v27  ;;  %v1001_v57 = vstv %s2477_s7  ;;  %s2548_s7 = sld [smem:[#allocation5 + $0x3b]] }
 0x4a8   : > { %v943_v9 = vadd.f32 %v941_v7, %v935_v5  ;;  %v1017_v7 = vstv %s2484_s9  ;;  %s2556_s9 = sld [smem:[#allocation5 + $0x49]] }
 0x4a9   : > { %1336 = vrot.lane.b32.xlu0 %v1328_v51, %s1836_s21  ;;  %s2471_s21 = sld [smem:[#allocation5 + $0x38]]  ;;  %v958_v31 = vadd.f32 %v956_v49, %v950_v46  ;;  %v1051_v51 = vstv %s2489_s25  ;;  %v1091_v49 = vstv %s2513_s18 }
 0x4aa   : > { %v951_v16 = vadd.f32 %v949_v44, %v943_v9  ;;  %s2562_s25 = sld [smem:[#allocation5 + $0x57]] }
 0x4ab   : > { %v974_v34 = vld [vmem:[#allocation3] sm:$0xff]  ;;  %v966_v22 = vadd.f32 %v964_v38, %v958_v31  ;;  %s2582_s18 = sld [smem:[#allocation5 + $0x4a]] }
 0x4ac   : > { %v975_v37 = vld [vmem:[#allocation3 + $0x8] sm:$0xff]  ;;  %v959_v30 = vadd.f32 %v957_v20, %v951_v16  ;;  %v978_v45 = vmul.f32 %v977_v24, %v974_v34 }
 0x4ad   : > { %v982_v52 = vld [vmem:[#allocation3 + $0x1] sm:$0xff]  ;;  %v2447_v12 = vld [vmem:[#allocation3 + $0x9] sm:$0xff]  ;;  %v979_v32 = vmul.f32 %v977_v24, %v975_v37  ;;  %v1025_v37 = vstv %s2487_s11  ;;  %v1059_v24 = vstv %s2495_s26  ;;  %s2559_s11 = sld [smem:[#allocation5 + $0x50]] }
 0x4ae   : > { %v990_v56 = vld [vmem:[#allocation3 + $0x2] sm:$0xff]  ;;  %v2449_v13 = vld [vmem:[#allocation3 + $0xa] sm:$0xff]  ;;  %v967_v17 = vadd.f32 %v965_v23, %v959_v30  ;;  %v980_v19 = vadd.f32 %v978_v45, %v966_v22  ;;  %v1067_v23 = vstv %s2500_s27  ;;  %s2565_s26 = sld [smem:[#allocation5 + $0x5e]] }
 0x4af   : > { %v998_v15 = vld [vmem:[#allocation3 + $0x3] sm:$0xff]  ;;  %v2451_v14 = vld [vmem:[#allocation3 + $0xb] sm:$0xff]  ;;  %v985_v40 = vstv %s2471_s21  ;;  %s2541_s21 = sld [smem:[#allocation5 + $0x5d]] }
 0x4b0   : > { %v1006_v60 = vld [vmem:[#allocation3 + $0x4] sm:$0xff]  ;;  %v2453_v54 = vld [vmem:[#allocation3 + $0xc] sm:$0xff]  ;;  %v981_v18 = vadd.f32 %v979_v32, %v967_v17  ;;  %v986_v21 = vmul.f32 %v985_v40, %v982_v52  ;;  %v1002_v59 = vmul.f32 %v1001_v57, %v998_v15  ;;  %v987_v44 = vmul.f32 %v985_v40, %v2447_v12  ;;  %s2571_s27 = sld [smem:[#allocation5 + $0x35]] }
 0x4b1   : > { %v1014_v26 = vld [vmem:[#allocation3 + $0x5] sm:$0xff]  ;;  %v2456_v28 = vld [vmem:[#allocation3 + $0xd] sm:$0xff]  ;;  %1410 = vrot.lane.b32.xlu0 %v1402_v35, %s1828_s8  ;;  %s2474_s8 = sld [smem:[#allocation5 + $0x3f]]  ;;  %v1010_v25 = vmul.f32 %v1009_v61, %v1006_v60  ;;  %v1003_v12 = vmul.f32 %v1001_v57, %v2451_v14 }
 0x4b2   : > { %v2458_v29 = vld [vmem:[#allocation3 + $0x6] sm:$0xff]  ;;  %v2461_v55 = vld [vmem:[#allocation3 + $0xe] sm:$0xff]  ;;  %v988_v48 = vadd.f32 %v986_v21, %v980_v19  ;;  %v1018_v9 = vmul.f32 %v1017_v7, %v1014_v26  ;;  %v1019_v1 = vmul.f32 %v1017_v7, %v2456_v28  ;;  %v1113_v19 = vpop.permute.xlu2 %1112 }
 0x4b3   : > { %1046 = vst.msk [vmem:[#allocation3 + $0x8] sm:$0xff] %vm463_vm2, %v1039_v3  ;;  %v1026_v11 = vmul.f32 %v1025_v37, %v2458_v29  ;;  %v1011_v29 = vmul.f32 %v1009_v61, %v2453_v54  ;;  %v1027_v54 = vmul.f32 %v1025_v37, %v2461_v55 }
 0x4b7   : > { %v993_v39 = vstv %s2474_s8  ;;  %s2544_s8 = sld [smem:[#allocation5 + $0x34]] }
 0x4b8   : > { %v994_v47 = vmul.f32 %v993_v39, %v990_v56  ;;  %v989_v56 = vadd.f32 %v987_v44, %v981_v18  ;;  %v995_v16 = vmul.f32 %v993_v39, %v2449_v13  ;;  %v1075_v18 = vstv %s2505_s10  ;;  %s2576_s10 = sld [smem:[#allocation5 + $0x3c]] }
 0x4ba   : > { %v996_v53 = vadd.f32 %v994_v47, %v988_v48  ;;  %v997_v60 = vadd.f32 %v995_v16, %v989_v56  ;;  %v1049_v27 = vld [vmem:[#allocation3 + $0x8] sm:$0xff]  ;;  %v1099_v47 = vstv %s2518_s20  ;;  %s2585_s20 = sld [smem:[#allocation5 + $0x51]] }
 0x4bb   : > { %v1053_v28 = vmul.f32 %v1051_v51, %v1049_v27  ;;  %v1165_v27 = vstv %s2538_s4  ;;  %s2613_s4 = sld [smem:[#allocation5 + $0x4b]] }
 0x4bc   : > { %v1004_v50 = vadd.f32 %v1002_v59, %v996_v53  ;;  %v1005_v30 = vadd.f32 %v1003_v12, %v997_v60 }
 0x4be   : > { %v1012_v8 = vadd.f32 %v1010_v25, %v1004_v50  ;;  %v1013_v13 = vadd.f32 %v1011_v29, %v1005_v30  ;;  %v1125_v50 = vstv %s2521_s12  ;;  %s2590_s12 = sld [smem:[#allocation5 + $0x58]] }
 0x4c0   : > { %v1020_v52 = vadd.f32 %v1018_v9, %v1012_v8  ;;  %v1021_v41 = vadd.f32 %v1019_v1, %v1013_v13 }
 0x4c2   : > { %v1028_v20 = vadd.f32 %v1026_v11, %v1020_v52  ;;  %v1029_v46 = vadd.f32 %v1027_v54, %v1021_v41  ;;  %v1141_v52 = vstv %s2527_s29  ;;  %s2604_s29 = sld [smem:[#allocation5 + $0x36]] }
 0x4c4   : > { %v1055_v21 = vadd.f32 %v1053_v28, %v1029_v46  ;;  %v1173_v28 = vstv %s2541_s21  ;;  %s2616_s21 = sld [smem:[#allocation5 + $0x52]] }
 0x4db   : > { %v1037_v43 = vpop.permute.xlu1 %1036 }
 0x4dc   : > { %1045 = vst.msk [vmem:[#allocation3] sm:$0xff] %vm463_vm2, %v1037_v43 }
 0x4e3   : > { %v1048_v62 = vld [vmem:[#allocation3] sm:$0xff]  ;;  %v1111_v0 = vpop.permute.xlu1 %1110 }
 0x4e4   : > { %v1056_v63 = vld [vmem:[#allocation3 + $0x1] sm:$0xff]  ;;  %v1052_v15 = vmul.f32 %v1051_v51, %v1048_v62 }
 0x4e5   : > { %v1064_v6 = vld [vmem:[#allocation3 + $0x2] sm:$0xff]  ;;  %v1060_v3 = vmul.f32 %v1059_v24, %v1056_v63 }
 0x4e6   : > { %v1072_v2 = vld [vmem:[#allocation3 + $0x3] sm:$0xff]  ;;  %v1054_v26 = vadd.f32 %v1052_v15, %v1028_v20  ;;  %v1068_v32 = vmul.f32 %v1067_v23, %v1064_v6 }
 0x4e7   : > { %v1080_v58 = vld [vmem:[#allocation3 + $0x4] sm:$0xff]  ;;  %v1076_v14 = vmul.f32 %v1075_v18, %v1072_v2 }
 0x4e8   : > { %v1088_v4 = vld [vmem:[#allocation3 + $0x5] sm:$0xff]  ;;  %v1062_v17 = vadd.f32 %v1060_v3, %v1054_v26  ;;  %v1084_v10 = vmul.f32 %v1083_v33, %v1080_v58 }
 0x4e9   : > { %v2491_v5 = vld [vmem:[#allocation3 + $0x6] sm:$0xff]  ;;  %v1092_v40 = vmul.f32 %v1091_v49, %v1088_v4  ;;  %v1133_v4 = vstv %s2524_s28  ;;  %s2597_s28 = sld [smem:[#allocation5 + $0x5f]] }
 0x4ea   : > { %1119 = vst.msk [vmem:[#allocation3] sm:$0xff] %vm463_vm2, %v1111_v0  ;;  %v1070_v35 = vadd.f32 %v1068_v32, %v1062_v17  ;;  %v1100_v62 = vmul.f32 %v1099_v47, %v2491_v5 }
 0x4eb   : > { %v1185_v3 = vpop.permute.xlu1 %1184 }
 0x4ec   : > { %v1078_v42 = vadd.f32 %v1076_v14, %v1070_v35 }
 0x4ee   : > { %v1086_v31 = vadd.f32 %v1084_v10, %v1078_v42 }
 0x4f0   : > { %v1094_v57 = vadd.f32 %v1092_v40, %v1086_v31  ;;  %v1199_v40 = vstv %s2544_s8  ;;  %s2620_s8 = sld [smem:[#allocation5 + $0x59]] }
 0x4f1   : > { %v1122_v61 = vld [vmem:[#allocation3] sm:$0xff] }
 0x4f2   : > { %v1102_v2 = vadd.f32 %v1100_v62, %v1094_v57  ;;  %v1126_v0 = vmul.f32 %v1125_v50, %v1122_v61  ;;  %v1207_v57 = vstv %s2548_s7  ;;  %s2626_s7 = sld [smem:[#allocation5 + $0x60]] }
 0x4f4   : > { %v1128_v5 = vadd.f32 %v1126_v0, %v1102_v2  ;;  %v1215_v0 = vstv %s2553_s6  ;;  %s2631_s6 = sld [smem:[#allocation5 + $0x37]] }
 0x4fb   : > { %v1041_v36 = vpop.permute.xlu0 %1040 }
 0x4fc   : > { %1047 = vst.msk [vmem:[#allocation3 + $0x10] sm:$0x3f] %vm466_vm4, %v1041_v36  ;;  %v1157_v36 = vstv %s2535_s30  ;;  %s2610_s30 = sld [smem:[#allocation5 + $0x44]] }
 0x503   : > { %v1115_v38 = vpop.permute.xlu0 %1114  ;;  %v1057_v34 = vld [vmem:[#allocation3 + $0x9] sm:$0xff] }
 0x504   : > { %v1065_v22 = vld [vmem:[#allocation3 + $0xa] sm:$0xff]  ;;  %v1061_v55 = vmul.f32 %v1059_v24, %v1057_v34  ;;  %v1149_v24 = vstv %s2532_s5  ;;  %s2607_s5 = sld [smem:[#allocation5 + $0x3d]] }
 0x505   : > { %v1073_v45 = vld [vmem:[#allocation3 + $0xb] sm:$0xff]  ;;  %v1069_v59 = vmul.f32 %v1067_v23, %v1065_v22 }
 0x506   : > { %v1081_v39 = vld [vmem:[#allocation3 + $0xc] sm:$0xff]  ;;  %v1063_v53 = vadd.f32 %v1061_v55, %v1055_v21  ;;  %v1077_v6 = vmul.f32 %v1075_v18, %v1073_v45  ;;  %v1187_v18 = vpop.permute.xlu2 %1186 }
 0x507   : > { %v1089_v43 = vld [vmem:[#allocation3 + $0xd] sm:$0xff]  ;;  %v1085_v58 = vmul.f32 %v1083_v33, %v1081_v39 }
 0x508   : > { %v1097_v48 = vld [vmem:[#allocation3 + $0xe] sm:$0xff]  ;;  %v1071_v63 = vadd.f32 %v1069_v59, %v1063_v53  ;;  %v1093_v8 = vmul.f32 %v1091_v49, %v1089_v43 }
 0x509   : > { %1120 = vst.msk [vmem:[#allocation3 + $0x8] sm:$0xff] %vm463_vm2, %v1113_v19  ;;  %v1101_v20 = vmul.f32 %v1099_v47, %v1097_v48 }
 0x50a   : > { %1121 = vst.msk [vmem:[#allocation3 + $0x10] sm:$0x3f] %vm466_vm4, %v1115_v38  ;;  %v1079_v25 = vadd.f32 %v1077_v6, %v1071_v63 }
 0x50b   : > { %v1189_v30 = vpop.permute.xlu0 %1188 }
 0x50c   : > { %v1087_v7 = vadd.f32 %v1085_v58, %v1079_v25 }
 0x50e   : > { %v1095_v16 = vadd.f32 %v1093_v8, %v1087_v7  ;;  %v1259_v7 = vpop.permute.xlu1 %1258 }
 0x510   : > { %v1123_v9 = vld [vmem:[#allocation3 + $0x8] sm:$0xff]  ;;  %v1103_v35 = vadd.f32 %v1101_v20, %v1095_v16 }
 0x511   : > { %v1130_v44 = vld [vmem:[#allocation3 + $0x1] sm:$0xff]  ;;  %v1131_v56 = vld [vmem:[#allocation3 + $0x9] sm:$0xff]  ;;  %v1127_v1 = vmul.f32 %v1125_v50, %v1123_v9 }
 0x512   : > { %v1138_v37 = vld [vmem:[#allocation3 + $0x2] sm:$0xff]  ;;  %v1134_v51 = vmul.f32 %v1133_v4, %v1130_v44  ;;  %v1139_v11 = vld [vmem:[#allocation3 + $0xa] sm:$0xff]  ;;  %v1135_v54 = vmul.f32 %v1133_v4, %v1131_v56  ;;  %v1261_v56 = vpop.permute.xlu2 %1260 }
 0x513   : > { %v1146_v15 = vld [vmem:[#allocation3 + $0x3] sm:$0xff]  ;;  %v1147_v60 = vld [vmem:[#allocation3 + $0xb] sm:$0xff]  ;;  %v1142_v17 = vmul.f32 %v1141_v52, %v1138_v37  ;;  %v1129_v42 = vadd.f32 %v1127_v1, %v1103_v35  ;;  %v1143_v31 = vmul.f32 %v1141_v52, %v1139_v11  ;;  %v1263_v8 = vpop.permute.xlu0 %1262  ;;  %v1247_v1 = vstv %s2565_s26  ;;  %s2643_s26 = sld [smem:[#allocation5 + $0x53]] }
 0x514   : > { %v1154_v26 = vld [vmem:[#allocation3 + $0x4] sm:$0xff]  ;;  %v1155_v12 = vld [vmem:[#allocation3 + $0xc] sm:$0xff]  ;;  %v1136_v23 = vadd.f32 %v1134_v51, %v1128_v5  ;;  %v1150_v33 = vmul.f32 %v1149_v24, %v1146_v15  ;;  %v1151_v45 = vmul.f32 %v1149_v24, %v1147_v60  ;;  %v1223_v15 = vstv %s2556_s9  ;;  %s2634_s9 = sld [smem:[#allocation5 + $0x3e]] }
 0x515   : > { %v1162_v29 = vld [vmem:[#allocation3 + $0x5] sm:$0xff]  ;;  %v1163_v32 = vld [vmem:[#allocation3 + $0xd] sm:$0xff]  ;;  %v1158_v46 = vmul.f32 %v1157_v36, %v1154_v26  ;;  %v1137_v49 = vadd.f32 %v1135_v54, %v1129_v42  ;;  %v1159_v43 = vmul.f32 %v1157_v36, %v1155_v12  ;;  %v1231_v12 = vstv %s2559_s11  ;;  %s2637_s11 = sld [smem:[#allocation5 + $0x45]] }
 0x516   : > { %v1170_v13 = vld [vmem:[#allocation3 + $0x6] sm:$0xff]  ;;  %v1171_v14 = vld [vmem:[#allocation3 + $0xe] sm:$0xff]  ;;  %v1144_v41 = vadd.f32 %v1142_v17, %v1136_v23  ;;  %v1166_v34 = vmul.f32 %v1165_v27, %v1162_v29  ;;  %v1167_v2 = vmul.f32 %v1165_v27, %v1163_v32  ;;  %v1239_v29 = vstv %s2562_s25  ;;  %s2640_s25 = sld [smem:[#allocation5 + $0x4c]] }
 0x517   : > { %1193 = vst.msk [vmem:[#allocation3] sm:$0xff] %vm463_vm2, %v1185_v3  ;;  %v1145_v22 = vadd.f32 %v1143_v31, %v1137_v49  ;;  %v1174_v21 = vmul.f32 %v1173_v28, %v1170_v13  ;;  %v1175_v11 = vmul.f32 %v1173_v28, %v1171_v14  ;;  %v1273_v27 = vstv %s2571_s27  ;;  %s2646_s27 = sld [smem:[#allocation5 + $0x5a]] }
 0x518   : > { %1194 = vst.msk [vmem:[#allocation3 + $0x8] sm:$0xff] %vm463_vm2, %v1187_v18  ;;  %v1152_v10 = vadd.f32 %v1150_v33, %v1144_v41 }
 0x519   : > { %1195 = vst.msk [vmem:[#allocation3 + $0x10] sm:$0x3f] %vm466_vm4, %v1189_v30  ;;  %v1153_v39 = vadd.f32 %v1151_v45, %v1145_v22 }
 0x51a   : > { %v1160_v38 = vadd.f32 %v1158_v46, %v1152_v10 }
 0x51b   : > { %v1161_v6 = vadd.f32 %v1159_v43, %v1153_v39  ;;  %v1333_v39 = vpop.permute.xlu1 %1332  ;;  %v1337_v43 = vpop.permute.xlu0 %1336 }
 0x51c   : > { %v1168_v19 = vadd.f32 %v1166_v34, %v1160_v38 }
 0x51d   : > { %v1169_v51 = vadd.f32 %v1167_v2, %v1161_v6 }
 0x51e   : > { %v1196_v55 = vld [vmem:[#allocation3] sm:$0xff]  ;;  %v1176_v59 = vadd.f32 %v1174_v21, %v1168_v19 }
 0x51f   : > { %v1197_v48 = vld [vmem:[#allocation3 + $0x8] sm:$0xff]  ;;  %v1200_v61 = vmul.f32 %v1199_v40, %v1196_v55  ;;  %v1177_v24 = vadd.f32 %v1175_v11, %v1169_v51  ;;  %v1313_v11 = vstv %s2590_s12 }
 0x520   : > { %v1204_v47 = vld [vmem:[#allocation3 + $0x1] sm:$0xff]  ;;  %v1205_v50 = vld [vmem:[#allocation3 + $0x9] sm:$0xff]  ;;  %v1201_v26 = vmul.f32 %v1199_v40, %v1197_v48  ;;  %v1281_v40 = vstv %s2576_s10  ;;  %s2649_s10 = sld [smem:[#allocation5 + $0x61]] }
 0x521   : > { %v1212_v53 = vld [vmem:[#allocation3 + $0x2] sm:$0xff]  ;;  %v1213_v62 = vld [vmem:[#allocation3 + $0xa] sm:$0xff]  ;;  %v1202_v9 = vadd.f32 %v1200_v61, %v1176_v59  ;;  %v1208_v44 = vmul.f32 %v1207_v57, %v1204_v47  ;;  %v1209_v17 = vmul.f32 %v1207_v57, %v1205_v50  ;;  %v1335_v61 = vpop.permute.xlu2 %1334 }
 0x522   : > { %v1220_v63 = vld [vmem:[#allocation3 + $0x3] sm:$0xff]  ;;  %v1221_v25 = vld [vmem:[#allocation3 + $0xb] sm:$0xff]  ;;  %v1216_v60 = vmul.f32 %v1215_v0, %v1212_v53  ;;  %v1203_v23 = vadd.f32 %v1201_v26, %v1177_v24  ;;  %v1217_v35 = vmul.f32 %v1215_v0, %v1213_v62  ;;  %v1321_v26 = vstv %s2597_s28 }
 0x523   : > { %v1228_v58 = vld [vmem:[#allocation3 + $0x4] sm:$0xff]  ;;  %v1229_v4 = vld [vmem:[#allocation3 + $0xc] sm:$0xff]  ;;  %v1210_v20 = vadd.f32 %v1208_v44, %v1202_v9  ;;  %v1224_v30 = vmul.f32 %v1223_v15, %v1220_v63  ;;  %v1225_v42 = vmul.f32 %v1223_v15, %v1221_v25  ;;  %v1289_v63 = vstv %s2579_s13  ;;  %s176_s13 = sand.u32 1, %s1816_s15  }
 0x524   : > { %v1236_v37 = vld [vmem:[#allocation3 + $0x5] sm:$0xff]  ;;  %v1237_v52 = vld [vmem:[#allocation3 + $0xd] sm:$0xff]  ;;  %v1232_v13 = vmul.f32 %v1231_v12, %v1228_v58  ;;  %v1211_v18 = vadd.f32 %v1209_v17, %v1203_v23  ;;  %v1233_v45 = vmul.f32 %v1231_v12, %v1229_v4  ;;  %v1297_v4 = vstv %s2582_s18  ;;  %s1680_s18 = sshll.u32 %s1883_s2, 4 }
 0x525   : > { %v1244_v5 = vld [vmem:[#allocation3 + $0x6] sm:$0xff]  ;;  %v2568_v16 = vld [vmem:[#allocation3 + $0xe] sm:$0xff]  ;;  %v1218_v3 = vadd.f32 %v1216_v60, %v1210_v20  ;;  %v1240_v14 = vmul.f32 %v1239_v29, %v1236_v37  ;;  %v1241_v62 = vmul.f32 %v1239_v29, %v1237_v52  ;;  %v1305_v37 = vstv %s2585_s20  ;;  %s1572_s20 = sshll.u32 %s176_s13, 4 }
 0x526   : > { %1267 = vst.msk [vmem:[#allocation3] sm:$0xff] %vm463_vm2, %v1259_v7  ;;  %v1219_v33 = vadd.f32 %v1217_v35, %v1211_v18  ;;  %v1248_v31 = vmul.f32 %v1247_v1, %v1244_v5  ;;  %v1249_v58 = vmul.f32 %v1247_v1, %v2568_v16  ;;  %v1347_v1 = vstv %s2604_s29  ;;  %s1488_s29 = scalar_lea.hbm %s2696_s3, %s1680_s18  ;;  %s178_s2 = scalar_lea.vmem [#allocation8], %s1572_s20 }
 0x527   : > { %1268 = vst.msk [vmem:[#allocation3 + $0x8] sm:$0xff] %vm463_vm2, %v1261_v56  ;;  %v1226_v32 = vadd.f32 %v1224_v30, %v1218_v3 }
 0x528   : > { %1269 = vst.msk [vmem:[#allocation3 + $0x10] sm:$0x3f] %vm466_vm4, %v1263_v8  ;;  %v1227_v22 = vadd.f32 %v1225_v42, %v1219_v33  ;;  %v1407_v33 = vpop.permute.xlu1 %1406  ;;  %v1411_v42 = vpop.permute.xlu0 %1410 }
 0x529   : > { %v1234_v36 = vadd.f32 %v1232_v13, %v1226_v32 }
 0x52a   : > { %v1235_v50 = vadd.f32 %v1233_v45, %v1227_v22 }
 0x52b   : > { %v1242_v49 = vadd.f32 %v1240_v14, %v1234_v36 }
 0x52c   : > { %v1243_v25 = vadd.f32 %v1241_v62, %v1235_v50 }
 0x52d   : > { %v1270_v41 = vld [vmem:[#allocation3] sm:$0xff]  ;;  %v1250_v48 = vadd.f32 %v1248_v31, %v1242_v49  ;;  %v1409_v31 = vpop.permute.xlu2 %1408 }
 0x52e   : > { %v1271_v54 = vld [vmem:[#allocation3 + $0x8] sm:$0xff]  ;;  %v1274_v47 = vmul.f32 %v1273_v27, %v1270_v41  ;;  %v1251_v9 = vadd.f32 %v1249_v58, %v1243_v25  ;;  %v1387_v58 = vstv %s2620_s8 }
 0x52f   : > { %v1278_v10 = vld [vmem:[#allocation3 + $0x1] sm:$0xff]  ;;  %v1279_v28 = vld [vmem:[#allocation3 + $0x9] sm:$0xff]  ;;  %v1275_v44 = vmul.f32 %v1273_v27, %v1271_v54 }
 0x530   : > { %v1286_v46 = vld [vmem:[#allocation3 + $0x2] sm:$0xff]  ;;  %v1287_v38 = vld [vmem:[#allocation3 + $0xa] sm:$0xff]  ;;  %v1276_v2 = vadd.f32 %v1274_v47, %v1250_v48  ;;  %v1282_v0 = vmul.f32 %v1281_v40, %v1278_v10  ;;  %v1283_v51 = vmul.f32 %v1281_v40, %v1279_v28 }
 0x531   : > { %v1294_v34 = vld [vmem:[#allocation3 + $0x3] sm:$0xff]  ;;  %v1295_v19 = vld [vmem:[#allocation3 + $0xb] sm:$0xff]  ;;  %v1290_v8 = vmul.f32 %v1289_v63, %v1286_v46  ;;  %v1277_v56 = vadd.f32 %v1275_v44, %v1251_v9  ;;  %v1291_v24 = vmul.f32 %v1289_v63, %v1287_v38  ;;  %v1395_v9 = vstv %s2626_s7 }
 0x532   : > { %v1302_v21 = vld [vmem:[#allocation3 + $0x4] sm:$0xff]  ;;  %v2588_v55 = vld [vmem:[#allocation3 + $0xc] sm:$0xff]  ;;  %v1284_v7 = vadd.f32 %v1282_v0, %v1276_v2  ;;  %v1298_v5 = vmul.f32 %v1297_v4, %v1294_v34  ;;  %v1299_v35 = vmul.f32 %v1297_v4, %v1295_v19  ;;  %v1355_v34 = vstv %s2607_s5  ;;  %s1489_s5 = sshll.u32 %s178_s2, 4  ;;  %s1490_s5 = int_to_ptr.vmem [resolvable:$true] %s1489_s5 }
 0x533   : > { %v1310_v57 = vld [vmem:[#allocation3 + $0x5] sm:$0xff]  ;;  %v2592_v53 = vld [vmem:[#allocation3 + $0xd] sm:$0xff]  ;;  %v1306_v16 = vmul.f32 %v1305_v37, %v1302_v21  ;;  %v1285_v60 = vadd.f32 %v1283_v51, %v1277_v56  ;;  %v1307_v38 = vmul.f32 %v1305_v37, %v2588_v55  ;;  %v1421_v51 = vstv %s2631_s6 }
 0x534   : > { %v1318_v59 = vld [vmem:[#allocation3 + $0x6] sm:$0xff]  ;;  %v2595_v6 = vld [vmem:[#allocation3 + $0xe] sm:$0xff]  ;;  %v1292_v52 = vadd.f32 %v1290_v8, %v1284_v7  ;;  %v1314_v17 = vmul.f32 %v1313_v11, %v1310_v57  ;;  %v1315_v21 = vmul.f32 %v1313_v11, %v2592_v53  ;;  %v1371_v57 = vstv %s2613_s4  ;;  %s1477_s4 = scalar_lea.sflag [#allocation6], %s176_s13 }
 0x535   : > { %1341 = vst.msk [vmem:[#allocation3] sm:$0xff] %vm463_vm2, %v1333_v39  ;;  %v1293_v18 = vadd.f32 %v1291_v24, %v1285_v60  ;;  %v1322_v27 = vmul.f32 %v1321_v26, %v1318_v59  ;;  %v1363_v39 = vstv %s2610_s30  ;;  %v1323_v47 = vmul.f32 %v1321_v26, %v2595_v6  ;;  %s1491_s30 = sshll.u32 %s1488_s29, 4  ;;  %s1492_s30 = int_to_ptr.hbm [resolvable:$true] %s1491_s30 }
 0x536   : > { %1342 = vst.msk [vmem:[#allocation3 + $0x8] sm:$0xff] %vm463_vm2, %v1335_v61  ;;  %v1300_v15 = vadd.f32 %v1298_v5, %v1292_v52  ;;  %v1379_v53 = vstv %s2616_s21  ;;  %v1429_v24 = vstv %s2634_s9  ;;  %s1772_s21 = sshra.s32 %s1492_s30, 4  ;;  %s1778_s9 = scalar_lea.hbm %s2696_s3, 32  ;;  %s1773_s21 = int_to_ptr.hbm [resolvable:$true] %s1772_s21 }
 0x537   : > { %1343 = vst.msk [vmem:[#allocation3 + $0x10] sm:$0x3f] %vm466_vm4, %v1337_v43  ;;  %v1301_v28 = vadd.f32 %v1299_v35, %v1293_v18  ;;  %s1774_s8 = scalar_lea.hbm %s1773_s21, 16  ;;  %p1779_p3 = scmp.lt.s32.totalorder %s1773_s21, %s2696_s3 }
 0x538   : > { %v1308_v23 = vadd.f32 %v1306_v16, %v1300_v15  ;;  %p1775_p0 = scmp.ne.s32.totalorder %s1773_s21, %s1774_s8  ;;  %p1780_p4 = scmp.lt.s32.totalorder %s1778_s9, %s1774_s8 }
 0x539   : > { %v1309_v19 = vadd.f32 %v1307_v38, %v1301_v28 }
 0x53a   : > { %v1316_v54 = vadd.f32 %v1314_v17, %v1308_v23  ;;  %v1437_v17 = vstv %s2637_s11  ;;  %p1776_p1 = pnand %p1775_p0, %p1900_p5  ;;  %p1781_p7 = por %p1780_p4, %p1779_p3 }
 0x53b   : > { %v1317_v48 = vadd.f32 %v1315_v21, %v1309_v19 }
 0x53c   : > { %v1344_v20 = vld [vmem:[#allocation3] sm:$0xff]  ;;  %v1324_v45 = vadd.f32 %v1322_v27, %v1316_v54  ;;  %p1777_p2 = pneg %p1776_p1 }
 0x53d   : > { %v1345_v12 = vld [vmem:[#allocation3 + $0x8] sm:$0xff]  ;;  %v1348_v40 = vmul.f32 %v1347_v1, %v1344_v20  ;;  %v1325_v50 = vadd.f32 %v1323_v47, %v1317_v48 }
 0x53e   : > { %v1352_v3 = vld [vmem:[#allocation3 + $0x1] sm:$0xff]  ;;  %v1353_v29 = vld [vmem:[#allocation3 + $0x9] sm:$0xff]  ;;  %v1349_v62 = vmul.f32 %v1347_v1, %v1345_v12  ;;  %p1782_p8 = pnand %p1781_p7, %p1777_p2 }
 0x53f   : > { %v1360_v30 = vld [vmem:[#allocation3 + $0x2] sm:$0xff]  ;;  %v1361_v32 = vld [vmem:[#allocation3 + $0xa] sm:$0xff]  ;;  %v1350_v55 = vadd.f32 %v1348_v40, %v1324_v45  ;;  %v1356_v43 = vmul.f32 %v1355_v34, %v1352_v3  ;;  %v1357_v25 = vmul.f32 %v1355_v34, %v1353_v29 }
 0x540   : > { %v1368_v13 = vld [vmem:[#allocation3 + $0x3] sm:$0xff]  ;;  %v1369_v36 = vld [vmem:[#allocation3 + $0xb] sm:$0xff]  ;;  %v1364_v61 = vmul.f32 %v1363_v39, %v1360_v30  ;;  %v1351_v0 = vadd.f32 %v1349_v62, %v1325_v50  ;;  %v1365_v8 = vmul.f32 %v1363_v39, %v1361_v32 }
 0x541   : > { %v1376_v14 = vld [vmem:[#allocation3 + $0x4] sm:$0xff]  ;;  %v1377_v41 = vld [vmem:[#allocation3 + $0xc] sm:$0xff]  ;;  %v1358_v59 = vadd.f32 %v1356_v43, %v1350_v55  ;;  %v1372_v2 = vmul.f32 %v1371_v57, %v1368_v13  ;;  %v1373_v5 = vmul.f32 %v1371_v57, %v1369_v36  ;;  %v1445_v36 = vstv %s2640_s25 }
 0x542   : > { %v1384_v10 = vld [vmem:[#allocation3 + $0x5] sm:$0xff]  ;;  %v1385_v46 = vld [vmem:[#allocation3 + $0xd] sm:$0xff]  ;;  %v1380_v4 = vmul.f32 %v1379_v53, %v1376_v14  ;;  %v1359_v7 = vadd.f32 %v1357_v25, %v1351_v0  ;;  %v1381_v20 = vmul.f32 %v1379_v53, %v1377_v41  ;;  %v1469_v43 = vstv %s2649_s10 }
 0x543   : > { %v1392_v49 = vld [vmem:[#allocation3 + $0x6] sm:$0xff]  ;;  %v1393_v22 = vld [vmem:[#allocation3 + $0xe] sm:$0xff]  ;;  %v1366_v63 = vadd.f32 %v1364_v61, %v1358_v59  ;;  %v1388_v37 = vmul.f32 %v1387_v58, %v1384_v10  ;;  %v1389_v30 = vmul.f32 %v1387_v58, %v1385_v46  ;;  %v1453_v10 = vstv %s2643_s26 }
 0x544   : > { %1415 = vst.msk [vmem:[#allocation3] sm:$0xff] %vm463_vm2, %v1407_v33  ;;  %v1367_v52 = vadd.f32 %v1365_v8, %v1359_v7  ;;  %v1396_v15 = vmul.f32 %v1395_v9, %v1392_v49  ;;  %v1397_v35 = vmul.f32 %v1395_v9, %v1393_v22  ;;  %v1461_v22 = vstv %s2646_s27 }
 0x545   : > { %1416 = vst.msk [vmem:[#allocation3 + $0x8] sm:$0xff] %vm463_vm2, %v1409_v31  ;;  %v1374_v6 = vadd.f32 %v1372_v2, %v1366_v63 }
 0x546   : > { %1417 = vst.msk [vmem:[#allocation3 + $0x10] sm:$0x3f] %vm466_vm4, %v1411_v42  ;;  %v1375_v16 = vadd.f32 %v1373_v5, %v1367_v52 }
 0x547   : > { %v1382_v44 = vadd.f32 %v1380_v4, %v1374_v6 }
 0x548   : > { %v1383_v3 = vadd.f32 %v1381_v20, %v1375_v16 }
 0x549   : > { %v1390_v11 = vadd.f32 %v1388_v37, %v1382_v44 }
 0x54a   : > { %v1391_v18 = vadd.f32 %v1389_v30, %v1383_v3 }
 0x54b   : > { %v1418_v56 = vld [vmem:[#allocation3] sm:$0xff]  ;;  %v1398_v26 = vadd.f32 %v1396_v15, %v1390_v11 }
 0x54c   : > { %v1426_v60 = vld [vmem:[#allocation3 + $0x1] sm:$0xff]  ;;  %v1422_v12 = vmul.f32 %v1421_v51, %v1418_v56  ;;  %v1399_v42 = vadd.f32 %v1397_v35, %v1391_v18 }
 0x54d   : > { %v1434_v23 = vld [vmem:[#allocation3 + $0x2] sm:$0xff]  ;;  %v1430_v13 = vmul.f32 %v1429_v24, %v1426_v60  ;;  %v1435_v46 = vld [vmem:[#allocation3 + $0xa] sm:$0xff] }
 0x54e   : > { %v1419_v29 = vld [vmem:[#allocation3 + $0x8] sm:$0xff]  ;;  %v1424_v32 = vadd.f32 %v1422_v12, %v1398_v26  ;;  %v1438_v33 = vmul.f32 %v1437_v17, %v1434_v23  ;;  %v1439_v39 = vmul.f32 %v1437_v17, %v1435_v46 }
 0x54f   : > { %v1442_v1 = vld [vmem:[#allocation3 + $0x3] sm:$0xff]  ;;  %v1423_v54 = vmul.f32 %v1421_v51, %v1419_v29  ;;  %v1443_v45 = vld [vmem:[#allocation3 + $0xb] sm:$0xff] }
 0x550   : > { %v1427_v14 = vld [vmem:[#allocation3 + $0x9] sm:$0xff]  ;;  %v1432_v41 = vadd.f32 %v1430_v13, %v1424_v32  ;;  %v1446_v31 = vmul.f32 %v1445_v36, %v1442_v1  ;;  %v1447_v61 = vmul.f32 %v1445_v36, %v1443_v45 }
 0x551   : > { %v1450_v27 = vld [vmem:[#allocation3 + $0x4] sm:$0xff]  ;;  %v1425_v28 = vadd.f32 %v1423_v54, %v1399_v42  ;;  %v1431_v38 = vmul.f32 %v1429_v24, %v1427_v14  ;;  %v1451_v48 = vld [vmem:[#allocation3 + $0xc] sm:$0xff] }
 0x552   : > { %v1440_v49 = vadd.f32 %v1438_v33, %v1432_v41  ;;  %v1458_v34 = vld [vmem:[#allocation3 + $0x5] sm:$0xff]  ;;  %v1454_v19 = vmul.f32 %v1453_v10, %v1450_v27  ;;  %v1459_v50 = vld [vmem:[#allocation3 + $0xd] sm:$0xff]  ;;  %v1455_v2 = vmul.f32 %v1453_v10, %v1451_v48 }
 0x553   : > { %v1433_v21 = vadd.f32 %v1431_v38, %v1425_v28  ;;  %v1466_v55 = vld [vmem:[#allocation3 + $0x6] sm:$0xff]  ;;  %v1462_v57 = vmul.f32 %v1461_v22, %v1458_v34  ;;  %v1467_v0 = vld [vmem:[#allocation3 + $0xe] sm:$0xff]  ;;  %v1463_v6 = vmul.f32 %v1461_v22, %v1459_v50 }
 0x554   : > { %v1448_v40 = vadd.f32 %v1446_v31, %v1440_v49  ;;  %v1470_v53 = vmul.f32 %v1469_v43, %v1466_v55  ;;  %v1471_v7 = vmul.f32 %v1469_v43, %v1467_v0 }
 0x555   : > { %v1441_v59 = vadd.f32 %v1439_v39, %v1433_v21 }
 0x556   : > { %v1456_v47 = vadd.f32 %v1454_v19, %v1448_v40 }
 0x557   : > { %v1449_v63 = vadd.f32 %v1447_v61, %v1441_v59 }
 0x558   : > { %v1464_v62 = vadd.f32 %v1462_v57, %v1456_v47 }
 0x559   : > { %v1457_v58 = vadd.f32 %v1455_v2, %v1449_v63 }
 0x55a   : > { %v1472_v25 = vadd.f32 %v1470_v53, %v1464_v62 }
 0x55b   : > { %v1465_v4 = vadd.f32 %v1463_v6, %v1457_v58 }
 0x55c   : > { %1474 = vst.msk [vmem:[%s178_s2] sm:$0xff] %vm463_vm2, %v1472_v25 }
 0x55d   : > { %v1473_v8 = vadd.f32 %v1471_v7, %v1465_v4 }
 0x55f   : > { %1475 = vst.msk [vmem:[%s178_s2 + $0x8] sm:$0xff] %vm463_vm2, %v1473_v8 }
 0x560   : > { %1785 = shalt.err (!%p1782_p8)
}
 0x561   : > { %s1837_s26 = smov 128   ;;  %s1838_s27 = smov 8  }
 0x562   : > { %1685 = dma.vmem_to_hbm [thread:$0]  (%p1900_p5), %s1490_s5, 256, %s1492_s30, %s1477_s4, %s1837_s26, %s1837_s26, %s1838_s27  }
 0x563 PF: > { %p1697_p9 = scmp.ge.s32.totalorder %s1824_s17, 2  ;;  %s1506_s10 = sand.u32 1, %s1812_s14  }
 0x564   : > { %s1507_s13 = scalar_lea.sflag [#allocation6], %s1506_s10 }
 0x565   : > { %p1692_p10 = pnand %p1697_p9, %p1904_p6 }
 0x567   : > { %p1693_p11 = pneg %p1692_p10 }
 0x569   : > { %1807 = dma.done.wait (%p1693_p11), %s1507_s13, 256  }
 0x56a   : > { %1809 = vsyncadd (%p1693_p11), %s1507_s13, 4294967040  ;;  %p15_p12 = scmp.ge.s32.totalorder %s1887_s19, 4   ;;  %s2710_s14 = smov %s1816_s15 }
 0x56b   : > { %s2711_s15 = smov %s1820_s16  ;;  %s2712_s16 = smov %s1898_s22 }
 0x56c   : > { %s2713_s17 = smov %s1887_s19  ;;  %17 = sbr.rel (!%p15_p12) target bundleno = 6 (0x6), region = 74 }
 0x571   :  { %1513 = vsyncpa [#allocation6], 1 }
 0x572   :  { %1515 = vsyncpa [#allocation6 + $0x1], 1 }
 0x573   :  { %1516 = vsyncpa [#allocation7], 1 }
 0x574   :  { %1518 = vsyncpa [#allocation7 + $0x1], 1 }

</bundles_post_ra>
